<compile_context>
chip_gen: v5e
topology: v5e:2x2
jax: 0.10.0
libtpu: 0.0.40
codegen_flags: <defaults>
</compile_context>

<pallas_src>
import jax
import jax.numpy as jnp
from jax.experimental import pallas as pl
from jax.experimental.pallas import tpu as pltpu


def mlp_kernel(x_ref, w1_ref, b1_ref, w2_ref, b2_ref,
               w3_ref, b3_ref, w4_ref, b4_ref, o_ref):
    # In-kernel f32 -> bf16 cast: cheap VPU work hidden under the MXU, and it
    # keeps the HBM read of x at 4 B/elem with no separate convert pass.
    x = x_ref[...].astype(jnp.bfloat16)                          # (bm, 512)

    # net: Linear(512,256) + ReLU  (bf16 MXU matmul, f32 accumulate)
    h1 = jnp.dot(x, w1_ref[...], preferred_element_type=jnp.float32) + b1_ref[...]
    h1 = jnp.maximum(h1, 0.0)

    # Dropout(0.2): identity in eval mode.
    # TODO(synk): training-mode dropout (random mask + 1/(1-p) scale) not implemented.

    # net: Linear(256,128) + ReLU
    h2 = jnp.dot(h1.astype(jnp.bfloat16), w2_ref[...],
                 preferred_element_type=jnp.float32) + b2_ref[...]
    h2 = jnp.maximum(h2, 0.0)

    # predictor: Linear(128,64) + ReLU
    h3 = jnp.dot(h2.astype(jnp.bfloat16), w3_ref[...],
                 preferred_element_type=jnp.float32) + b3_ref[...]
    h3 = jnp.maximum(h3, 0.0)

    # predictor: Linear(64,1) as VPU multiply + XLU reduce (a 1-column MXU
    # matmul would waste the systolic array); store lane-dense (1, 1, bm).
    out = jnp.sum(h3 * w4_ref[...], axis=-1, keepdims=True) + b4_ref[...]   # (bm, 1)
    o_ref[...] = out.reshape(o_ref.shape).astype(o_ref.dtype)


def mlp_forward(x, params, *, block_m=None):
    """x: (N, 4, 128) float32 -> (N, 1) float32.

    block_m must be a multiple of 128 (lane-dense output tile). If None it is
    chosen as min(2048, round_up(cdiv(N, 2), 128)): big enough to amortize
    per-grid-step overhead, small enough to give >= 2 grid steps (both v7x
    TensorCores) whenever N allows. VMEM at block_m=2048 is ~12 MiB, well
    inside the explicit 32 MiB scoped limit on every generation.
    """
    N = x.shape[0]
    x2d = x.reshape(N, 4 * 128)                                  # (N, 512) f32, no copy

    if block_m is None:
        block_m = min(2048, max(128, pl.cdiv(pl.cdiv(N, 2), 128) * 128))
    assert block_m % 128 == 0

    # Last block may be partial: out-of-range rows hold garbage, but rows never
    # mix (all ops are per-row), and the wrapper slices the result to [:N].
    grid_m = pl.cdiv(N, block_m)

    w1, b1, w2, b2, w3, b3, w4, b4 = params
    # bf16 weights for native-rate MXU matmuls (f32 accumulation in-kernel).
    w1b = w1.astype(jnp.bfloat16)
    w2b = w2.astype(jnp.bfloat16)
    w3b = w3.astype(jnp.bfloat16)
    w4r = w4.reshape(1, 64).astype(jnp.float32)   # row form for the VPU reduce
    b1 = b1.reshape(1, -1).astype(jnp.float32)
    b2 = b2.reshape(1, -1).astype(jnp.float32)
    b3 = b3.reshape(1, -1).astype(jnp.float32)
    b4 = b4.reshape(1, 1).astype(jnp.float32)

    full2 = lambda i: (0, 0)  # weights / biases: same whole block every grid step

    flops = 2 * N * (512 * 256 + 256 * 128 + 128 * 64 + 64)
    bytes_accessed = (N * 512 * 4                                # x read (f32, in-kernel cast)
                      + (w1b.size + w2b.size + w3b.size) * 2     # bf16 weights
                      + (w4r.size + b1.size + b2.size + b3.size + b4.size) * 4
                      + grid_m * block_m * 4)                    # output

    out = pl.pallas_call(
        mlp_kernel,
        out_shape=jax.ShapeDtypeStruct((grid_m, 1, block_m), jnp.float32),
        grid_spec=pltpu.PrefetchScalarGridSpec(
            num_scalar_prefetch=0,
            grid=(grid_m,),
            in_specs=[
                pl.BlockSpec((block_m, 512), lambda i: (i, 0)),   # x tile (f32)
                pl.BlockSpec((512, 256), full2),                  # W1 (bf16)
                pl.BlockSpec((1, 256), full2),                    # b1
                pl.BlockSpec((256, 128), full2),                  # W2 (bf16)
                pl.BlockSpec((1, 128), full2),                    # b2
                pl.BlockSpec((128, 64), full2),                   # W3 (bf16)
                pl.BlockSpec((1, 64), full2),                     # b3
                pl.BlockSpec((1, 64), full2),                     # W4 row (f32)
                pl.BlockSpec((1, 1), full2),                      # b4
            ],
            out_specs=pl.BlockSpec((1, 1, block_m), lambda i: (i, 0, 0)),
        ),
        compiler_params=pltpu.CompilerParams(
            dimension_semantics=("parallel",),
            vmem_limit_bytes=32 * 1024 * 1024),
        cost_estimate=pl.CostEstimate(flops=flops, transcendentals=0,
                                      bytes_accessed=bytes_accessed),
    )(x2d, w1b, b1, w2b, b2, w3b, b3, w4r, b4)

    return out.reshape(grid_m * block_m, 1)[:N]


def init_params(key):
    """Deterministic parameter init (uniform, PyTorch-Linear-style bounds).
    Weights stored as (in_features, out_features)."""
    dims = [(512, 256), (256, 128), (128, 64), (64, 1)]
    params = []
    for (fan_in, fan_out) in dims:
        key, kw, kb = jax.random.split(key, 3)
        bound = 1.0 / jnp.sqrt(fan_in)
        w = jax.random.uniform(kw, (fan_in, fan_out), jnp.float32, -bound, bound)
        b = jax.random.uniform(kb, (fan_out,), jnp.float32, -bound, bound)
        params += [w, b]
    return tuple(params)


def mlp_reference(x, params):
    """Pure-JAX reference with the same bf16-matmul / f32-accumulate numerics
    (eval-mode dropout)."""
    w1, b1, w2, b2, w3, b3, w4, b4 = params
    h = x.reshape(x.shape[0], -1).astype(jnp.bfloat16)
    h = jnp.maximum(jnp.dot(h, w1.astype(jnp.bfloat16),
                            preferred_element_type=jnp.float32) + b1, 0.0)
    h = jnp.maximum(jnp.dot(h.astype(jnp.bfloat16), w2.astype(jnp.bfloat16),
                            preferred_element_type=jnp.float32) + b2, 0.0)
    h = jnp.maximum(jnp.dot(h.astype(jnp.bfloat16), w3.astype(jnp.bfloat16),
                            preferred_element_type=jnp.float32) + b3, 0.0)
    return jnp.dot(h, w4, preferred_element_type=jnp.float32) + b4


if __name__ == "__main__":
    key = jax.random.PRNGKey(0)
    k_param, k_x = jax.random.split(key)

    params = init_params(k_param)
    # N=500 -> block_m=256, grid_m=2: exercises the partial (garbage-row) last
    # block and gives the parallel grid axis >=2 steps for v7x's 2 TensorCores.
    x = jax.random.normal(k_x, (500, 4, 128), jnp.float32)

    out = jax.block_until_ready(mlp_forward(x, params))
    ref = mlp_reference(x, params)

    assert out.shape == (500, 1)
    assert jnp.allclose(out, ref, atol=1e-2, rtol=1e-2), \
        float(jnp.max(jnp.abs(out - ref)))

    print("KERNEL_OK")
</pallas_src>

<mosaic_0001>
module attributes {stable_mosaic.version = 11 : i64} {
  func.func @mlp_kernel(%arg0: i32, %arg1: memref<256x512xf32, #tpu.memory_space<vmem>>, %arg2: memref<512x256xbf16, #tpu.memory_space<vmem>>, %arg3: memref<1x256xf32, #tpu.memory_space<vmem>>, %arg4: memref<256x128xbf16, #tpu.memory_space<vmem>>, %arg5: memref<1x128xf32, #tpu.memory_space<vmem>>, %arg6: memref<128x64xbf16, #tpu.memory_space<vmem>>, %arg7: memref<1x64xf32, #tpu.memory_space<vmem>>, %arg8: memref<1x64xf32, #tpu.memory_space<vmem>>, %arg9: memref<1x1xf32, #tpu.memory_space<vmem>>, %arg10: memref<1x1x256xf32, #tpu.memory_space<vmem>>) attributes {dimension_semantics = [#tpu.dimension_semantics<parallel>], iteration_bounds = array<i64: 2>, scalar_prefetch = 0 : i64, scratch_operands = 0 : i64, tpu.core_type = #tpu.core_type<tc>, window_params = [{transform_indices = @transform_0, window_bounds = array<i64: 256, 512>}, {pipeline_mode = #tpu.pipeline_mode<synchronous>, transform_indices = @transform_1, window_bounds = array<i64: 512, 256>}, {pipeline_mode = #tpu.pipeline_mode<synchronous>, transform_indices = @transform_2, window_bounds = array<i64: 1, 256>}, {pipeline_mode = #tpu.pipeline_mode<synchronous>, transform_indices = @transform_3, window_bounds = array<i64: 256, 128>}, {pipeline_mode = #tpu.pipeline_mode<synchronous>, transform_indices = @transform_4, window_bounds = array<i64: 1, 128>}, {pipeline_mode = #tpu.pipeline_mode<synchronous>, transform_indices = @transform_5, window_bounds = array<i64: 128, 64>}, {pipeline_mode = #tpu.pipeline_mode<synchronous>, transform_indices = @transform_6, window_bounds = array<i64: 1, 64>}, {pipeline_mode = #tpu.pipeline_mode<synchronous>, transform_indices = @transform_7, window_bounds = array<i64: 1, 64>}, {pipeline_mode = #tpu.pipeline_mode<synchronous>, transform_indices = @transform_8, window_bounds = array<i64: 1, 1>}, {transform_indices = @transform_9, window_bounds = array<i64: 1, 1, 256>}]} {
    %c0 = arith.constant 0 : index
    %c0_0 = arith.constant 0 : index
    %0 = vector.load %arg1[%c0, %c0_0] : memref<256x512xf32, #tpu.memory_space<vmem>>, vector<256x512xf32>
    %1 = arith.truncf %0 : vector<256x512xf32> to vector<256x512xbf16>
    %c0_1 = arith.constant 0 : index
    %c0_2 = arith.constant 0 : index
    %2 = vector.load %arg2[%c0_1, %c0_2] : memref<512x256xbf16, #tpu.memory_space<vmem>>, vector<512x256xbf16>
    %cst = arith.constant dense<0.000000e+00> : vector<256x256xf32>
    %3 = tpu.matmul %1, %2, %cst {dimension_numbers = #tpu.dot_dimension_numbers<[1], [0], [0], [1], [0, 0, 1, 1], [], []>} : vector<256x512xbf16>, vector<512x256xbf16>, vector<256x256xf32> -> vector<256x256xf32>
    %c0_3 = arith.constant 0 : index
    %c0_4 = arith.constant 0 : index
    %4 = vector.load %arg3[%c0_3, %c0_4] : memref<1x256xf32, #tpu.memory_space<vmem>>, vector<1x256xf32>
    %5 = vector.broadcast %4 : vector<1x256xf32> to vector<256x256xf32>
    %6 = arith.addf %3, %5 : vector<256x256xf32>
    %cst_5 = arith.constant 0.000000e+00 : f32
    %7 = vector.broadcast %cst_5 : f32 to vector<256x256xf32>
    %8 = arith.maximumf %6, %7 : vector<256x256xf32>
    %9 = arith.truncf %8 : vector<256x256xf32> to vector<256x256xbf16>
    %c0_6 = arith.constant 0 : index
    %c0_7 = arith.constant 0 : index
    %10 = vector.load %arg4[%c0_6, %c0_7] : memref<256x128xbf16, #tpu.memory_space<vmem>>, vector<256x128xbf16>
    %cst_8 = arith.constant dense<0.000000e+00> : vector<256x128xf32>
    %11 = tpu.matmul %9, %10, %cst_8 {dimension_numbers = #tpu.dot_dimension_numbers<[1], [0], [0], [1], [0, 0, 1, 1], [], []>} : vector<256x256xbf16>, vector<256x128xbf16>, vector<256x128xf32> -> vector<256x128xf32>
    %c0_9 = arith.constant 0 : index
    %c0_10 = arith.constant 0 : index
    %12 = vector.load %arg5[%c0_9, %c0_10] : memref<1x128xf32, #tpu.memory_space<vmem>>, vector<1x128xf32>
    %13 = vector.broadcast %12 : vector<1x128xf32> to vector<256x128xf32>
    %14 = arith.addf %11, %13 : vector<256x128xf32>
    %cst_11 = arith.constant 0.000000e+00 : f32
    %15 = vector.broadcast %cst_11 : f32 to vector<256x128xf32>
    %16 = arith.maximumf %14, %15 : vector<256x128xf32>
    %17 = arith.truncf %16 : vector<256x128xf32> to vector<256x128xbf16>
    %c0_12 = arith.constant 0 : index
    %c0_13 = arith.constant 0 : index
    %18 = vector.load %arg6[%c0_12, %c0_13] : memref<128x64xbf16, #tpu.memory_space<vmem>>, vector<128x64xbf16>
    %cst_14 = arith.constant dense<0.000000e+00> : vector<256x64xf32>
    %19 = tpu.matmul %17, %18, %cst_14 {dimension_numbers = #tpu.dot_dimension_numbers<[1], [0], [0], [1], [0, 0, 1, 1], [], []>} : vector<256x128xbf16>, vector<128x64xbf16>, vector<256x64xf32> -> vector<256x64xf32>
    %c0_15 = arith.constant 0 : index
    %c0_16 = arith.constant 0 : index
    %20 = vector.load %arg7[%c0_15, %c0_16] : memref<1x64xf32, #tpu.memory_space<vmem>>, vector<1x64xf32>
    %21 = vector.broadcast %20 : vector<1x64xf32> to vector<256x64xf32>
    %22 = arith.addf %19, %21 : vector<256x64xf32>
    %cst_17 = arith.constant 0.000000e+00 : f32
    %23 = vector.broadcast %cst_17 : f32 to vector<256x64xf32>
    %24 = arith.maximumf %22, %23 : vector<256x64xf32>
    %c0_18 = arith.constant 0 : index
    %c0_19 = arith.constant 0 : index
    %25 = vector.load %arg8[%c0_18, %c0_19] : memref<1x64xf32, #tpu.memory_space<vmem>>, vector<1x64xf32>
    %26 = vector.broadcast %25 : vector<1x64xf32> to vector<256x64xf32>
    %27 = arith.mulf %24, %26 : vector<256x64xf32>
    %cst_20 = arith.constant dense<0.000000e+00> : vector<256xf32>
    %28 = vector.multi_reduction <add>, %27, %cst_20 [1] : vector<256x64xf32> to vector<256xf32>
    %29 = vector.shape_cast %28 : vector<256xf32> to vector<256x1xf32>
    %c0_21 = arith.constant 0 : index
    %c0_22 = arith.constant 0 : index
    %30 = vector.load %arg9[%c0_21, %c0_22] : memref<1x1xf32, #tpu.memory_space<vmem>>, vector<1x1xf32>
    %31 = vector.broadcast %30 : vector<1x1xf32> to vector<256x1xf32>
    %32 = arith.addf %29, %31 : vector<256x1xf32>
    %33 = vector.shape_cast %32 : vector<256x1xf32> to vector<1x1x256xf32>
    %c0_23 = arith.constant 0 : index
    %c0_24 = arith.constant 0 : index
    %c0_25 = arith.constant 0 : index
    %34 = vector.load %arg10[%c0_23, %c0_24, %c0_25] : memref<1x1x256xf32, #tpu.memory_space<vmem>>, vector<1x1x256xf32>
    tpu.vector_store %arg10[%c0_23, %c0_24, %c0_25], %33 {strides = array<i32>} : memref<1x1x256xf32, #tpu.memory_space<vmem>>, vector<1x1x256xf32>,
    return
  }
  func.func @transform_0(%arg0: i32) -> (i32, i32) {
    %c0_i32 = arith.constant 0 : i32
    %c0_i32_0 = arith.constant 0 : i32
    return %arg0, %c0_i32 : i32, i32
  }
  func.func @transform_1(%arg0: i32) -> (i32, i32) {
    %c0_i32 = arith.constant 0 : i32
    %c0_i32_0 = arith.constant 0 : i32
    %c0_i32_1 = arith.constant 0 : i32
    return %c0_i32, %c0_i32_0 : i32, i32
  }
  func.func @transform_2(%arg0: i32) -> (i32, i32) {
    %c0_i32 = arith.constant 0 : i32
    %c0_i32_0 = arith.constant 0 : i32
    %c0_i32_1 = arith.constant 0 : i32
    return %c0_i32, %c0_i32_0 : i32, i32
  }
  func.func @transform_3(%arg0: i32) -> (i32, i32) {
    %c0_i32 = arith.constant 0 : i32
    %c0_i32_0 = arith.constant 0 : i32
    %c0_i32_1 = arith.constant 0 : i32
    return %c0_i32, %c0_i32_0 : i32, i32
  }
  func.func @transform_4(%arg0: i32) -> (i32, i32) {
    %c0_i32 = arith.constant 0 : i32
    %c0_i32_0 = arith.constant 0 : i32
    %c0_i32_1 = arith.constant 0 : i32
    return %c0_i32, %c0_i32_0 : i32, i32
  }
  func.func @transform_5(%arg0: i32) -> (i32, i32) {
    %c0_i32 = arith.constant 0 : i32
    %c0_i32_0 = arith.constant 0 : i32
    %c0_i32_1 = arith.constant 0 : i32
    return %c0_i32, %c0_i32_0 : i32, i32
  }
  func.func @transform_6(%arg0: i32) -> (i32, i32) {
    %c0_i32 = arith.constant 0 : i32
    %c0_i32_0 = arith.constant 0 : i32
    %c0_i32_1 = arith.constant 0 : i32
    return %c0_i32, %c0_i32_0 : i32, i32
  }
  func.func @transform_7(%arg0: i32) -> (i32, i32) {
    %c0_i32 = arith.constant 0 : i32
    %c0_i32_0 = arith.constant 0 : i32
    %c0_i32_1 = arith.constant 0 : i32
    return %c0_i32, %c0_i32_0 : i32, i32
  }
  func.func @transform_8(%arg0: i32) -> (i32, i32) {
    %c0_i32 = arith.constant 0 : i32
    %c0_i32_0 = arith.constant 0 : i32
    %c0_i32_1 = arith.constant 0 : i32
    return %c0_i32, %c0_i32_0 : i32, i32
  }
  func.func @transform_9(%arg0: i32) -> (i32, i32, i32) {
    %c0_i32 = arith.constant 0 : i32
    %c0_i32_0 = arith.constant 0 : i32
    %c0_i32_1 = arith.constant 0 : i32
    return %arg0, %c0_i32, %c0_i32_0 : i32, i32, i32
  }
}

</mosaic_0001>

<bundles_post_ra>
// kernel: tpu_custom_call.1
= control target key start
LH: loop header
LB: loop body
LE: loop exit
PB: predicated region body
PF: predicated region fallthrough
CT: control target
= control target key end

     0   :  { %s5691_s0 = inlined_call_operand.hbm [shape: f32[500,512], index: 0, kind: input, shape index: {}]   ;;  %s5692_s1 = inlined_call_operand.hbm [shape: bf16[512,256], index: 1, kind: input, shape index: {}]   ;;  %s5693_s2 = inlined_call_operand.vmem [shape: f32[1,256], index: 2, kind: input, shape index: {}]   ;;  %s5694_s3 = inlined_call_operand.hbm [shape: bf16[256,128], index: 3, kind: input, shape index: {}]   ;;  %s5695_s4 = inlined_call_operand.vmem [shape: f32[1,128], index: 4, kind: input, shape index: {}]   ;;  %s5696_s5 = inlined_call_operand.vmem [shape: bf16[128,64], index: 5, kind: input, shape index: {}]   ;;  %s5697_s6 = inlined_call_operand.vmem [shape: f32[1,64], index: 6, kind: input, shape index: {}]   ;;  %s5698_s7 = inlined_call_operand.vmem [shape: f32[1,64], index: 7, kind: input, shape index: {}]   ;;  %s5699_s8 = inlined_call_operand.<no memory space> [shape: f32[1,1], index: 8, kind: input, shape index: {}]   ;;  %s5700_s9 = inlined_call_operand.hbm [shape: f32[2,1,256], index: 9, kind: output, shape index: {}]  }
   0x1   :  { %5733 = sst [smem:[#allocation46_spill]] %s5692_s1  ;;  %v14_v0 = vstv %s5699_s8 }
   0x2   :  { %5734 = sst [smem:[#allocation47_spill]] %s5694_s3  ;;  %15 = vst [vmem:[#allocation2] sm:$0x1] %v14_v0 }
   0x3   :  { %16 = vsyncpa [#allocation4], 0 }
   0x4   :  { %18 = vsyncpa [#allocation4 + $0x1], 0 }
   0x5   :  { %19 = vsyncpa [#allocation7], 0 }
   0x6   :  { %20 = vsyncpa [#allocation5], 0 }
   0x7   :  { %22 = vsyncpa [#allocation5 + $0x1], 0  ;;  %s4166_s11 = smov 0   ;;  %s4168_s12 = smov 0  }
   0x8   :  { %s4170_s13 = smov 0   ;;  %s4172_s14 = smov 0  }
   0x9 LB: > { %5735 = sst [smem:[#allocation13_spill]] %s4097_s13  ;;  %s4187_s8 = sadd.s32 4294967295, %s4101_s14   ;;  %s4101_s14 = sphi %s4172_s14, %s5818_s14   ;;  %s4097_s13 = sphi %s4170_s13, %s5815_s13   ;;  %s4093_s12 = sphi %s4168_s12, %s5817_s12   ;;  %s4089_s11 = sphi %s4166_s11, %s5816_s11  }
   0xa   : > { %s3364_s15 = sadd.s32 4294967294, %s4101_s14   ;;  %s4191_s16 = sadd.s32 1, %s4101_s14  }
   0xb   : > { %s35_s17 = sadd.s32 1, %s4097_s13  ;;  %s32_s18 = ssub.s32 %s4101_s14, %s4191_s16 }
   0xc   : > { %p42_p0 = scmp.ne.s32.totalorder %s4097_s13, %s4093_s12  ;;  %p33_p1 = scmp.eq.s32.totalorder %s32_s18, 0 }
   0xd   : > { %p43_p2 = scmp.eq.s32.totalorder %s4101_s14, 0  ;;  %p48_p3 = scmp.ne.s32.totalorder %s4093_s12, %s4089_s11 }
   0xe   : > { %p5704_p4 = scmp.eq.s32.totalorder %s4187_s8, 0  ;;  %p240_p7 = scmp.eq.s32.totalorder %s4187_s8, 1 }
   0xf   : > { %s4203_s19 = scalar_select %p33_p1, %s4097_s13, %s35_s17  }
  0x10   : > { %p4205_p5 = por %p43_p2, %p42_p0  ;;  %p4211_p6 = por %p5704_p4, %p48_p3 }
  0x11   : > { %5736 = sst [smem:[#allocation14_spill]] %s4203_s19  ;;  %p246_p8 = scmp.eq.s32.totalorder %s3364_s15, 1 }
  0x12   : > { %p3365_p9 = scmp.ge.s32.totalorder %s4101_s14, 1  ;;  %p253_p10 = scmp.lt.s32.totalorder %s4101_s14, 3 }
  0x13   : > { %p4218_p11 = por %p240_p7, %p42_p0  ;;  %p4222_p12 = por %p246_p8, %p48_p3 }
  0x14   : > { %p4226_p13 = pnand %p3365_p9, %p253_p10  ;;  %s5742_s1 = sld [smem:[#allocation46_spill]] }
  0x15   : > { %s5740_s23 = scalar_select %p4222_p12, 1, 0 }
  0x16   : > { %p3865_p1 = pneg %p4226_p13  ;;  %s4103_s28 = smov [#allocation6]  }
  0x17   : > { %s266_s29 = sshll.u32 %s4103_s28, 4  ;;  %s5743_s3 = sld [smem:[#allocation47_spill]]  ;;  %s267_s29 = int_to_ptr.vmem [resolvable:$true] %s266_s29 }
  0x18   : > { %p3866_p0 = pnand %p3865_p1, %p5704_p4  ;;  %s4104_s17 = smov 128  }
  0x19   : > { %s4105_s18 = smov 8   ;;  %s4106_s19 = smov [#allocation8]  }
  0x1a   : > { %s264_s27 = sshll.u32 %s5742_s1, 4  ;;  %s283_s25 = sshll.u32 %s4106_s19, 4  ;;  %s265_s27 = int_to_ptr.hbm [resolvable:$true] %s264_s27  ;;  %s284_s25 = int_to_ptr.vmem [resolvable:$true] %s283_s25 }
  0x1b   : > { %3868 = dma.hbm_to_vmem [thread:$0]  (!%p3866_p0), %s265_s27, 8192, %s267_s29, [#allocation7], %s4104_s17, %s4104_s17, %s4105_s18  }
  0x1c   : > { %s4107_s26 = smov 64   ;;  %s4108_s1 = smov 4  }
  0x1d   : > { %s281_s15 = sshll.u32 %s5743_s3, 4  ;;  %p5703_p2 = scmp.ge.s32.totalorder %s4101_s14, 2  ;;  %s282_s15 = int_to_ptr.hbm [resolvable:$true] %s281_s15 }
  0x1e   : > { %3871 = dma.hbm_to_vmem [thread:$0]  (!%p3866_p0), %s282_s15, 2048, %s284_s25, [#allocation7], %s4107_s26, %s4107_s26, %s4108_s1  }
  0x1f   : > { %308 = sbr.rel (%p5703_p2) target bundleno = 73 (0x49), region = 48 }
  0x24   : > { %311 = sbr.rel (!%p4205_p5) target bundleno = 73 (0x49), region = 52  ;;  %s312_s28 = sand.u32 (%p4205_p5), 1, %s4097_s13  }
  0x25   : > { %s3370_s30 = sshll.u32 (%p4205_p5), %s4101_s14, 5  ;;  %s3369_s10 = sshll.u32 (%p4205_p5), %s312_s28, 10 }
  0x26   : > { %s318_s27 = ssub.s32 (%p4205_p5), 63, %s3370_s30  ;;  %s4250_s15 = scalar_lea.sflag (%p4205_p5), [#allocation4], %s312_s28 }
  0x27   : > { %p319_p3 = scmp.lt.s32.totalorder (%p4205_p5), %s318_s27, 32  ;;  %s316_s17 = scalar_lea.vmem (%p4205_p5), [#allocation3], %s3369_s10 }
  0x29   : > { %s5820_s27 = smov (!%p319_p3, %s318_s27), 32 }
  0x2a   : > { %s3739_s19 = sshll.u32 %s5820_s27, 5 }
  0x2b   : > { %s323_s1 = ssub.s32 1024, %s3739_s19 }
  0x2c   : > { %s324_s29 = sshll.u32 %s323_s1, 4 }
  0x2d   : > { %325 = vsyncadd %s4250_s15, %s324_s29  ;;  %p4253_p5 = scmp.ne.s32.totalorder %s3739_s19, 0  ;;  %s3741_s18 = sshll.u32 %s4101_s14, 10 }
  0x2e   : > { %s329_s30 = scalar_lea.hbm %s5691_s0, %s3741_s18  ;;  %s4261_s3 = sshll.u32 %s316_s17, 4  ;;  %s334_s3 = int_to_ptr.vmem [resolvable:$true] %s4261_s3 }
  0x2f   : > { %s331_s28 = sshll.u32 %s329_s30, 4  ;;  %s5701_s10 = sshll.u32 %s5820_s27, 9  ;;  %s4264_s28 = int_to_ptr.hbm [resolvable:$true] %s331_s28 }
  0x30   : > { %s3992_s1 = sshra.s32 %s4264_s28, 4  ;;  %s3994_s19 = sshrl.u32 %s5701_s10, 4  ;;  %s3993_s1 = int_to_ptr.hbm [resolvable:$true] %s3992_s1 }
  0x31   : > { %s3999_s29 = scalar_lea.hbm %s3993_s1, %s3994_s19  ;;  %s4003_s17 = scalar_lea.hbm %s5691_s0, 2016 }
  0x32   : > { %p4000_p7 = scmp.ne.s32.totalorder %s3993_s1, %s3999_s29  ;;  %p4004_p10 = scmp.lt.s32.totalorder %s3993_s1, %s5691_s0 }
  0x33   : > { %p4005_p1 = scmp.lt.s32.totalorder %s4003_s17, %s3999_s29 }
  0x34   : > { %p4001_p8 = pnand %p4000_p7, %p4253_p5 }
  0x35   : > { %p4006_p0 = por %p4005_p1, %p4004_p10 }
  0x36   : > { %p4002_p9 = pneg %p4001_p8 }
  0x38   : > { %p4007_p3 = pnand %p4006_p0, %p4002_p9 }
  0x3a   : > { %4010 = shalt.err (!%p4007_p3)
}
  0x3b   : > { %s4011_s10 = sshra.s32 %s334_s3, 4  ;;  %s4109_s25 = smov [#allocation3]   ;;  %s4012_s10 = int_to_ptr.vmem [resolvable:$true] %s4011_s10 }
  0x3c   : > { %s4018_s13 = scalar_lea.vmem %s4012_s10, %s3994_s19  ;;  %s4022_s18 = scalar_lea.vmem %s4109_s25, 2048 }
  0x3d   : > { %p4019_p7 = scmp.ne.s32.totalorder %s4012_s10, %s4018_s13  ;;  %p4024_p4 = scmp.lt.s32.totalorder %s4022_s18, %s4018_s13 }
  0x3f   : > { %p4020_p8 = pnand %p4019_p7, %p4253_p5 }
  0x41   : > { %p4021_p2 = pneg %p4020_p8 }
  0x43   : > { %p4026_p12 = pnand %p4024_p4, %p4021_p2 }
  0x45   : > { %4029 = shalt.err (!%p4026_p12)
}
  0x46   : > { %s4110_s1 = smov 512   ;;  %s4111_s29 = smov 32  }
  0x47   : > { %s5745_s17 = sshll.u32 %s5820_s27, 9 }
  0x48   : > { %339 = dma.hbm_to_vmem [thread:$0]  (%p4253_p5), %s4264_s28, %s5745_s17, %s334_s3, %s4250_s15, %s4110_s1, %s4110_s1, %s4111_s29  }
  0x49 PF: > { %345 = sbr.rel (%p4226_p13) target bundleno = 1725 (0x6bd), region = 56 }
  0x4e   : > { %s4293_s13 = sand.u32 1, %s4093_s12  }
  0x4f   : > { %s3379_s10 = sshll.u32 %s4293_s13, 10  ;;  %s348_s19 = scalar_lea.sflag [#allocation4], %s4293_s13 }
  0x50   : > { %s4297_s26 = scalar_lea.vmem [#allocation3], %s3379_s10 }
  0x51   : > { %4076 = dma.done.wait (%p4211_p6), %s348_s19, 16384  }
  0x52   : > { %4078 = vsyncadd (%p4211_p6), %s348_s19, 4294950912  ;;  %p5746_p4 = scmp.eq.s32.totalorder %s4187_s8, 0 }
  0x54   : > { %4080 = dma.done.wait (%p5746_p4), [#allocation7], 10240   ;;  %p5747_p12 = pmov %p5746_p4 }
  0x55   : > { %v3441_v1 = vld [vmem:[#allocation6 + $0x70] sm:$0xf]  ;;  %v3757_v2 = vld [vmem:[#allocation6 + $0x74] sm:$0xf0]  ;;  %v3433_v3 = vld [vmem:[#allocation6 + $0x60] sm:$0xf] }
  0x56   : > { %4082 = vsyncadd (%p5747_p12), [#allocation7], 4294957056  ;;  %v3442_v4 = vor.u32 %v3757_v2, %v3441_v1  ;;  %v3755_v5 = vld [vmem:[#allocation6 + $0x64] sm:$0xf0]  ;;  %v3425_v7 = vld [vmem:[#allocation6 + $0x50] sm:$0xf] }
  0x57   : > { %v3434_v6 = vor.u32 %v3755_v5, %v3433_v3  ;;  %v3753_v8 = vld [vmem:[#allocation6 + $0x54] sm:$0xf0]  ;;  %v3505_v9 = vld [vmem:[#allocation6 + $0xf0] sm:$0xf]  ;;  %v3417_v11 = vld [vmem:[#allocation6 + $0x40] sm:$0xf] }
  0x58   : > { %985 = vmatpush.bf16.msra.mxu0 %v3442_v4  ;;  %3830 = vmatpush.bf16.msra.mxu3 %v3442_v4  ;;  %v3426_v10 = vor.u32 %v3753_v8, %v3425_v7  ;;  %v3751_v12 = vld [vmem:[#allocation6 + $0x44] sm:$0xf0]  ;;  %v3773_v13 = vld [vmem:[#allocation6 + $0xf4] sm:$0xf0]  ;;  %v3497_v15 = vld [vmem:[#allocation6 + $0xe0] sm:$0xf] }
  0x59   : > { %v3506_v14 = vor.u32 %v3773_v13, %v3505_v9  ;;  %v3771_v16 = vld [vmem:[#allocation6 + $0xe4] sm:$0xf0]  ;;  %v3418_v17 = vor.u32 %v3751_v12, %v3417_v11  ;;  %v3409_v18 = vld [vmem:[#allocation6 + $0x30] sm:$0xf]  ;;  %v3749_v19 = vld [vmem:[#allocation6 + $0x34] sm:$0xf0] }
  0x5a   : > { %v3498_v20 = vor.u32 %v3771_v16, %v3497_v15  ;;  %v3410_v21 = vor.u32 %v3749_v19, %v3409_v18  ;;  %v3401_v22 = vld [vmem:[#allocation6 + $0x20] sm:$0xf]  ;;  %v3747_v23 = vld [vmem:[#allocation6 + $0x24] sm:$0xf0]  ;;  %v3489_v24 = vld [vmem:[#allocation6 + $0xd0] sm:$0xf] }
  0x5b   : > { %1074 = vmatpush.bf16.msra.mxu1 %v3506_v14  ;;  %v3769_v25 = vld [vmem:[#allocation6 + $0xd4] sm:$0xf0]  ;;  %v3402_v26 = vor.u32 %v3747_v23, %v3401_v22  ;;  %v3393_v27 = vld [vmem:[#allocation6 + $0x10] sm:$0xf]  ;;  %v3481_v30 = vld [vmem:[#allocation6 + $0xc0] sm:$0xf] }
  0x5c   : > { %986 = vmatpush.bf16.msra.mxu0 %v3434_v6  ;;  %3831 = vmatpush.bf16.msra.mxu3 %v3434_v6  ;;  %v3490_v28 = vor.u32 %v3769_v25, %v3489_v24  ;;  %v3745_v29 = vld [vmem:[#allocation6 + $0x14] sm:$0xf0]  ;;  %v3767_v31 = vld [vmem:[#allocation6 + $0xc4] sm:$0xf0]  ;;  %v3385_v34 = vld [vmem:[#allocation6] sm:$0xf] }
  0x5d   : > { %v3394_v32 = vor.u32 %v3745_v29, %v3393_v27  ;;  %v3482_v33 = vor.u32 %v3767_v31, %v3481_v30  ;;  %v3743_v35 = vld [vmem:[#allocation6 + $0x4] sm:$0xf0]  ;;  %v403_v36 = vld [vmem:[%s4297_s26] sm:$0xff]  ;;  %v3473_v43 = vld [vmem:[#allocation6 + $0xb0] sm:$0xf]  ;;  %vm2376_vm0 = vcmask 523264  }
  0x5e   : > { %v3386_v37 = vor.u32 %v3743_v35, %v3385_v34  ;;  %v407_v38 = vld [vmem:[%s4297_s26 + $0x20] sm:$0xff]  ;;  %v3765_v44 = vld [vmem:[#allocation6 + $0xb4] sm:$0xf0]  ;;  %v3763_v47 = vld [vmem:[#allocation6 + $0xa4] sm:$0xf0]  ;;  %vm3161_vm1 = vcmask 130112  }
  0x5f   : > { %1075 = vmatpush.bf16.msra.mxu1 %v3498_v20  ;;  %v499_v39 = vld [vmem:[%s4297_s26 + $0x300] sm:$0xff]  ;;  %v4311_v41 = vpack.c.bf16 %v407_v38, %v403_v36  ;;  %v3474_v45 = vor.u32 %v3765_v44, %v3473_v43  ;;  %v3457_v55 = vld [vmem:[#allocation6 + $0x90] sm:$0xf]  ;;  %v3761_v56 = vld [vmem:[#allocation6 + $0x94] sm:$0xf0]  ;;  %vm3165_vm2 = vcmask 195712  }
  0x60   : > { %987 = vmatpush.bf16.msra.mxu0 %v3426_v10  ;;  %3832 = vmatpush.bf16.msra.mxu3 %v3426_v10  ;;  %v503_v40 = vld [vmem:[%s4297_s26 + $0x320] sm:$0xff]  ;;  %v3458_v57 = vor.u32 %v3761_v56, %v3457_v55  ;;  %v3759_v59 = vld [vmem:[#allocation6 + $0x84] sm:$0xf0]  ;;  %v3569_v3 = vld [vmem:[#allocation6 + $0x170] sm:$0xf]  ;;  %vm3169_vm3 = vcmask 261312  }
  0x61   : > { %v4313_v42 = vpack.c.bf16 %v503_v40, %v499_v39  ;;  %v3465_v46 = vld [vmem:[#allocation6 + $0xa0] sm:$0xf]  ;;  %v3789_v4 = vld [vmem:[#allocation6 + $0x174] sm:$0xf0]  ;;  %v3787_v7 = vld [vmem:[#allocation6 + $0x164] sm:$0xf0] }
  0x62   : > { %v3466_v48 = vor.u32 %v3763_v47, %v3465_v46  ;;  %v411_v49 = vld [vmem:[%s4297_s26 + $0x40] sm:$0xff]  ;;  %v3570_v6 = vor.u32 %v3789_v4, %v3569_v3  ;;  %v3553_v15 = vld [vmem:[#allocation6 + $0x150] sm:$0xf]  ;;  %v3785_v16 = vld [vmem:[#allocation6 + $0x154] sm:$0xf0]  ;;  %vm3173_vm4 = vcmask 326912  }
  0x63   : > { %1076 = vmatpush.bf16.msra.mxu1 %v3490_v28  ;;  %v415_v50 = vld [vmem:[%s4297_s26 + $0x60] sm:$0xff]  ;;  %v3554_v18 = vor.u32 %v3785_v16, %v3553_v15  ;;  %v3783_v19 = vld [vmem:[#allocation6 + $0x144] sm:$0xf0]  ;;  %v3537_v27 = vld [vmem:[#allocation6 + $0x130] sm:$0xf]  ;;  %vm3177_vm5 = vcmask 392512  }
  0x64   : > { %988 = vmatpush.bf16.msra.mxu0 %v3418_v17  ;;  %3833 = vmatpush.bf16.msra.mxu3 %v3418_v17  ;;  %v507_v51 = vld [vmem:[%s4297_s26 + $0x340] sm:$0xff]  ;;  %v4321_v53 = vpack.c.bf16 %v415_v50, %v411_v49  ;;  %v500_v23 = vld [vmem:[%s4297_s26 + $0x308] sm:$0xff]  ;;  %v3521_v39 = vld [vmem:[#allocation6 + $0x110] sm:$0xf]  ;;  %vm3181_vm6 = vcmask 458112   ;;  %vm3185_vm7 = vcmask 523712  }
  0x65   : > { %v511_v52 = vld [vmem:[%s4297_s26 + $0x360] sm:$0xff]  ;;  %1163 = vmatpush.bf16.msra.mxu2 %v3570_v6  ;;  %v504_v24 = vld [vmem:[%s4297_s26 + $0x328] sm:$0xff]  ;;  %v3777_v40 = vld [vmem:[#allocation6 + $0x114] sm:$0xf0]  ;;  %vm3189_vm8 = vcmask 589312   ;;  %vm3193_vm9 = vcmask 654912  }
  0x66   : > { %v4323_v54 = vpack.c.bf16 %v511_v52, %v507_v51  ;;  %v3449_v58 = vld [vmem:[#allocation6 + $0x80] sm:$0xf]  ;;  %v3779_v31 = vld [vmem:[#allocation6 + $0x124] sm:$0xf0]  ;;  %v3522_v44 = vor.u32 %v3777_v40, %v3521_v39  ;;  %v3633_v55 = vld [vmem:[#allocation6 + $0x1f0] sm:$0xf] }
  0x67   : > { %1077 = vmatpush.bf16.msra.mxu1 %v3482_v33  ;;  %v3450_v60 = vor.u32 %v3759_v59, %v3449_v58  ;;  %v419_v61 = vld [vmem:[%s4297_s26 + $0x80] sm:$0xff]  ;;  %v508_v35 = vld [vmem:[%s4297_s26 + $0x348] sm:$0xff]  ;;  %v3805_v56 = vld [vmem:[#allocation6 + $0x1f4] sm:$0xf0]  ;;  %vm3197_vm10 = vcmask 720512   ;;  %vm3201_vm11 = vcmask 786112  }
  0x68   : > { %989 = vmatpush.bf16.msra.mxu0 %v3410_v21  ;;  %3834 = vmatpush.bf16.msra.mxu3 %v3410_v21  ;;  %5748 = vst [vmem:[#allocation15_spill] sm:$0xff] %v4323_v54  ;;  %v423_v62 = vld [vmem:[%s4297_s26 + $0xa0] sm:$0xff]  ;;  %v512_v36 = vld [vmem:[%s4297_s26 + $0x368] sm:$0xff]  ;;  %v405_v58 = vld [vmem:[%s4297_s26 + $0x10] sm:$0xff]  ;;  %vm3205_vm12 = vcmask 851712   ;;  %vm3209_vm13 = vcmask 917312  }
  0x69   : > { %v515_v63 = vld [vmem:[%s4297_s26 + $0x380] sm:$0xff]  ;;  %v4331_v1 = vpack.c.bf16 %v423_v62, %v419_v61  ;;  %v4363_v38 = vpack.c.bf16 %v512_v36, %v508_v35  ;;  %v516_v49 = vld [vmem:[%s4297_s26 + $0x388] sm:$0xff]  ;;  %v409_v59 = vld [vmem:[%s4297_s26 + $0x30] sm:$0xff]  ;;  %s3382_s17 = sshll.u32 %s4293_s13, 1  ;;  %s3736_s10 = sshll.u32 %s4187_s8, 1  ;;  %vm3213_vm14 = vcmask 982912  }
  0x6a   : > { %v519_v0 = vld [vmem:[%s4297_s26 + $0x3a0] sm:$0xff]  ;;  %v520_v50 = vld [vmem:[%s4297_s26 + $0x3a8] sm:$0xff]  ;;  %v3756_v15 = vld [vmem:[#allocation6 + $0x74] sm:$0xf]  ;;  %s3270_s3 = scalar_lea.hbm %s5700_s9, %s3736_s10  ;;  %vm3217_vm15 = vcmask 1048512   ;;  %s396_s8 = scalar_lea.vmem [#allocation9], %s3382_s17 }
  0x6b   : > { %1078 = vmatpush.bf16.msra.mxu1 %v3474_v45  ;;  %v4333_v2 = vpack.c.bf16 %v519_v0, %v515_v63  ;;  %v3561_v5 = vld [vmem:[#allocation6 + $0x160] sm:$0xf]  ;;  %5752 = vst [vmem:[#allocation19_spill] sm:$0xff] %v4363_v38  ;;  %v4373_v52 = vpack.c.bf16 %v520_v50, %v516_v49  ;;  %v3803_v62 = vld [vmem:[#allocation6 + $0x1e4] sm:$0xf0]  ;;  %v501_v35 = vld [vmem:[%s4297_s26 + $0x310] sm:$0xff] }
  0x6c   : > { %990 = vmatpush.bf16.msra.mxu0 %v3402_v26  ;;  %3835 = vmatpush.bf16.msra.mxu3 %v3402_v26  ;;  %v3562_v8 = vor.u32 %v3787_v7, %v3561_v5  ;;  %v427_v9 = vld [vmem:[%s4297_s26 + $0xc0] sm:$0xff]  ;;  %v4353_v26 = vpack.c.bf16 %v504_v24, %v500_v23  ;;  %v404_v63 = vld [vmem:[%s4297_s26 + $0x8] sm:$0xff]  ;;  %v417_v23 = vld [vmem:[%s4297_s26 + $0x70] sm:$0xff]  ;;  %s3272_s21 = sshll.u32 %s396_s8, 4  ;;  %s3274_s24 = sshll.u32 %s3270_s3, 4  ;;  %s3273_s21 = int_to_ptr.vmem [resolvable:$true] %s3272_s21  ;;  %s3275_s24 = int_to_ptr.hbm [resolvable:$true] %s3274_s24 }
  0x6d   : > { %5749 = vst [vmem:[#allocation16_spill] sm:$0xff] %v4333_v2  ;;  %v431_v10 = vld [vmem:[%s4297_s26 + $0xe0] sm:$0xff]  ;;  %v408_v3 = vld [vmem:[%s4297_s26 + $0x28] sm:$0xff]  ;;  %v505_v36 = vld [vmem:[%s4297_s26 + $0x330] sm:$0xff]  ;;  %s3260_s27 = scalar_lea.sflag [#allocation5], %s4293_s13  ;;  %s4045_s15 = sshra.s32 %s3275_s24, 4  ;;  %s4046_s15 = int_to_ptr.hbm [resolvable:$true] %s4045_s15 }
  0x6e   : > { %1164 = vmatpush.bf16.msra.mxu2 %v3562_v8  ;;  %v523_v11 = vld [vmem:[%s4297_s26 + $0x3c0] sm:$0xff]  ;;  %v4341_v13 = vpack.c.bf16 %v431_v10, %v427_v9  ;;  %5751 = vst [vmem:[#allocation18_spill] sm:$0xff] %v4353_v26  ;;  %v4385_v5 = vpack.c.bf16 %v408_v3, %v404_v63  ;;  %v524_v7 = vld [vmem:[%s4297_s26 + $0x3c8] sm:$0xff]  ;;  %v4413_v40 = vpack.c.bf16 %v505_v36, %v501_v35  ;;  %s4047_s20 = scalar_lea.hbm %s4046_s15, 2  ;;  %s4051_s25 = scalar_lea.hbm %s5700_s9, 4 }
  0x6f   : > { %1079 = vmatpush.bf16.msra.mxu1 %v3466_v48  ;;  %v527_v12 = vld [vmem:[%s4297_s26 + $0x3e0] sm:$0xff]  ;;  %5753 = vst [vmem:[#allocation20_spill] sm:$0xff] %v4373_v52  ;;  %v420_v3 = vld [vmem:[%s4297_s26 + $0x88] sm:$0xff]  ;;  %p4048_p6 = scmp.ne.s32.totalorder %s4046_s15, %s4047_s20  ;;  %p4052_p5 = scmp.lt.s32.totalorder %s4046_s15, %s5700_s9 }
  0x70   : > { %991 = vmatpush.bf16.msra.mxu0 %v3394_v32  ;;  %3836 = vmatpush.bf16.msra.mxu3 %v3394_v32  ;;  %v3545_v17 = vld [vmem:[#allocation6 + $0x140] sm:$0xf]  ;;  %5755 = vst [vmem:[#allocation22_spill] sm:$0xff] %v4413_v40  ;;  %v3746_v36 = vld [vmem:[#allocation6 + $0x24] sm:$0xf]  ;;  %p4053_p9 = scmp.lt.s32.totalorder %s4051_s25, %s4047_s20 }
  0x71   : > { %v435_v21 = vld [vmem:[%s4297_s26 + $0x100] sm:$0xff]  ;;  %p4049_p13 = pnand %p4048_p6, %p4218_p11 }
  0x72   : > { %1165 = vmatpush.bf16.msra.mxu2 %v3554_v18  ;;  %v439_v22 = vld [vmem:[%s4297_s26 + $0x120] sm:$0xff]  ;;  %p4054_p10 = por %p4053_p9, %p4052_p5 }
  0x73   : > { %1080 = vmatpush.bf16.msra.mxu1 %v3458_v57  ;;  %v4351_v25 = vpack.c.bf16 %v439_v22, %v435_v21  ;;  %v3529_v29 = vld [vmem:[#allocation6 + $0x120] sm:$0xf]  ;;  %v413_v22 = vld [vmem:[%s4297_s26 + $0x50] sm:$0xff]  ;;  %p4050_p2 = pneg %p4049_p13 }
  0x74   : > { %992 = vmatpush.bf16.msra.mxu0 %v3386_v37  ;;  %3837 = vmatpush.bf16.msra.mxu3 %v3386_v37  ;;  %v3530_v32 = vor.u32 %v3779_v31, %v3529_v29  ;;  %v447_v34 = vld [vmem:[%s4297_s26 + $0x160] sm:$0xff]  ;;  %v4399_v24 = vpack.c.bf16 %v417_v23, %v413_v22  ;;  %v412_v29 = vld [vmem:[%s4297_s26 + $0x48] sm:$0xff] }
  0x75   : > { %v3513_v43 = vld [vmem:[#allocation6 + $0x100] sm:$0xf]  ;;  %v416_v31 = vld [vmem:[%s4297_s26 + $0x68] sm:$0xff]  ;;  %p4055_p1 = pnand %p4054_p10, %p4050_p2 }
  0x76   : > { %v451_v47 = vld [vmem:[%s4297_s26 + $0x180] sm:$0xff] }
  0x77   : > { %993 = vmatmul.bf16.vlgmr.msra.gmra.mxu0 %v4311_v41  ;;  %1053 = vmatmul.bf16.vlgmr.msra.gmra.mxu3 %v4313_v42  ;;  %v3625_v61 = vld [vmem:[#allocation6 + $0x1e0] sm:$0xf] }
  0x78   : > { %3838 = vmatpush.bf16.msrb.mxu3 %v3506_v14  ;;  %1081 = vmatpush.bf16.msra.mxu1 %v3450_v60  ;;  %v4343_v14 = vpack.c.bf16 %v527_v12, %v523_v11  ;;  %v3626_v0 = vor.u32 %v3803_v62, %v3625_v61  ;;  %v459_v4 = vld [vmem:[%s4297_s26 + $0x1c0] sm:$0xff]  ;;  %v3617_v11 = vld [vmem:[#allocation6 + $0x1d0] sm:$0xf]  ;;  %v3801_v12 = vld [vmem:[#allocation6 + $0x1d4] sm:$0xf0] }
  0x79   : > { %v3618_v16 = vor.u32 %v3801_v12, %v3617_v11  ;;  %v3795_v61 = vld [vmem:[#allocation6 + $0x1a4] sm:$0xf0]  ;;  %v3752_v62 = vld [vmem:[#allocation6 + $0x54] sm:$0xf]  ;;  %v3770_v11 = vld [vmem:[#allocation6 + $0xe4] sm:$0xf] }
  0x7a   : > { %5750 = vst [vmem:[#allocation17_spill] sm:$0xff] %v4343_v14  ;;  %v3499_v12 = vld [vmem:[#allocation6 + $0xe8] sm:$0xf0] }
  0x7b   : > { %1082 = vmatmul.bf16.vlgmr.msra.gmra.mxu1 %v4385_v5 }
  0x7c   : > { %3839 = vmatpush.bf16.msrb.mxu3 %v3498_v20  ;;  %v3546_v20 = vor.u32 %v3783_v19, %v3545_v17  ;;  %v3443_v17 = vld [vmem:[#allocation6 + $0x78] sm:$0xf0] }
  0x7d   : > { %v3507_v19 = vld [vmem:[#allocation6 + $0xf8] sm:$0xf0] }
  0x7e   : > { %1166 = vmatpush.bf16.msra.mxu2 %v3546_v20 }
  0x80   : > { %3840 = vmatpush.bf16.msrb.mxu3 %v3490_v28  ;;  %v3781_v28 = vld [vmem:[#allocation6 + $0x134] sm:$0xf0] }
  0x81   : > { %v3538_v30 = vor.u32 %v3781_v28, %v3537_v27  ;;  %v3609_v27 = vld [vmem:[#allocation6 + $0x1c0] sm:$0xf]  ;;  %v3799_v28 = vld [vmem:[#allocation6 + $0x1c4] sm:$0xf0] }
  0x83   : > { %1167 = vmatpush.bf16.msra.mxu2 %v3538_v30 }
  0x84   : > { %3841 = vmatpush.bf16.msrb.mxu3 %v3482_v33  ;;  %v443_v33 = vld [vmem:[%s4297_s26 + $0x140] sm:$0xff] }
  0x85   : > { %v4361_v37 = vpack.c.bf16 %v447_v34, %v443_v33  ;;  %v4405_v33 = vpack.c.bf16 %v416_v31, %v412_v29  ;;  %v471_v34 = vld [vmem:[%s4297_s26 + $0x220] sm:$0xff]  ;;  %v3748_v29 = vld [vmem:[#allocation6 + $0x34] sm:$0xf] }
  0x87   : > { %998 = vmatmul.bf16.gmra.mxu0 %v4321_v53  ;;  %1058 = vmatmul.bf16.gmra.mxu3 %v4323_v54  ;;  %v442_v54 = vld [vmem:[%s4297_s26 + $0x138] sm:$0xff] }
  0x88   : > { %3842 = vmatpush.bf16.msrb.mxu3 %v3474_v45  ;;  %1168 = vmatpush.bf16.msra.mxu2 %v3530_v32  ;;  %v3775_v45 = vld [vmem:[#allocation6 + $0x104] sm:$0xf0] }
  0x89   : > { %v3514_v46 = vor.u32 %v3775_v45, %v3513_v43  ;;  %v3797_v45 = vld [vmem:[#allocation6 + $0x1b4] sm:$0xf0] }
  0x8b   : > { %1087 = vmatmul.bf16.gmra.mxu1 %v4405_v33 }
  0x8c   : > { %3843 = vmatpush.bf16.msrb.mxu3 %v3466_v48  ;;  %1169 = vmatpush.bf16.msra.mxu2 %v3522_v44  ;;  %v455_v48 = vld [vmem:[%s4297_s26 + $0x1a0] sm:$0xff] }
  0x8d   : > { %v4371_v51 = vpack.c.bf16 %v455_v48, %v451_v47  ;;  %v3754_v47 = vld [vmem:[#allocation6 + $0x64] sm:$0xf]  ;;  %v3435_v48 = vld [vmem:[#allocation6 + $0x68] sm:$0xf0] }
  0x8e   : > { %v3438_v50 = vor.u32 %v3754_v47, %v3435_v48  ;;  %v429_v47 = vld [vmem:[%s4297_s26 + $0xd0] sm:$0xff] }
  0x8f   : > { %v433_v48 = vld [vmem:[%s4297_s26 + $0xf0] sm:$0xff] }
  0x90   : > { %3844 = vmatpush.bf16.msrb.mxu3 %v3458_v57  ;;  %1170 = vmatpush.bf16.msra.mxu2 %v3514_v46  ;;  %v3634_v57 = vor.u32 %v3805_v56, %v3633_v55  ;;  %v421_v55 = vld [vmem:[%s4297_s26 + $0x90] sm:$0xff] }
  0x91   : > { %v425_v56 = vld [vmem:[%s4297_s26 + $0xb0] sm:$0xff] }
  0x94   : > { %3845 = vmatpush.bf16.msrb.mxu3 %v3450_v60  ;;  %v4379_v60 = vpack.c.bf16 %v409_v59, %v405_v58  ;;  %v3593_v59 = vld [vmem:[#allocation6 + $0x1a0] sm:$0xf] }
  0x95   : > { %v3594_v63 = vor.u32 %v3795_v61, %v3593_v59  ;;  %v3791_v59 = vld [vmem:[#allocation6 + $0x184] sm:$0xf0]  ;;  %v3744_v61 = vld [vmem:[#allocation6 + $0x14] sm:$0xf] }
  0x96   : > { %1171 = vmatmul.bf16.vlgmr.msra.gmra.mxu2 %v4379_v60 }
  0x97   : > { %1003 = vmatmul.bf16.gmra.mxu0 %v4331_v1  ;;  %1063 = vmatmul.bf16.gmra.mxu3 %v4333_v2 }
  0x98   : > { %3846 = vmatpush.bf16.msra.mxu3 %v3570_v6  ;;  %v463_v6 = vld [vmem:[%s4297_s26 + $0x1e0] sm:$0xff] }
  0x99   : > { %v4391_v9 = vpack.c.bf16 %v463_v6, %v459_v4  ;;  %v424_v4 = vld [vmem:[%s4297_s26 + $0xa8] sm:$0xff]  ;;  %v475_v6 = vld [vmem:[%s4297_s26 + $0x240] sm:$0xff] }
  0x9c   : > { %3847 = vmatpush.bf16.msra.mxu3 %v3562_v8  ;;  %v528_v8 = vld [vmem:[%s4297_s26 + $0x3e8] sm:$0xff] }
  0x9d   : > { %v4393_v10 = vpack.c.bf16 %v528_v8, %v524_v7  ;;  %v4431_v8 = vpack.c.bf16 %v424_v4, %v420_v3  ;;  %v432_v3 = vld [vmem:[%s4297_s26 + $0xe8] sm:$0xff]  ;;  %v483_v4 = vld [vmem:[%s4297_s26 + $0x280] sm:$0xff] }
  0x9f   : > { %5754 = vst [vmem:[#allocation21_spill] sm:$0xff] %v4393_v10  ;;  %1092 = vmatmul.bf16.gmra.mxu1 %v4431_v8 }
  0xa0   : > { %3848 = vmatpush.bf16.msra.mxu3 %v3554_v18  ;;  %v3772_v18 = vld [vmem:[#allocation6 + $0xf4] sm:$0xf] }
  0xa1   : > { %v3510_v21 = vor.u32 %v3772_v18, %v3507_v19  ;;  %v3502_v18 = vor.u32 %v3770_v11, %v3499_v12  ;;  %v3750_v19 = vld [vmem:[#allocation6 + $0x44] sm:$0xf]  ;;  %v517_v12 = vld [vmem:[%s4297_s26 + $0x390] sm:$0xff] }
  0xa2   : > { %v487_v11 = vld [vmem:[%s4297_s26 + $0x2a0] sm:$0xff] }
  0xa3   : > { %1430 = vmatpush.bf16.msrb.mxu1 %v3510_v21 }
  0xa4   : > { %3849 = vmatpush.bf16.msra.mxu3 %v3546_v20  ;;  %v3446_v20 = vor.u32 %v3756_v15, %v3443_v17  ;;  %v479_v15 = vld [vmem:[%s4297_s26 + $0x260] sm:$0xff]  ;;  %v513_v17 = vld [vmem:[%s4297_s26 + $0x370] sm:$0xff] }
  0xa5   : > { %v4439_v23 = vpack.c.bf16 %v479_v15, %v475_v6  ;;  %v521_v15 = vld [vmem:[%s4297_s26 + $0x3b0] sm:$0xff] }
  0xa6   : > { %1341 = vmatpush.bf16.msrb.mxu0 %v3446_v20  ;;  %1176 = vmatmul.bf16.gmra.mxu2 %v4399_v24  ;;  %v3419_v20 = vld [vmem:[#allocation6 + $0x48] sm:$0xf0] }
  0xa7   : > { %1008 = vmatmul.bf16.gmra.mxu0 %v4341_v13  ;;  %1068 = vmatmul.bf16.gmra.mxu3 %v4343_v14  ;;  %v3422_v22 = vor.u32 %v3750_v19, %v3419_v20  ;;  %v4467_v20 = vpack.c.bf16 %v487_v11, %v483_v4  ;;  %v529_v4 = vld [vmem:[%s4297_s26 + $0x3f0] sm:$0xff]  ;;  %v3467_v14 = vld [vmem:[#allocation6 + $0xa8] sm:$0xf0] }
  0xa8   : > { %3850 = vmatpush.bf16.msra.mxu3 %v3538_v30  ;;  %v3610_v30 = vor.u32 %v3799_v28, %v3609_v27  ;;  %1431 = vmatpush.bf16.msrb.mxu1 %v3502_v18 }
  0xaa   : > { %1342 = vmatpush.bf16.msrb.mxu0 %v3438_v50  ;;  %v4451_v50 = vpack.c.bf16 %v433_v48, %v429_v47  ;;  %v441_v47 = vld [vmem:[%s4297_s26 + $0x130] sm:$0xff] }
  0xac   : > { %3851 = vmatpush.bf16.msra.mxu3 %v3530_v32  ;;  %v467_v32 = vld [vmem:[%s4297_s26 + $0x200] sm:$0xff] }
  0xad   : > { %v4411_v39 = vpack.c.bf16 %v471_v34, %v467_v32  ;;  %v3585_v32 = vld [vmem:[#allocation6 + $0x190] sm:$0xf]  ;;  %v3793_v34 = vld [vmem:[#allocation6 + $0x194] sm:$0xf0] }
  0xae   : > { %v3586_v35 = vor.u32 %v3793_v34, %v3585_v32  ;;  %v3768_v32 = vld [vmem:[#allocation6 + $0xd4] sm:$0xf] }
  0xb0   : > { %3852 = vmatpush.bf16.msra.mxu3 %v3522_v44  ;;  %v3601_v44 = vld [vmem:[#allocation6 + $0x1b0] sm:$0xf] }
  0xb4   : > { %3853 = vmatpush.bf16.msra.mxu3 %v3514_v46  ;;  %v3602_v46 = vor.u32 %v3797_v45, %v3601_v44  ;;  %v3403_v44 = vld [vmem:[#allocation6 + $0x28] sm:$0xf0] }
  0xb7   : > { %1013 = vmatmul.bf16.gmra.mxu0 %v4351_v25  ;;  %1142 = vmatmul.bf16.vlgmr.msrb.gmra.mxu3 %v4353_v26  ;;  %v464_v26 = vld [vmem:[%s4297_s26 + $0x1e8] sm:$0xff] }
  0xb8   : > { %1252 = vmatpush.bf16.msrb.mxu3 %v3634_v57  ;;  %v4423_v57 = vpack.c.bf16 %v425_v56, %v421_v55  ;;  %v3577_v56 = vld [vmem:[#allocation6 + $0x180] sm:$0xf] }
  0xba   : > { %1181 = vmatmul.bf16.gmra.mxu2 %v4423_v57 }
  0xbc   : > { %1253 = vmatpush.bf16.msrb.mxu3 %v3626_v0  ;;  %v3427_v0 = vld [vmem:[#allocation6 + $0x58] sm:$0xf0] }
  0xbd   : > { %v3430_v7 = vor.u32 %v3752_v62, %v3427_v0  ;;  %v3578_v62 = vor.u32 %v3791_v59, %v3577_v56  ;;  %v428_v0 = vld [vmem:[%s4297_s26 + $0xc8] sm:$0xff] }
  0xbe   : > { %v436_v59 = vld [vmem:[%s4297_s26 + $0x108] sm:$0xff] }
  0xbf   : > { %1343 = vmatpush.bf16.msrb.mxu0 %v3430_v7  ;;  %v4459_v7 = vpack.c.bf16 %v432_v3, %v428_v0  ;;  %v495_v0 = vld [vmem:[%s4297_s26 + $0x2e0] sm:$0xff]  ;;  %v525_v3 = vld [vmem:[%s4297_s26 + $0x3d0] sm:$0xff] }
  0xc0   : > { %1254 = vmatpush.bf16.msrb.mxu3 %v3618_v16  ;;  %v509_v16 = vld [vmem:[%s4297_s26 + $0x350] sm:$0xff] }
  0xc1   : > { %v4441_v27 = vpack.c.bf16 %v513_v17, %v509_v16  ;;  %1097 = vmatmul.bf16.gmra.mxu1 %v4459_v7  ;;  %v3742_v16 = vld [vmem:[#allocation6 + $0x4] sm:$0xf]  ;;  %v3387_v17 = vld [vmem:[#allocation6 + $0x8] sm:$0xf0] }
  0xc2   : > { %v3390_v19 = vor.u32 %v3742_v16, %v3387_v17  ;;  %v445_v17 = vld [vmem:[%s4297_s26 + $0x150] sm:$0xff] }
  0xc3   : > { %5756 = vst [vmem:[#allocation23_spill] sm:$0xff] %v4441_v27  ;;  %1344 = vmatpush.bf16.msrb.mxu0 %v3422_v22  ;;  %v4469_v22 = vpack.c.bf16 %v521_v15, %v517_v12  ;;  %v4497_v12 = vpack.c.bf16 %v529_v4, %v525_v3 }
  0xc4   : > { %1255 = vmatpush.bf16.msrb.mxu3 %v3610_v30  ;;  %v3411_v30 = vld [vmem:[#allocation6 + $0x38] sm:$0xf0] }
  0xc5   : > { %v3414_v31 = vor.u32 %v3748_v29, %v3411_v30  ;;  %5757 = vst [vmem:[#allocation24_spill] sm:$0xff] %v4469_v22  ;;  %v3804_v30 = vld [vmem:[#allocation6 + $0x1f4] sm:$0xf] }
  0xc6   : > { %5758 = vst [vmem:[#allocation25_spill] sm:$0xff] %v4497_v12 }
  0xc7   : > { %1018 = vmatmul.bf16.gmra.mxu0 %v4361_v37  ;;  %1147 = vmatmul.bf16.gmra.mxu3 %v4363_v38 }
  0xc8   : > { %1256 = vmatpush.bf16.msrb.mxu3 %v3602_v46  ;;  %1345 = vmatpush.bf16.msrb.mxu0 %v3414_v31  ;;  %v3406_v46 = vor.u32 %v3746_v36, %v3403_v44  ;;  %v3635_v31 = vld [vmem:[#allocation6 + $0x1f8] sm:$0xf0] }
  0xc9   : > { %v3638_v34 = vor.u32 %v3804_v30, %v3635_v31 }
  0xca   : > { %1186 = vmatmul.bf16.gmra.mxu2 %v4451_v50 }
  0xcc   : > { %1257 = vmatpush.bf16.msrb.mxu3 %v3594_v63  ;;  %1346 = vmatpush.bf16.msrb.mxu0 %v3406_v46  ;;  %v3395_v63 = vld [vmem:[#allocation6 + $0x18] sm:$0xf0]  ;;  %v437_v46 = vld [vmem:[%s4297_s26 + $0x110] sm:$0xff] }
  0xcd   : > { %v3398_v6 = vor.u32 %v3744_v61, %v3395_v63  ;;  %v4479_v48 = vpack.c.bf16 %v441_v47, %v437_v46  ;;  %v440_v61 = vld [vmem:[%s4297_s26 + $0x128] sm:$0xff]  ;;  %v491_v63 = vld [vmem:[%s4297_s26 + $0x2c0] sm:$0xff] }
  0xce   : > { %v4495_v11 = vpack.c.bf16 %v495_v0, %v491_v63  ;;  %v3483_v46 = vld [vmem:[#allocation6 + $0xc8] sm:$0xf0]  ;;  %v4522_v63 = vld [vmem:[%s5693_s2] sm:$0x3] }
  0xcf   : > { %5759 = vst [vmem:[#allocation26_spill] sm:$0xff] %v4522_v63 }
  0xd0   : > { %1258 = vmatpush.bf16.msrb.mxu3 %v3586_v35  ;;  %1347 = vmatpush.bf16.msrb.mxu0 %v3398_v6  ;;  %v3491_v35 = vld [vmem:[#allocation6 + $0xd8] sm:$0xf0] }
  0xd1   : > { %v3494_v36 = vor.u32 %v3768_v32, %v3491_v35  ;;  %v444_v32 = vld [vmem:[%s4297_s26 + $0x148] sm:$0xff]  ;;  %v3766_v35 = vld [vmem:[#allocation6 + $0xc4] sm:$0xf] }
  0xd2   : > { %v3486_v47 = vor.u32 %v3766_v35, %v3483_v46 }
  0xd3   : > { %1432 = vmatpush.bf16.msrb.mxu1 %v3494_v36 }
  0xd4   : > { %1259 = vmatpush.bf16.msrb.mxu3 %v3578_v62  ;;  %1348 = vmatpush.bf16.msrb.mxu0 %v3390_v19  ;;  %v4486_v62 = vpack.c.bf16 %v440_v61, %v436_v59  ;;  %v449_v19 = vld [vmem:[%s4297_s26 + $0x170] sm:$0xff]  ;;  %v406_v59 = vld [vmem:[%s4297_s26 + $0x18] sm:$0xff] }
  0xd5   : > { %v4507_v30 = vpack.c.bf16 %v449_v19, %v445_v17  ;;  %v410_v61 = vld [vmem:[%s4297_s26 + $0x38] sm:$0xff]  ;;  %v4531_v17 = vperm.slane %v4522_v63, 0  ;;  %v3802_v19 = vld [vmem:[#allocation6 + $0x1e4] sm:$0xf] }
  0xd6   : > { %1102 = vmatmul.bf16.gmra.mxu1 %v4486_v62  ;;  %v4526_v3 = vpack.c.bf16 %v410_v61, %v406_v59  ;;  %v457_v59 = vld [vmem:[%s4297_s26 + $0x1b0] sm:$0xff] }
  0xd7   : > { %1023 = vmatmul.bf16.gmra.mxu0 %v4371_v51  ;;  %1152 = vmatmul.bf16.gmra.mxu3 %v4373_v52  ;;  %v456_v52 = vld [vmem:[%s4297_s26 + $0x1a8] sm:$0xff] }
  0xd8   : > { %1433 = vmatpush.bf16.msrb.mxu1 %v3486_v47  ;;  %5760 = vst [vmem:[#allocation27_spill] sm:$0xff] %v4526_v3  ;;  %v453_v47 = vld [vmem:[%s4297_s26 + $0x190] sm:$0xff] }
  0xda   : > { %1191 = vmatmul.bf16.gmra.mxu2 %v4479_v48 }
  0xe7   : > { %1028 = vmatmul.bf16.gmra.mxu0 %v4391_v9  ;;  %1157 = vmatmul.bf16.gmra.mxu3 %v4393_v10  ;;  %v4541_v10 = vpack.c.bf16 %v457_v59, %v453_v47  ;;  %v3475_v59 = vld [vmem:[#allocation6 + $0xb8] sm:$0xf0] }
  0xe9   : > { %5761 = vst [vmem:[#allocation28_spill] sm:$0xff] %v4541_v10 }
  0xea   : > { %1196 = vmatmul.bf16.gmra.mxu2 %v4507_v30 }
  0xf4   : > { %v4415_v43 = vpop.f32.mrf.mxu0 }
  0xf7   : > { %1033 = vmatmul.bf16.gmra.mxu0 %v4411_v39  ;;  %1231 = vmatmul.bf16.vlgmr.msra.gmra.mxu3 %v4413_v40 }
  0xf8   : > { %1608 = vmatpush.bf16.msra.mxu3 %v3638_v34  ;;  %v448_v34 = vld [vmem:[%s4297_s26 + $0x168] sm:$0xff] }
  0xf9   : > { %v4514_v36 = vpack.c.bf16 %v448_v34, %v444_v32  ;;  %v3627_v32 = vld [vmem:[#allocation6 + $0x1e8] sm:$0xf0] }
  0xfa   : > { %v4419_v49 = vpop.f32.mrf.mxu3  ;;  %v3630_v34 = vor.u32 %v3802_v19, %v3627_v32  ;;  %1201 = vmatmul.bf16.gmra.mxu2 %v4541_v10  ;;  %v414_v19 = vld [vmem:[%s4297_s26 + $0x58] sm:$0xff] }
  0xfb   : > { %1107 = vmatmul.bf16.gmra.mxu1 %v4514_v36  ;;  %v1055_v35 = vadd.f32 %v4419_v49, %v4531_v17  ;;  %v418_v32 = vld [vmem:[%s4297_s26 + $0x78] sm:$0xff] }
  0xfc   : > { %v4425_v58 = vpop.f32.mrf.mxu0  ;;  %1609 = vmatpush.bf16.msra.mxu3 %v3630_v34 }
 0x102   : > { %v4437_v21 = vpop.f32.mrf.mxu3 }
 0x103   : > { %v1057_v49 = vadd.f32 %v4437_v21, %v4531_v17 }
 0x104   : > { %v4443_v28 = vpop.f32.mrf.mxu0 }
 0x107   : > { %1038 = vmatmul.bf16.gmra.mxu0 %v4439_v23  ;;  %1236 = vmatmul.bf16.gmra.mxu3 %v4441_v27 }
 0x10a   : > { %v4447_v45 = vpop.f32.mrf.mxu3 }
 0x10c   : > { %v4453_v55 = vpop.f32.mrf.mxu0 }
 0x112   : > { %v4465_v18 = vpop.f32.mrf.mxu3 }
 0x114   : > { %v4471_v29 = vpop.f32.mrf.mxu0 }
 0x117   : > { %1043 = vmatmul.bf16.gmra.mxu0 %v4467_v20  ;;  %1241 = vmatmul.bf16.gmra.mxu3 %v4469_v22 }
 0x11a   : > { %v4475_v44 = vpop.f32.mrf.mxu3 }
 0x11c   : > { %v4481_v56 = vpop.f32.mrf.mxu0 }
 0x122   : > { %v4493_v6 = vpop.f32.mrf.mxu3 }
 0x124   : > { %v4499_v15 = vpop.f32.mrf.mxu0 }
 0x127   : > { %1048 = vmatmul.bf16.gmra.mxu0 %v4495_v11  ;;  %1246 = vmatmul.bf16.gmra.mxu3 %v4497_v12 }
 0x12a   : > { %v4503_v16 = vpop.f32.mrf.mxu3 }
 0x12c   : > { %v4509_v31 = vpop.f32.mrf.mxu0 }
 0x132   : > { %v4524_v0 = vpop.f32.mrf.mxu3 }
 0x134   : > { %v4528_v4 = vpop.f32.mrf.mxu0 }
 0x137   : > { %1260 = vmatmul.bf16.vlgmr.msrb.gmra.mxu3 %v4526_v3  ;;  %1349 = vmatmul.bf16.vlgmr.msrb.gmra.mxu0 %v4311_v41  ;;  %v452_v41 = vld [vmem:[%s4297_s26 + $0x188] sm:$0xff] }
 0x138   : > { %v4548_v22 = vpack.c.bf16 %v456_v52, %v452_v41  ;;  %v3764_v52 = vld [vmem:[#allocation6 + $0xb4] sm:$0xf]  ;;  %v1060_v41 = vadd.f32 %v4447_v45, %v4531_v17  ;;  %v1062_v45 = vadd.f32 %v4465_v18, %v4531_v17 }
 0x139   : > { %v3478_v21 = vor.u32 %v3764_v52, %v3475_v59  ;;  %v422_v52 = vld [vmem:[%s4297_s26 + $0x98] sm:$0xff]  ;;  %v3800_v18 = vld [vmem:[#allocation6 + $0x1d4] sm:$0xf] }
 0x13a   : > { %v1143_v46 = vpop.f32.mrf.mxu3  ;;  %5762 = vst [vmem:[#allocation29_spill] sm:$0xff] %v4548_v22  ;;  %1112 = vmatmul.bf16.gmra.mxu1 %v4548_v22  ;;  %v426_v59 = vld [vmem:[%s4297_s26 + $0xb8] sm:$0xff] }
 0x13b   : > { %v4539_v61 = vadd.f32 %v1143_v46, %v1055_v35  ;;  %v4557_v46 = vpack.c.bf16 %v418_v32, %v414_v19  ;;  %1434 = vmatpush.bf16.msrb.mxu1 %v3478_v21  ;;  %v461_v19 = vld [vmem:[%s4297_s26 + $0x1d0] sm:$0xff] }
 0x13c   : > { %v4543_v12 = vpop.f32.mrf.mxu0  ;;  %v465_v32 = vld [vmem:[%s4297_s26 + $0x1f0] sm:$0xff] }
 0x13d   : > { %5763 = vst [vmem:[#allocation30_spill] sm:$0xff] %v4557_v46  ;;  %v4569_v38 = vpack.c.bf16 %v465_v32, %v461_v19  ;;  %v3788_v32 = vld [vmem:[#allocation6 + $0x174] sm:$0xf] }
 0x13f   : > { %5764 = vst [vmem:[#allocation31_spill] sm:$0xff] %v4569_v38  ;;  %1206 = vmatmul.bf16.gmra.mxu2 %v4569_v38  ;;  %v434_v38 = vld [vmem:[%s4297_s26 + $0xf8] sm:$0xff] }
 0x142   : > { %v1145_v34 = vpop.f32.mrf.mxu3 }
 0x143   : > { %v4555_v35 = vadd.f32 %v1145_v34, %v1057_v49 }
 0x144   : > { %v4559_v47 = vpop.f32.mrf.mxu0 }
 0x147   : > { %1265 = vmatmul.bf16.gmra.mxu3 %v4557_v46  ;;  %1354 = vmatmul.bf16.gmra.mxu0 %v4321_v53  ;;  %v460_v53 = vld [vmem:[%s4297_s26 + $0x1c8] sm:$0xff]  ;;  %v3571_v46 = vld [vmem:[#allocation6 + $0x178] sm:$0xf0] }
 0x148   : > { %v4576_v40 = vpack.c.bf16 %v464_v26, %v460_v53  ;;  %v3574_v26 = vor.u32 %v3788_v32, %v3571_v46  ;;  %v3619_v53 = vld [vmem:[#allocation6 + $0x1d8] sm:$0xf0]  ;;  %v995_v46 = vadd.f32 %v4415_v43, %v4531_v17  ;;  %v1172_v43 = vpop.f32.mrf.mxu2 }
 0x149   : > { %v3622_v3 = vor.u32 %v3800_v18, %v3619_v53  ;;  %v472_v18 = vld [vmem:[%s4297_s26 + $0x228] sm:$0xff]  ;;  %v1083_v53 = vpop.f32.mrf.mxu1 }
 0x14a   : > { %v1148_v49 = vpop.f32.mrf.mxu3  ;;  %5765 = vst [vmem:[#allocation32_spill] sm:$0xff] %v4576_v40  ;;  %1117 = vmatmul.bf16.gmra.mxu1 %v4576_v40  ;;  %1519 = vmatpush.bf16.msrb.mxu2 %v3574_v26  ;;  %v468_v26 = vld [vmem:[%s4297_s26 + $0x208] sm:$0xff]  ;;  %v1084_v2 = vadd.f32 %v1083_v53, %v995_v46  ;;  %v430_v40 = vld [vmem:[%s4297_s26 + $0xd8] sm:$0xff]  ;;  %v1000_v53 = vadd.f32 %v4443_v28, %v4531_v17 }
 0x14b   : > { %v4567_v34 = vadd.f32 %v1148_v49, %v1060_v41  ;;  %v4585_v49 = vpack.c.bf16 %v426_v59, %v422_v52  ;;  %1610 = vmatpush.bf16.msra.mxu3 %v3622_v3  ;;  %v469_v59 = vld [vmem:[%s4297_s26 + $0x210] sm:$0xff]  ;;  %v4606_v3 = vpack.c.bf16 %v472_v18, %v468_v26 }
 0x14c   : > { %v4571_v27 = vpop.f32.mrf.mxu0 }
 0x14d   : > { %5766 = vst [vmem:[#allocation33_spill] sm:$0xff] %v4585_v49 }
 0x14e   : > { %5768 = vst [vmem:[#allocation35_spill] sm:$0xff] %v4606_v3 }
 0x151   : > { %v1085_v18 = vpop.f32.mrf.mxu1 }
 0x152   : > { %v1150_v21 = vpop.f32.mrf.mxu3 }
 0x153   : > { %v4583_v41 = vadd.f32 %v1150_v21, %v1062_v45  ;;  %v1065_v45 = vadd.f32 %v4475_v44, %v4531_v17  ;;  %v473_v21 = vld [vmem:[%s4297_s26 + $0x230] sm:$0xff]  ;;  %v3762_v44 = vld [vmem:[#allocation6 + $0xa4] sm:$0xf] }
 0x154   : > { %v4587_v19 = vpop.f32.mrf.mxu0  ;;  %v3470_v63 = vor.u32 %v3762_v44, %v3467_v14  ;;  %v4619_v14 = vpack.c.bf16 %v434_v38, %v430_v40  ;;  %v477_v38 = vld [vmem:[%s4297_s26 + $0x250] sm:$0xff] }
 0x155   : > { %v481_v40 = vld [vmem:[%s4297_s26 + $0x270] sm:$0xff] }
 0x156   : > { %1435 = vmatpush.bf16.msrb.mxu1 %v3470_v63  ;;  %5769 = vst [vmem:[#allocation36_spill] sm:$0xff] %v4619_v14  ;;  %v1070_v63 = vadd.f32 %v4503_v16, %v4531_v17  ;;  %v3563_v16 = vld [vmem:[#allocation6 + $0x168] sm:$0xf0] }
 0x157   : > { %1270 = vmatmul.bf16.gmra.mxu3 %v4585_v49  ;;  %1359 = vmatmul.bf16.gmra.mxu0 %v4331_v1  ;;  %v4599_v1 = vpack.c.bf16 %v473_v21, %v469_v59  ;;  %v997_v21 = vadd.f32 %v4425_v58, %v4531_v17 }
 0x159   : > { %5767 = vst [vmem:[#allocation34_spill] sm:$0xff] %v4599_v1  ;;  %1211 = vmatmul.bf16.gmra.mxu2 %v4599_v1  ;;  %v438_v1 = vld [vmem:[%s4297_s26 + $0x118] sm:$0xff] }
 0x15a   : > { %v1153_v52 = vpop.f32.mrf.mxu3  ;;  %1122 = vmatmul.bf16.gmra.mxu1 %v4606_v3 }
 0x15b   : > { %v4597_v32 = vadd.f32 %v1153_v52, %v1065_v45  ;;  %v1067_v45 = vadd.f32 %v4493_v6, %v4531_v17  ;;  %v4612_v52 = vadd.f32 %v1172_v43, %v1084_v2  ;;  %v1086_v2 = vadd.f32 %v1085_v18, %v997_v21  ;;  %v1174_v6 = vpop.f32.mrf.mxu2  ;;  %v476_v21 = vld [vmem:[%s4297_s26 + $0x248] sm:$0xff] }
 0x15c   : > { %v4601_v49 = vpop.f32.mrf.mxu0 }
 0x15d   : > { %v4627_v44 = vadd.f32 %v1174_v6, %v1086_v2  ;;  %v1088_v2 = vpop.f32.mrf.mxu1  ;;  %v480_v6 = vld [vmem:[%s4297_s26 + $0x268] sm:$0xff] }
 0x15e   : > { %v4642_v3 = vpack.c.bf16 %v480_v6, %v476_v21 }
 0x160   : > { %5771 = vst [vmem:[#allocation38_spill] sm:$0xff] %v4642_v3 }
 0x162   : > { %v1155_v59 = vpop.f32.mrf.mxu3 }
 0x163   : > { %v4617_v26 = vadd.f32 %v1155_v59, %v1067_v45  ;;  %v4635_v45 = vpack.c.bf16 %v481_v40, %v477_v38  ;;  %v3786_v59 = vld [vmem:[#allocation6 + $0x164] sm:$0xf]  ;;  %v1177_v28 = vpop.f32.mrf.mxu2  ;;  %v1002_v40 = vadd.f32 %v4453_v55, %v4531_v17 }
 0x164   : > { %v4621_v46 = vpop.f32.mrf.mxu0  ;;  %v3566_v18 = vor.u32 %v3786_v59, %v3563_v16 }
 0x165   : > { %5770 = vst [vmem:[#allocation37_spill] sm:$0xff] %v4635_v45  ;;  %v1090_v21 = vpop.f32.mrf.mxu1 }
 0x166   : > { %1520 = vmatpush.bf16.msrb.mxu2 %v3566_v18  ;;  %v3611_v18 = vld [vmem:[#allocation6 + $0x1c8] sm:$0xf0] }
 0x167   : > { %1275 = vmatmul.bf16.gmra.mxu3 %v4619_v14  ;;  %1364 = vmatmul.bf16.gmra.mxu0 %v4341_v13  ;;  %v1089_v14 = vadd.f32 %v1088_v2, %v1000_v53  ;;  %v4655_v53 = vpack.c.bf16 %v442_v54, %v438_v1  ;;  %v3760_v2 = vld [vmem:[#allocation6 + $0x94] sm:$0xf] }
 0x169   : > { %1216 = vmatmul.bf16.gmra.mxu2 %v4635_v45  ;;  %5772 = vst [vmem:[#allocation39_spill] sm:$0xff] %v4655_v53 }
 0x16a   : > { %v1158_v58 = vpop.f32.mrf.mxu3  ;;  %1127 = vmatmul.bf16.gmra.mxu1 %v4642_v3  ;;  %v450_v3 = vld [vmem:[%s4297_s26 + $0x178] sm:$0xff] }
 0x16b   : > { %v4633_v43 = vadd.f32 %v1158_v58, %v1070_v63  ;;  %v1072_v63 = vadd.f32 %v4524_v0, %v4531_v17  ;;  %v4648_v58 = vadd.f32 %v1177_v28, %v1089_v14  ;;  %v1091_v0 = vadd.f32 %v1090_v21, %v1002_v40  ;;  %v3798_v14 = vld [vmem:[#allocation6 + $0x1c4] sm:$0xf]  ;;  %v1179_v55 = vpop.f32.mrf.mxu2  ;;  %v3459_v28 = vld [vmem:[#allocation6 + $0x98] sm:$0xf0] }
 0x16c   : > { %v4637_v13 = vpop.f32.mrf.mxu0  ;;  %v3614_v6 = vor.u32 %v3798_v14, %v3611_v18  ;;  %v3462_v1 = vor.u32 %v3760_v2, %v3459_v28  ;;  %v488_v18 = vld [vmem:[%s4297_s26 + $0x2a8] sm:$0xff]  ;;  %v446_v28 = vld [vmem:[%s4297_s26 + $0x158] sm:$0xff] }
 0x16d   : > { %v4661_v54 = vadd.f32 %v1179_v55, %v1091_v0  ;;  %v484_v0 = vld [vmem:[%s4297_s26 + $0x288] sm:$0xff]  ;;  %v1093_v2 = vpop.f32.mrf.mxu1 }
 0x16e   : > { %1611 = vmatpush.bf16.msra.mxu3 %v3614_v6  ;;  %1436 = vmatpush.bf16.msrb.mxu1 %v3462_v1  ;;  %v4677_v55 = vpack.c.bf16 %v488_v18, %v484_v0  ;;  %v3555_v0 = vld [vmem:[#allocation6 + $0x158] sm:$0xf0] }
 0x170   : > { %5775 = vst [vmem:[#allocation42_spill] sm:$0xff] %v4677_v55 }
 0x172   : > { %v1160_v38 = vpop.f32.mrf.mxu3 }
 0x173   : > { %v4653_v59 = vadd.f32 %v1160_v38, %v1072_v63  ;;  %v485_v38 = vld [vmem:[%s4297_s26 + $0x290] sm:$0xff]  ;;  %v1182_v45 = vpop.f32.mrf.mxu2 }
 0x174   : > { %v4657_v16 = vpop.f32.mrf.mxu0 }
 0x177   : > { %1280 = vmatmul.bf16.gmra.mxu3 %v4655_v53  ;;  %1369 = vmatmul.bf16.gmra.mxu0 %v4351_v25  ;;  %v489_v53 = vld [vmem:[%s4297_s26 + $0x2b0] sm:$0xff]  ;;  %v1005_v25 = vadd.f32 %v4471_v29, %v4531_v17 }
 0x178   : > { %v4670_v21 = vpack.c.bf16 %v489_v53, %v485_v38  ;;  %v1007_v53 = vadd.f32 %v4481_v56, %v4531_v17  ;;  %v3784_v38 = vld [vmem:[#allocation6 + $0x154] sm:$0xf]  ;;  %v3782_v56 = vld [vmem:[#allocation6 + $0x144] sm:$0xf] }
 0x179   : > { %v1094_v6 = vadd.f32 %v1093_v2, %v1005_v25  ;;  %v3558_v18 = vor.u32 %v3784_v38, %v3555_v0  ;;  %v1010_v38 = vadd.f32 %v4499_v15, %v4531_v17 }
 0x17a   : > { %v1232_v63 = vpop.f32.mrf.mxu3  ;;  %5774 = vst [vmem:[#allocation41_spill] sm:$0xff] %v4670_v21  ;;  %1221 = vmatmul.bf16.gmra.mxu2 %v4670_v21  ;;  %1132 = vmatmul.bf16.gmra.mxu1 %v4677_v55  ;;  %v458_v55 = vld [vmem:[%s4297_s26 + $0x1b8] sm:$0xff] }
 0x17b   : > { %v4668_v40 = vadd.f32 %v1232_v63, %v4539_v61  ;;  %v4681_v29 = vadd.f32 %v1182_v45, %v1094_v6  ;;  %v4689_v63 = vpack.c.bf16 %v450_v3, %v446_v28  ;;  %1521 = vmatpush.bf16.msrb.mxu2 %v3558_v18  ;;  %v1095_v45 = vpop.f32.mrf.mxu1  ;;  %v3547_v6 = vld [vmem:[#allocation6 + $0x148] sm:$0xf0]  ;;  %v3539_v18 = vld [vmem:[#allocation6 + $0x138] sm:$0xf0] }
 0x17c   : > { %v4672_v14 = vpop.f32.mrf.mxu0  ;;  %v1096_v2 = vadd.f32 %v1095_v45, %v1007_v53  ;;  %v3550_v3 = vor.u32 %v3782_v56, %v3547_v6  ;;  %v3780_v53 = vld [vmem:[#allocation6 + $0x134] sm:$0xf]  ;;  %v492_v56 = vld [vmem:[%s4297_s26 + $0x2c8] sm:$0xff] }
 0x17d   : > { %5773 = vst [vmem:[#allocation40_spill] sm:$0xff] %v4668_v40  ;;  %v497_v40 = vld [vmem:[%s4297_s26 + $0x2f0] sm:$0xff]  ;;  %v496_v6 = vld [vmem:[%s4297_s26 + $0x2e8] sm:$0xff] }
 0x17e   : > { %5777 = vst [vmem:[#allocation44_spill] sm:$0xff] %v4689_v63  ;;  %v4711_v15 = vpack.c.bf16 %v496_v6, %v492_v56  ;;  %v3776_v56 = vld [vmem:[#allocation6 + $0x114] sm:$0xf]  ;;  %v3523_v6 = vld [vmem:[#allocation6 + $0x118] sm:$0xf0] }
 0x17f   : > { %1522 = vmatpush.bf16.msrb.mxu2 %v3550_v3 }
 0x182   : > { %v1234_v61 = vpop.f32.mrf.mxu3 }
 0x183   : > { %v4687_v1 = vadd.f32 %v1234_v61, %v4555_v35  ;;  %v1184_v35 = vpop.f32.mrf.mxu2  ;;  %v1098_v3 = vpop.f32.mrf.mxu1 }
 0x184   : > { %v4691_v25 = vpop.f32.mrf.mxu0  ;;  %v4695_v28 = vadd.f32 %v1184_v35, %v1096_v2  ;;  %v3542_v2 = vor.u32 %v3780_v53, %v3539_v18  ;;  %v3758_v35 = vld [vmem:[#allocation6 + $0x84] sm:$0xf]  ;;  %v1012_v18 = vadd.f32 %v4509_v31, %v4531_v17 }
 0x185   : > { %5776 = vst [vmem:[#allocation43_spill] sm:$0xff] %v4687_v1  ;;  %v493_v1 = vld [vmem:[%s4297_s26 + $0x2d0] sm:$0xff]  ;;  %v3774_v31 = vld [vmem:[#allocation6 + $0x104] sm:$0xf] }
 0x186   : > { %1523 = vmatpush.bf16.msrb.mxu2 %v3542_v2 }
 0x187   : > { %1285 = vmatmul.bf16.gmra.mxu3 %v4689_v63  ;;  %1374 = vmatmul.bf16.gmra.mxu0 %v4361_v37  ;;  %v4704_v37 = vpack.c.bf16 %v497_v40, %v493_v1  ;;  %v3778_v1 = vld [vmem:[#allocation6 + $0x124] sm:$0xf]  ;;  %v454_v63 = vld [vmem:[%s4297_s26 + $0x198] sm:$0xff] }
 0x18a   : > { %v1237_v61 = vpop.f32.mrf.mxu3  ;;  %1226 = vmatmul.bf16.gmra.mxu2 %v4704_v37  ;;  %1137 = vmatmul.bf16.gmra.mxu1 %v4711_v15 }
 0x18b   : > { %v4702_v0 = vadd.f32 %v1237_v61, %v4567_v34  ;;  %v3451_v34 = vld [vmem:[#allocation6 + $0x88] sm:$0xf0]  ;;  %v1099_v61 = vadd.f32 %v1098_v3, %v1010_v38  ;;  %v1187_v21 = vpop.f32.mrf.mxu2  ;;  %v4723_v38 = vpack.c.bf16 %v458_v55, %v454_v63  ;;  %v3796_v3 = vld [vmem:[#allocation6 + $0x1b4] sm:$0xf] }
 0x18c   : > { %v4706_v45 = vpop.f32.mrf.mxu0  ;;  %v3454_v40 = vor.u32 %v3758_v35, %v3451_v34  ;;  %v3603_v34 = vld [vmem:[#allocation6 + $0x1b8] sm:$0xf0]  ;;  %v3515_v63 = vld [vmem:[#allocation6 + $0x108] sm:$0xf0] }
 0x18d   : > { %5778 = vst [vmem:[#allocation45_spill] sm:$0xff] %v4702_v0  ;;  %v3531_v0 = vld [vmem:[#allocation6 + $0x128] sm:$0xf0]  ;;  %v4715_v10 = vadd.f32 %v1187_v21, %v1099_v61  ;;  %v1100_v21 = vpop.f32.mrf.mxu1 }
 0x18e   : > { %v3534_v22 = vor.u32 %v3778_v1, %v3531_v0  ;;  %1437 = vmatpush.bf16.msrb.mxu1 %v3454_v40  ;;  %v3526_v0 = vor.u32 %v3776_v56, %v3523_v6  ;;  %v3518_v40 = vor.u32 %v3774_v31, %v3515_v63  ;;  %v3821_v63 = vld [vmem:[#allocation8 + $0x78] sm:$0xff] }
 0x190   : > { %1524 = vmatpush.bf16.msrb.mxu2 %v3534_v22  ;;  %v1101_v22 = vadd.f32 %v1100_v21, %v1012_v18  ;;  %v466_v21 = vld [vmem:[%s4297_s26 + $0x1f8] sm:$0xff] }
 0x192   : > { %v1239_v53 = vpop.f32.mrf.mxu3  ;;  %2014 = vmatpush.bf16.msra.mxu1 %v3821_v63  ;;  %v3595_v63 = vld [vmem:[#allocation6 + $0x1a8] sm:$0xf0] }
 0x193   : > { %v4721_v2 = vadd.f32 %v1239_v53, %v4583_v41  ;;  %v3606_v41 = vor.u32 %v3796_v3, %v3603_v34  ;;  %v1189_v55 = vpop.f32.mrf.mxu2  ;;  %v1015_v53 = vadd.f32 %v4528_v4, %v4531_v17  ;;  %v1017_v4 = vadd.f32 %v4543_v12, %v4531_v17 }
 0x194   : > { %v4725_v35 = vpop.f32.mrf.mxu0  ;;  %1525 = vmatpush.bf16.msrb.mxu2 %v3526_v0  ;;  %v4729_v61 = vadd.f32 %v1189_v55, %v1101_v22  ;;  %v462_v0 = vld [vmem:[%s4297_s26 + $0x1d8] sm:$0xff] }
 0x195   : > { %1612 = vmatpush.bf16.msra.mxu3 %v3606_v41  ;;  %v1103_v18 = vpop.f32.mrf.mxu1  ;;  %v4749_v31 = vpack.c.bf16 %v466_v21, %v462_v0  ;;  %v470_v0 = vld [vmem:[%s4297_s26 + $0x218] sm:$0xff] }
 0x196   : > { %v1104_v6 = vadd.f32 %v1103_v18, %v1015_v53  ;;  %v474_v21 = vld [vmem:[%s4297_s26 + $0x238] sm:$0xff] }
 0x197   : > { %1290 = vmatmul.bf16.gmra.mxu3 %v4723_v38  ;;  %1379 = vmatmul.bf16.gmra.mxu0 %v4371_v51 }
 0x198   : > { %1526 = vmatpush.bf16.msrb.mxu2 %v3518_v40 }
 0x19a   : > { %v1242_v1 = vpop.f32.mrf.mxu3  ;;  %1438 = vmatmul.bf16.vlgmr.msrb.gmra.mxu1 %v4385_v5  ;;  %v3813_v5 = vld [vmem:[#allocation8 + $0x38] sm:$0xff] }
 0x19b   : > { %v4734_v56 = vadd.f32 %v1242_v1, %v4597_v32  ;;  %1527 = vmatmul.bf16.vlgmr.msrb.gmra.mxu2 %v4379_v60  ;;  %v1192_v22 = vpop.f32.mrf.mxu2  ;;  %1925 = vmatpush.bf16.msra.mxu0 %v3813_v5  ;;  %v1020_v1 = vadd.f32 %v4559_v47, %v4531_v17  ;;  %v1022_v47 = vadd.f32 %v4571_v27, %v4531_v17 }
 0x19c   : > { %v4736_v51 = vpop.f32.mrf.mxu0  ;;  %v4741_v3 = vadd.f32 %v1192_v22, %v1104_v6 }
 0x19d   : > { %v1105_v60 = vpop.f32.mrf.mxu1 }
 0x19e   : > { %v1106_v55 = vadd.f32 %v1105_v60, %v1017_v4  ;;  %v4775_v60 = vpack.c.bf16 %v474_v21, %v470_v0  ;;  %v478_v21 = vld [vmem:[%s4297_s26 + $0x258] sm:$0xff] }
 0x1a2   : > { %v1244_v34 = vpop.f32.mrf.mxu3 }
 0x1a3   : > { %v4747_v32 = vadd.f32 %v1244_v34, %v4617_v26  ;;  %v1194_v40 = vpop.f32.mrf.mxu2 }
 0x1a4   : > { %v4751_v41 = vpop.f32.mrf.mxu0  ;;  %v4755_v12 = vadd.f32 %v1194_v40, %v1106_v55 }
 0x1a7   : > { %1295 = vmatmul.bf16.gmra.mxu3 %v4749_v31  ;;  %1384 = vmatmul.bf16.gmra.mxu0 %v4391_v9  ;;  %v1108_v9 = vpop.f32.mrf.mxu1 }
 0x1a8   : > { %v1109_v6 = vadd.f32 %v1108_v9, %v1020_v1  ;;  %v1025_v1 = vadd.f32 %v4587_v19, %v4531_v17 }
 0x1aa   : > { %v1247_v26 = vpop.f32.mrf.mxu3  ;;  %1443 = vmatmul.bf16.gmra.mxu1 %v4405_v33  ;;  %v3794_v33 = vld [vmem:[#allocation6 + $0x1a4] sm:$0xf] }
 0x1ab   : > { %v4760_v53 = vadd.f32 %v1247_v26, %v4633_v43  ;;  %1532 = vmatmul.bf16.gmra.mxu2 %v4399_v24  ;;  %v1197_v22 = vpop.f32.mrf.mxu2  ;;  %v3598_v40 = vor.u32 %v3794_v33, %v3595_v63 }
 0x1ac   : > { %v4762_v18 = vpop.f32.mrf.mxu0  ;;  %v4767_v34 = vadd.f32 %v1197_v22, %v1109_v6  ;;  %v482_v22 = vld [vmem:[%s4297_s26 + $0x278] sm:$0xff] }
 0x1ad   : > { %1613 = vmatpush.bf16.msra.mxu3 %v3598_v40 }
 0x1af   : > { %v1110_v24 = vpop.f32.mrf.mxu1 }
 0x1b0   : > { %v1111_v5 = vadd.f32 %v1110_v24, %v1022_v47 }
 0x1b2   : > { %v1249_v4 = vpop.f32.mrf.mxu3 }
 0x1b3   : > { %v4773_v43 = vadd.f32 %v1249_v4, %v4653_v59  ;;  %v1199_v26 = vpop.f32.mrf.mxu2 }
 0x1b4   : > { %v4777_v55 = vpop.f32.mrf.mxu0  ;;  %v4781_v27 = vadd.f32 %v1199_v26, %v1111_v5  ;;  %v1027_v5 = vadd.f32 %v4601_v49, %v4531_v17  ;;  %v3820_v49 = vld [vmem:[#allocation8 + $0x70] sm:$0xff] }
 0x1b5   : > { %2015 = vmatpush.bf16.msra.mxu1 %v3820_v49 }
 0x1b7   : > { %1300 = vmatmul.bf16.gmra.mxu3 %v4775_v60  ;;  %1389 = vmatmul.bf16.gmra.mxu0 %v4411_v39  ;;  %v1113_v39 = vpop.f32.mrf.mxu1 }
 0x1b8   : > { %v1114_v0 = vadd.f32 %v1113_v39, %v1025_v1 }
 0x1ba   : > { %v1261_v59 = vpop.f32.mrf.mxu3  ;;  %1448 = vmatmul.bf16.gmra.mxu1 %v4431_v8 }
 0x1bb   : > { %v1262_v9 = vadd.f32 %v1261_v59, %v4612_v52  ;;  %1537 = vmatmul.bf16.gmra.mxu2 %v4423_v57  ;;  %v1202_v4 = vpop.f32.mrf.mxu2  ;;  %v4797_v52 = vpack.c.bf16 %v482_v22, %v478_v21  ;;  %v3812_v59 = vld [vmem:[#allocation8 + $0x30] sm:$0xff] }
 0x1bc   : > { %v4786_v6 = vpop.f32.mrf.mxu0  ;;  %v4791_v47 = vadd.f32 %v1202_v4, %v1114_v0  ;;  %1926 = vmatpush.bf16.msra.mxu0 %v3812_v59  ;;  %v486_v4 = vld [vmem:[%s4297_s26 + $0x298] sm:$0xff] }
 0x1bd   : > { %v1697_v57 = vmax.f32 %v1262_v9, 0.0  ;;  %v1030_v9 = vadd.f32 %v4621_v46, %v4531_v17 }
 0x1bf   : > { %v1115_v40 = vpop.f32.mrf.mxu1 }
 0x1c0   : > { %v1116_v8 = vadd.f32 %v1115_v40, %v1027_v5 }
 0x1c2   : > { %v1263_v24 = vpop.f32.mrf.mxu3 }
 0x1c3   : > { %v1264_v19 = vadd.f32 %v1263_v24, %v4627_v44  ;;  %v1204_v1 = vpop.f32.mrf.mxu2  ;;  %v490_v24 = vld [vmem:[%s4297_s26 + $0x2b8] sm:$0xff] }
 0x1c4   : > { %v4799_v33 = vpop.f32.mrf.mxu0  ;;  %v4805_v44 = vadd.f32 %v1204_v1, %v1116_v8  ;;  %v3587_v1 = vld [vmem:[#allocation6 + $0x198] sm:$0xf0] }
 0x1c5   : > { %v1699_v63 = vmax.f32 %v1264_v19, 0.0 }
 0x1c7   : > { %v4801_v26 = vpack.c.bf16 %v1699_v63, %v1697_v57  ;;  %1305 = vmatmul.bf16.gmra.mxu3 %v4797_v52  ;;  %1394 = vmatmul.bf16.gmra.mxu0 %v4439_v23  ;;  %v1118_v23 = vpop.f32.mrf.mxu1  ;;  %v1032_v63 = vadd.f32 %v4637_v13, %v4531_v17 }
 0x1c8   : > { %v1119_v22 = vadd.f32 %v1118_v23, %v1030_v9 }
 0x1ca   : > { %v1266_v39 = vpop.f32.mrf.mxu3  ;;  %1453 = vmatmul.bf16.gmra.mxu1 %v4459_v7  ;;  %v3792_v7 = vld [vmem:[#allocation6 + $0x194] sm:$0xf] }
 0x1cb   : > { %v1267_v0 = vadd.f32 %v1266_v39, %v4648_v58  ;;  %1542 = vmatmul.bf16.gmra.mxu2 %v4451_v50  ;;  %v1207_v5 = vpop.f32.mrf.mxu2  ;;  %v4821_v58 = vpack.c.bf16 %v490_v24, %v486_v4  ;;  %v3590_v13 = vor.u32 %v3792_v7, %v3587_v1 }
 0x1cc   : > { %v4810_v21 = vpop.f32.mrf.mxu0  ;;  %v4815_v19 = vadd.f32 %v1207_v5, %v1119_v22  ;;  %v494_v5 = vld [vmem:[%s4297_s26 + $0x2d8] sm:$0xff] }
 0x1cd   : > { %v1701_v50 = vmax.f32 %v1267_v0, 0.0  ;;  %1614 = vmatpush.bf16.msra.mxu3 %v3590_v13  ;;  %v1035_v0 = vadd.f32 %v4657_v16, %v4531_v17  ;;  %v3819_v13 = vld [vmem:[#allocation8 + $0x68] sm:$0xff] }
 0x1ce   : > { %2016 = vmatpush.bf16.msra.mxu1 %v3819_v13 }
 0x1cf   : > { %v1120_v59 = vpop.f32.mrf.mxu1 }
 0x1d0   : > { %v1121_v49 = vadd.f32 %v1120_v59, %v1032_v63 }
 0x1d2   : > { %v1268_v57 = vpop.f32.mrf.mxu3 }
 0x1d3   : > { %v1269_v46 = vadd.f32 %v1268_v57, %v4661_v54  ;;  %v1209_v54 = vpop.f32.mrf.mxu2  ;;  %v498_v57 = vld [vmem:[%s4297_s26 + $0x2f8] sm:$0xff] }
 0x1d4   : > { %v4823_v40 = vpop.f32.mrf.mxu0  ;;  %v4829_v9 = vadd.f32 %v1209_v54, %v1121_v49 }
 0x1d5   : > { %v1703_v8 = vmax.f32 %v1269_v46, 0.0 }
 0x1d7   : > { %1310 = vmatmul.bf16.gmra.mxu3 %v4821_v58  ;;  %1399 = vmatmul.bf16.gmra.mxu0 %v4467_v20  ;;  %v4827_v39 = vpack.c.bf16 %v1703_v8, %v1701_v50  ;;  %v1123_v20 = vpop.f32.mrf.mxu1  ;;  %v1037_v8 = vadd.f32 %v4672_v14, %v4531_v17 }
 0x1d8   : > { %v1124_v24 = vadd.f32 %v1123_v20, %v1035_v0  ;;  %v1040_v0 = vadd.f32 %v4691_v25, %v4531_v17 }
 0x1da   : > { %v1271_v23 = vpop.f32.mrf.mxu3  ;;  %1458 = vmatmul.bf16.gmra.mxu1 %v4486_v62  ;;  %v3811_v62 = vld [vmem:[#allocation8 + $0x28] sm:$0xff] }
 0x1db   : > { %v1272_v22 = vadd.f32 %v1271_v23, %v4681_v29  ;;  %1547 = vmatmul.bf16.gmra.mxu2 %v4479_v48  ;;  %v4845_v29 = vpack.c.bf16 %v498_v57, %v494_v5  ;;  %1927 = vmatpush.bf16.msra.mxu0 %v3811_v62  ;;  %v502_v5 = vld [vmem:[%s4297_s26 + $0x318] sm:$0xff]  ;;  %v3579_v62 = vld [vmem:[#allocation6 + $0x188] sm:$0xf0] }
 0x1dc   : > { %v4834_v4 = vpop.f32.mrf.mxu0  ;;  %v1212_v63 = vpop.f32.mrf.mxu2  ;;  %v506_v57 = vld [vmem:[%s4297_s26 + $0x338] sm:$0xff] }
 0x1dd   : > { %v4839_v46 = vadd.f32 %v1212_v63, %v1124_v24  ;;  %v1705_v48 = vmax.f32 %v1272_v22, 0.0 }
 0x1df   : > { %v1125_v7 = vpop.f32.mrf.mxu1 }
 0x1e0   : > { %v1126_v1 = vadd.f32 %v1125_v7, %v1037_v8 }
 0x1e2   : > { %v1273_v50 = vpop.f32.mrf.mxu3 }
 0x1e3   : > { %v1274_v16 = vadd.f32 %v1273_v50, %v4695_v28 }
 0x1e4   : > { %v4847_v59 = vpop.f32.mrf.mxu0  ;;  %v1214_v14 = vpop.f32.mrf.mxu2 }
 0x1e5   : > { %v1707_v49 = vmax.f32 %v1274_v16, 0.0  ;;  %v4853_v28 = vadd.f32 %v1214_v14, %v1126_v1  ;;  %v1042_v16 = vadd.f32 %v4706_v45, %v4531_v17 }
 0x1e7   : > { %1315 = vmatmul.bf16.gmra.mxu3 %v4845_v29  ;;  %1404 = vmatmul.bf16.gmra.mxu0 %v4495_v11  ;;  %v4851_v54 = vpack.c.bf16 %v1707_v49, %v1705_v48  ;;  %v1128_v11 = vpop.f32.mrf.mxu1 }
 0x1e8   : > { %v1129_v24 = vadd.f32 %v1128_v11, %v1040_v0  ;;  %v1045_v0 = vadd.f32 %v4725_v35, %v4531_v17  ;;  %v1047_v35 = vadd.f32 %v4736_v51, %v4531_v17 }
 0x1ea   : > { %v1276_v23 = vpop.f32.mrf.mxu3  ;;  %1463 = vmatmul.bf16.gmra.mxu1 %v4514_v36  ;;  %v3790_v36 = vld [vmem:[#allocation6 + $0x184] sm:$0xf] }
 0x1eb   : > { %v1277_v22 = vadd.f32 %v1276_v23, %v4715_v10  ;;  %1552 = vmatmul.bf16.gmra.mxu2 %v4507_v30  ;;  %v4869_v10 = vpack.c.bf16 %v506_v57, %v502_v5  ;;  %v3582_v45 = vor.u32 %v3790_v36, %v3579_v62  ;;  %v510_v57 = vld [vmem:[%s4297_s26 + $0x358] sm:$0xff] }
 0x1ec   : > { %v4858_v20 = vpop.f32.mrf.mxu0  ;;  %v1217_v63 = vpop.f32.mrf.mxu2 }
 0x1ed   : > { %v4863_v50 = vadd.f32 %v1217_v63, %v1129_v24  ;;  %v1709_v30 = vmax.f32 %v1277_v22, 0.0  ;;  %1615 = vmatpush.bf16.msra.mxu3 %v3582_v45  ;;  %v514_v63 = vld [vmem:[%s4297_s26 + $0x378] sm:$0xff] }
 0x1ef   : > { %v1130_v7 = vpop.f32.mrf.mxu1 }
 0x1f0   : > { %v1131_v1 = vadd.f32 %v1130_v7, %v1042_v16  ;;  %v4893_v7 = vpack.c.bf16 %v514_v63, %v510_v57  ;;  %v1050_v57 = vadd.f32 %v4751_v41, %v4531_v17  ;;  %v3806_v41 = vld [vmem:[#allocation8] sm:$0xff] }
 0x1f2   : > { %v1278_v8 = vpop.f32.mrf.mxu3 }
 0x1f3   : > { %v1279_v25 = vadd.f32 %v1278_v8, %v4729_v61 }
 0x1f4   : > { %v4871_v48 = vpop.f32.mrf.mxu0  ;;  %v1219_v61 = vpop.f32.mrf.mxu2 }
 0x1f5   : > { %v1711_v49 = vmax.f32 %v1279_v25, 0.0  ;;  %v4877_v14 = vadd.f32 %v1219_v61, %v1131_v1  ;;  %v5780_v25 = vld [vmem:[#allocation29_spill] sm:$0xff] }
 0x1f6   : > { %v3809_v61 = vld [vmem:[#allocation8 + $0x18] sm:$0xff] }
 0x1f7   : > { %1320 = vmatmul.bf16.gmra.mxu3 %v4869_v10  ;;  %1409 = vmatmul.bf16.gmra.mxu0 %v4313_v42  ;;  %v4875_v13 = vpack.c.bf16 %v1711_v49, %v1709_v30  ;;  %v5779_v42 = vld [vmem:[#allocation28_spill] sm:$0xff]  ;;  %v1133_v24 = vpop.f32.mrf.mxu1  ;;  %v3810_v49 = vld [vmem:[#allocation8 + $0x20] sm:$0xff] }
 0x1f8   : > { %v1134_v5 = vadd.f32 %v1133_v24, %v1045_v0  ;;  %1928 = vmatpush.bf16.msra.mxu0 %v3810_v49 }
 0x1fa   : > { %v1281_v23 = vpop.f32.mrf.mxu3  ;;  %1468 = vmatmul.bf16.gmra.mxu1 %v5780_v25  ;;  %v5782_v25 = vld [vmem:[#allocation31_spill] sm:$0xff] }
 0x1fb   : > { %v1282_v22 = vadd.f32 %v1281_v23, %v4741_v3  ;;  %1557 = vmatmul.bf16.gmra.mxu2 %v5779_v42  ;;  %v5781_v23 = vld [vmem:[#allocation15_spill] sm:$0xff] }
 0x1fc   : > { %v4882_v11 = vpop.f32.mrf.mxu0  ;;  %v3818_v42 = vld [vmem:[#allocation8 + $0x60] sm:$0xff]  ;;  %1929 = vmatpush.bf16.msra.mxu0 %v3809_v61  ;;  %v5783_v61 = vld [vmem:[#allocation32_spill] sm:$0xff] }
 0x1fd   : > { %v1222_v8 = vpop.f32.mrf.mxu2  ;;  %v1713_v1 = vmax.f32 %v1282_v22, 0.0  ;;  %2017 = vmatpush.bf16.msra.mxu1 %v3818_v42 }
 0x1fe   : > { %v4887_v16 = vadd.f32 %v1222_v8, %v1134_v5  ;;  %v3808_v5 = vld [vmem:[#allocation8 + $0x10] sm:$0xff]  ;;  %v3807_v8 = vld [vmem:[#allocation8 + $0x8] sm:$0xff] }
 0x1ff   : > { %v1135_v45 = vpop.f32.mrf.mxu1 }
 0x200   : > { %v1136_v0 = vadd.f32 %v1135_v45, %v1047_v35  ;;  %1930 = vmatpush.bf16.msra.mxu0 %v3808_v5 }
 0x202   : > { %v1283_v30 = vpop.f32.mrf.mxu3 }
 0x203   : > { %v1284_v3 = vadd.f32 %v1283_v30, %v4755_v12 }
 0x204   : > { %v4895_v62 = vpop.f32.mrf.mxu0  ;;  %1931 = vmatpush.bf16.msra.mxu0 %v3807_v8 }
 0x205   : > { %v1715_v36 = vmax.f32 %v1284_v3, 0.0  ;;  %v1224_v51 = vpop.f32.mrf.mxu2  ;;  %v518_v3 = vld [vmem:[%s4297_s26 + $0x398] sm:$0xff] }
 0x206   : > { %v4901_v12 = vadd.f32 %v1224_v51, %v1136_v0 }
 0x207   : > { %1325 = vmatmul.bf16.gmra.mxu3 %v4893_v7  ;;  %1414 = vmatmul.bf16.gmra.mxu0 %v5781_v23  ;;  %v4899_v24 = vpack.c.bf16 %v1715_v36, %v1713_v1  ;;  %v1138_v30 = vpop.f32.mrf.mxu1  ;;  %v522_v1 = vld [vmem:[%s4297_s26 + $0x3b8] sm:$0xff] }
 0x208   : > { %v1139_v35 = vadd.f32 %v1138_v30, %v1050_v57  ;;  %v4917_v42 = vpack.c.bf16 %v522_v1, %v518_v3  ;;  %1932 = vmatpush.bf16.msra.mxu0 %v3806_v41  ;;  %v5784_v57 = vld [vmem:[#allocation26_spill] sm:$0xff] }
 0x209   : > { %v4920_v8 = vperm.slane %v5784_v57, 1  ;;  %v526_v41 = vld [vmem:[%s4297_s26 + $0x3d8] sm:$0xff] }
 0x20a   : > { %v1286_v22 = vpop.f32.mrf.mxu3  ;;  %1473 = vmatmul.bf16.gmra.mxu1 %v5783_v61 }
 0x20b   : > { %v1287_v63 = vadd.f32 %v1286_v22, %v4767_v34  ;;  %1562 = vmatmul.bf16.gmra.mxu2 %v5782_v25  ;;  %v1052_v34 = vadd.f32 %v4762_v18, %v4531_v17  ;;  %v5785_v25 = vld [vmem:[#allocation16_spill] sm:$0xff]  ;;  %v1351_v3 = vadd.f32 %v4777_v55, %v4920_v8  ;;  %v1353_v57 = vadd.f32 %v4786_v6, %v4920_v8 }
 0x20c   : > { %v4907_v49 = vpop.f32.mrf.mxu0 }
 0x20d   : > { %v1227_v36 = vpop.f32.mrf.mxu2  ;;  %v1717_v51 = vmax.f32 %v1287_v63, 0.0 }
 0x20e   : > { %v4911_v45 = vadd.f32 %v1227_v36, %v1139_v35  ;;  %v5786_v36 = vld [vmem:[#allocation34_spill] sm:$0xff] }
 0x20f   : > { %v1140_v5 = vpop.f32.mrf.mxu1 }
 0x210   : > { %v1141_v30 = vadd.f32 %v1140_v5, %v1052_v34 }
 0x212   : > { %v1288_v23 = vpop.f32.mrf.mxu3 }
 0x213   : > { %v1289_v0 = vadd.f32 %v1288_v23, %v4781_v27 }
 0x214   : > { %v4926_v18 = vpop.f32.mrf.mxu0 }
 0x215   : > { %v1719_v22 = vmax.f32 %v1289_v0, 0.0  ;;  %v1229_v17 = vpop.f32.mrf.mxu2  ;;  %v530_v0 = vld [vmem:[%s4297_s26 + $0x3f8] sm:$0xff] }
 0x216   : > { %v4928_v27 = vadd.f32 %v1229_v17, %v1141_v30 }
 0x217   : > { %1330 = vmatmul.bf16.gmra.mxu3 %v4917_v42  ;;  %1419 = vmatmul.bf16.gmra.mxu0 %v5785_v25  ;;  %v4924_v35 = vpack.c.bf16 %v1719_v22, %v1717_v51  ;;  %v1439_v61 = vpop.f32.mrf.mxu1  ;;  %v5787_v51 = vld [vmem:[#allocation35_spill] sm:$0xff] }
 0x218   : > { %v1440_v23 = vadd.f32 %v1439_v61, %v1351_v3  ;;  %v5788_v3 = vld [vmem:[#allocation17_spill] sm:$0xff] }
 0x219   : > { %v3817_v61 = vld [vmem:[#allocation8 + $0x58] sm:$0xff] }
 0x21a   : > { %v1291_v63 = vpop.f32.mrf.mxu3  ;;  %1478 = vmatmul.bf16.gmra.mxu1 %v5787_v51 }
 0x21b   : > { %v1292_v1 = vadd.f32 %v1291_v63, %v4791_v47  ;;  %1567 = vmatmul.bf16.gmra.mxu2 %v5786_v36  ;;  %v4944_v47 = vpack.c.bf16 %v530_v0, %v526_v41  ;;  %2018 = vmatpush.bf16.msra.mxu1 %v3817_v61  ;;  %v5789_v0 = vld [vmem:[#allocation37_spill] sm:$0xff] }
 0x21c   : > { %v4941_v25 = vpop.f32.mrf.mxu0 }
 0x21d   : > { %v1721_v30 = vmax.f32 %v1292_v1, 0.0 }
 0x21e   : > { %v1528_v34 = vpop.f32.mrf.mxu2 }
 0x21f   : > { %v4937_v5 = vadd.f32 %v1528_v34, %v1440_v23  ;;  %v1441_v63 = vpop.f32.mrf.mxu1 }
 0x220   : > { %v1442_v36 = vadd.f32 %v1441_v63, %v1353_v57  ;;  %v5790_v63 = vld [vmem:[#allocation38_spill] sm:$0xff] }
 0x222   : > { %v1293_v22 = vpop.f32.mrf.mxu3 }
 0x223   : > { %v1294_v55 = vadd.f32 %v1293_v22, %v4805_v44  ;;  %v1356_v44 = vadd.f32 %v4799_v33, %v4920_v8 }
 0x224   : > { %v4955_v41 = vpop.f32.mrf.mxu0 }
 0x225   : > { %v1723_v17 = vmax.f32 %v1294_v55, 0.0 }
 0x226   : > { %v1530_v34 = vpop.f32.mrf.mxu2 }
 0x227   : > { %1335 = vmatmul.bf16.gmra.mxu3 %v4944_v47  ;;  %1424 = vmatmul.bf16.gmra.mxu0 %v5788_v3  ;;  %v4948_v23 = vpack.c.bf16 %v1723_v17, %v1721_v30  ;;  %v4950_v51 = vadd.f32 %v1530_v34, %v1442_v36  ;;  %v1444_v22 = vpop.f32.mrf.mxu1  ;;  %v1358_v3 = vadd.f32 %v4810_v21, %v4920_v8 }
 0x228   : > { %v1445_v55 = vadd.f32 %v1444_v22, %v1356_v44  ;;  %v5791_v44 = vld [vmem:[#allocation27_spill] sm:$0xff] }
 0x22a   : > { %v1296_v6 = vpop.f32.mrf.mxu3  ;;  %1483 = vmatmul.bf16.gmra.mxu1 %v5790_v63  ;;  %v5792_v63 = vld [vmem:[#allocation41_spill] sm:$0xff] }
 0x22b   : > { %v1297_v1 = vadd.f32 %v1296_v6, %v4815_v19  ;;  %1572 = vmatmul.bf16.gmra.mxu2 %v5789_v0  ;;  %v3829_v19 = vld [vmem:[%s5696_s5 + $0x38] sm:$0xff] }
 0x22c   : > { %v4967_v6 = vpop.f32.mrf.mxu0  ;;  %2219 = vmatpush.bf16.msra.mxu2 %v3829_v19  ;;  %v1363_v19 = vadd.f32 %v4834_v4, %v4920_v8  ;;  %v1366_v4 = vadd.f32 %v4847_v59, %v4920_v8 }
 0x22d   : > { %v1725_v33 = vmax.f32 %v1297_v1, 0.0  ;;  %v1361_v1 = vadd.f32 %v4823_v40, %v4920_v8 }
 0x22e   : > { %v1533_v57 = vpop.f32.mrf.mxu2 }
 0x22f   : > { %v4959_v17 = vadd.f32 %v1533_v57, %v1445_v55  ;;  %v1446_v34 = vpop.f32.mrf.mxu1 }
 0x230   : > { %v1447_v0 = vadd.f32 %v1446_v34, %v1358_v3  ;;  %v5793_v3 = vld [vmem:[#allocation42_spill] sm:$0xff] }
 0x232   : > { %v1298_v30 = vpop.f32.mrf.mxu3 }
 0x233   : > { %v1299_v36 = vadd.f32 %v1298_v30, %v4829_v9 }
 0x235   : > { %v1727_v61 = vmax.f32 %v1299_v36, 0.0 }
 0x236   : > { %v1535_v21 = vpop.f32.mrf.mxu2 }
 0x237   : > { %1616 = vmatmul.bf16.vlgmr.msra.gmra.mxu3 %v5791_v44  ;;  %1933 = vmatmul.bf16.vlgmr.msra.gmra.mxu0 %v4801_v26  ;;  %v4971_v22 = vpack.c.bf16 %v1727_v61, %v1725_v33  ;;  %v4973_v9 = vadd.f32 %v1535_v21, %v1447_v0  ;;  %v1449_v30 = vpop.f32.mrf.mxu1  ;;  %v4979_v44 = vpop.f32.mrf.mxu0  ;;  %v5794_v21 = vld [vmem:[#allocation30_spill] sm:$0xff] }
 0x238   : > { %v1450_v36 = vadd.f32 %v1449_v30, %v1361_v1  ;;  %v3816_v1 = vld [vmem:[#allocation8 + $0x50] sm:$0xff] }
 0x239   : > { %2019 = vmatpush.bf16.msra.mxu1 %v3816_v1 }
 0x23a   : > { %v1301_v55 = vpop.f32.mrf.mxu3  ;;  %1488 = vmatmul.bf16.gmra.mxu1 %v5793_v3 }
 0x23b   : > { %v1302_v57 = vadd.f32 %v1301_v55, %v4839_v46  ;;  %1577 = vmatmul.bf16.gmra.mxu2 %v5792_v63 }
 0x23d   : > { %v1729_v40 = vmax.f32 %v1302_v57, 0.0 }
 0x23e   : > { %v1538_v26 = vpop.f32.mrf.mxu2 }
 0x23f   : > { %v4982_v61 = vadd.f32 %v1538_v26, %v1450_v36  ;;  %v1451_v46 = vpop.f32.mrf.mxu1 }
 0x240   : > { %v1452_v55 = vadd.f32 %v1451_v46, %v1363_v19 }
 0x242   : > { %v1303_v33 = vpop.f32.mrf.mxu3 }
 0x243   : > { %v1304_v34 = vadd.f32 %v1303_v33, %v4853_v28  ;;  %v4995_v28 = vpop.f32.mrf.mxu0 }
 0x245   : > { %v1731_v0 = vmax.f32 %v1304_v34, 0.0 }
 0x246   : > { %v1540_v30 = vpop.f32.mrf.mxu2 }
 0x247   : > { %1621 = vmatmul.bf16.gmra.mxu3 %v5794_v21  ;;  %1938 = vmatmul.bf16.gmra.mxu0 %v4827_v39  ;;  %v4989_v63 = vpack.c.bf16 %v1731_v0, %v1729_v40  ;;  %v4991_v26 = vadd.f32 %v1540_v30, %v1452_v55  ;;  %v1454_v3 = vpop.f32.mrf.mxu1  ;;  %v1368_v40 = vadd.f32 %v4858_v20, %v4920_v8  ;;  %v5795_v55 = vld [vmem:[#allocation33_spill] sm:$0xff] }
 0x248   : > { %v1455_v39 = vadd.f32 %v1454_v3, %v1366_v4 }
 0x24a   : > { %v1306_v36 = vpop.f32.mrf.mxu3  ;;  %1493 = vmatmul.bf16.gmra.mxu1 %v4711_v15 }
 0x24b   : > { %v1307_v57 = vadd.f32 %v1306_v36, %v4863_v50  ;;  %1582 = vmatmul.bf16.gmra.mxu2 %v4704_v37  ;;  %v5005_v59 = vpop.f32.mrf.mxu0  ;;  %v3828_v37 = vld [vmem:[%s5696_s5 + $0x30] sm:$0xff]  ;;  %v1371_v36 = vadd.f32 %v4871_v48, %v4920_v8 }
 0x24c   : > { %2220 = vmatpush.bf16.msra.mxu2 %v3828_v37  ;;  %v5798_v37 = vld [vmem:[#allocation36_spill] sm:$0xff] }
 0x24d   : > { %v1733_v46 = vmax.f32 %v1307_v57, 0.0  ;;  %v5796_v57 = vld [vmem:[#allocation22_spill] sm:$0xff]  ;;  %v3815_v48 = vld [vmem:[#allocation8 + $0x48] sm:$0xff] }
 0x24e   : > { %v1543_v33 = vpop.f32.mrf.mxu2  ;;  %2020 = vmatpush.bf16.msra.mxu1 %v3815_v48 }
 0x24f   : > { %v5000_v34 = vadd.f32 %v1543_v33, %v1455_v39  ;;  %v1456_v50 = vpop.f32.mrf.mxu1 }
 0x250   : > { %v1457_v15 = vadd.f32 %v1456_v50, %v1368_v40 }
 0x252   : > { %v1308_v19 = vpop.f32.mrf.mxu3 }
 0x253   : > { %v1309_v0 = vadd.f32 %v1308_v19, %v4877_v14  ;;  %v5020_v39 = vpop.f32.mrf.mxu0 }
 0x255   : > { %v1735_v21 = vmax.f32 %v1309_v0, 0.0 }
 0x256   : > { %v1545_v20 = vpop.f32.mrf.mxu2 }
 0x257   : > { %1626 = vmatmul.bf16.gmra.mxu3 %v5795_v55  ;;  %1943 = vmatmul.bf16.gmra.mxu0 %v4851_v54  ;;  %v5012_v1 = vpack.c.bf16 %v1735_v21, %v1733_v46  ;;  %v5014_v14 = vadd.f32 %v1545_v20, %v1457_v15  ;;  %v1459_v3 = vpop.f32.mrf.mxu1  ;;  %v5797_v54 = vld [vmem:[#allocation18_spill] sm:$0xff]  ;;  %v1376_v15 = vadd.f32 %v4895_v62, %v4920_v8  ;;  %v5799_v20 = vld [vmem:[#allocation23_spill] sm:$0xff] }
 0x258   : > { %v5022_v33 = vadd.f32 %v1459_v3, %v1371_v36  ;;  %v3827_v62 = vld [vmem:[%s5696_s5 + $0x28] sm:$0xff] }
 0x259   : > { %2221 = vmatpush.bf16.msra.mxu2 %v3827_v62 }
 0x25a   : > { %v1311_v30 = vpop.f32.mrf.mxu3  ;;  %1498 = vmatmul.bf16.gmra.mxu1 %v5797_v54 }
 0x25b   : > { %v1312_v4 = vadd.f32 %v1311_v30, %v4887_v16  ;;  %1587 = vmatmul.bf16.gmra.mxu2 %v5796_v57  ;;  %v5032_v50 = vpop.f32.mrf.mxu0 }
 0x25d   : > { %v1737_v0 = vmax.f32 %v1312_v4, 0.0  ;;  %v5800_v4 = vld [vmem:[#allocation19_spill] sm:$0xff] }
 0x25f   : > { %v5026_v21 = vpop.f32.mrf.mxu1 }
 0x262   : > { %v1313_v19 = vpop.f32.mrf.mxu3 }
 0x263   : > { %v1314_v40 = vadd.f32 %v1313_v19, %v4901_v12  ;;  %v5041_v57 = vpop.f32.mrf.mxu0 }
 0x265   : > { %v1739_v46 = vmax.f32 %v1314_v40, 0.0 }
 0x267   : > { %1631 = vmatmul.bf16.gmra.mxu3 %v5798_v37  ;;  %1948 = vmatmul.bf16.gmra.mxu0 %v4875_v13  ;;  %v5030_v16 = vpack.c.bf16 %v1739_v46, %v1737_v0  ;;  %v1464_v30 = vpop.f32.mrf.mxu1  ;;  %v1381_v37 = vadd.f32 %v4926_v18, %v4920_v8  ;;  %v5806_v18 = vld [vmem:[#allocation44_spill] sm:$0xff] }
 0x268   : > { %v5038_v36 = vadd.f32 %v1464_v30, %v1376_v15  ;;  %v5803_v15 = vld [vmem:[#allocation24_spill] sm:$0xff] }
 0x269   : > { %v5804_v30 = vld [vmem:[#allocation20_spill] sm:$0xff] }
 0x26a   : > { %v1316_v55 = vpop.f32.mrf.mxu3  ;;  %1503 = vmatmul.bf16.gmra.mxu1 %v5800_v4 }
 0x26b   : > { %v1317_v12 = vadd.f32 %v1316_v55, %v4911_v45  ;;  %1592 = vmatmul.bf16.gmra.mxu2 %v5799_v20  ;;  %v5801_v45 = vld [vmem:[#allocation39_spill] sm:$0xff]  ;;  %v5056_v55 = vpop.f32.mrf.mxu0 }
 0x26d   : > { %v1741_v54 = vmax.f32 %v1317_v12, 0.0 }
 0x26f   : > { %v5047_v40 = vpop.f32.mrf.mxu1 }
 0x272   : > { %v1318_v13 = vpop.f32.mrf.mxu3 }
 0x273   : > { %v1319_v3 = vadd.f32 %v1318_v13, %v4928_v27  ;;  %v5802_v27 = vld [vmem:[#allocation40_spill] sm:$0xff]  ;;  %v5065_v62 = vpop.f32.mrf.mxu0 }
 0x275   : > { %v1743_v19 = vmax.f32 %v1319_v3, 0.0 }
 0x277   : > { %1636 = vmatmul.bf16.gmra.mxu3 %v5801_v45  ;;  %1953 = vmatmul.bf16.gmra.mxu0 %v4899_v24  ;;  %v5051_v0 = vpack.c.bf16 %v1743_v19, %v1741_v54  ;;  %v1469_v12 = vpop.f32.mrf.mxu1  ;;  %v5805_v24 = vld [vmem:[#allocation43_spill] sm:$0xff] }
 0x278   : > { %v5059_v20 = vadd.f32 %v1469_v12, %v1381_v37  ;;  %v3814_v45 = vld [vmem:[#allocation8 + $0x40] sm:$0xff] }
 0x279   : > { %2021 = vmatpush.bf16.msra.mxu1 %v3814_v45 }
 0x27a   : > { %v1321_v46 = vpop.f32.mrf.mxu3  ;;  %1508 = vmatmul.bf16.gmra.mxu1 %v5804_v30 }
 0x27b   : > { %v1322_v48 = vadd.f32 %v1321_v46, %v5802_v27  ;;  %1597 = vmatmul.bf16.gmra.mxu2 %v5803_v15  ;;  %v1386_v27 = vadd.f32 %v4955_v41, %v4920_v8  ;;  %v5807_v15 = vld [vmem:[#allocation45_spill] sm:$0xff] }
 0x27c   : > { %v3826_v41 = vld [vmem:[%s5696_s5 + $0x20] sm:$0xff] }
 0x27d   : > { %v1745_v3 = vmax.f32 %v1322_v48, 0.0  ;;  %v5808_v48 = vld [vmem:[#allocation25_spill] sm:$0xff]  ;;  %2222 = vmatpush.bf16.msra.mxu2 %v3826_v41 }
 0x27f   : > { %v5063_v19 = vpop.f32.mrf.mxu1 }
 0x282   : > { %v1323_v4 = vpop.f32.mrf.mxu3 }
 0x283   : > { %v1324_v13 = vadd.f32 %v1323_v4, %v5805_v24  ;;  %v5077_v24 = vpop.f32.mrf.mxu0 }
 0x285   : > { %v1747_v54 = vmax.f32 %v1324_v13, 0.0  ;;  %v5809_v13 = vld [vmem:[#allocation21_spill] sm:$0xff] }
 0x287   : > { %1641 = vmatmul.bf16.gmra.mxu3 %v5806_v18  ;;  %1958 = vmatmul.bf16.gmra.mxu0 %v4924_v35  ;;  %v5069_v46 = vpack.c.bf16 %v1747_v54, %v1745_v3  ;;  %v1474_v30 = vpop.f32.mrf.mxu1 }
 0x288   : > { %v5075_v4 = vadd.f32 %v1474_v30, %v1386_v27 }
 0x28a   : > { %v1326_v37 = vpop.f32.mrf.mxu3  ;;  %1513 = vmatmul.bf16.gmra.mxu1 %v5809_v13 }
 0x28b   : > { %v1327_v12 = vadd.f32 %v1326_v37, %v5807_v15  ;;  %1602 = vmatmul.bf16.gmra.mxu2 %v5808_v48  ;;  %v1391_v15 = vadd.f32 %v4979_v44, %v4920_v8 }
 0x28d   : > { %v1749_v54 = vmax.f32 %v1327_v12, 0.0 }
 0x28f   : > { %v5084_v45 = vpop.f32.mrf.mxu1 }
 0x292   : > { %v1328_v35 = vpop.f32.mrf.mxu3 }
 0x293   : > { %v1329_v3 = vadd.f32 %v1328_v35, %v4721_v2  ;;  %v5092_v2 = vpop.f32.mrf.mxu0 }
 0x295   : > { %v1751_v18 = vmax.f32 %v1329_v3, 0.0 }
 0x297   : > { %1646 = vmatmul.bf16.gmra.mxu3 %v4723_v38  ;;  %1963 = vmatmul.bf16.gmra.mxu0 %v4948_v23  ;;  %v5088_v37 = vpack.c.bf16 %v1751_v18, %v1749_v54  ;;  %v1479_v48 = vpop.f32.mrf.mxu1 }
 0x298   : > { %v5095_v30 = vadd.f32 %v1479_v48, %v1391_v15 }
 0x29a   : > { %v1331_v27 = vpop.f32.mrf.mxu3 }
 0x29b   : > { %v1332_v12 = vadd.f32 %v1331_v27, %v4734_v56  ;;  %v5098_v38 = vpop.f32.mrf.mxu0  ;;  %v1396_v56 = vadd.f32 %v5005_v59, %v4920_v8 }
 0x29d   : > { %v1753_v23 = vmax.f32 %v1332_v12, 0.0 }
 0x29f   : > { %v5100_v54 = vpop.f32.mrf.mxu1 }
 0x2a2   : > { %v1333_v13 = vpop.f32.mrf.mxu3 }
 0x2a3   : > { %v1334_v35 = vadd.f32 %v1333_v13, %v4747_v32  ;;  %v5109_v32 = vpop.f32.mrf.mxu0 }
 0x2a5   : > { %v1755_v3 = vmax.f32 %v1334_v35, 0.0 }
 0x2a7   : > { %1651 = vmatmul.bf16.gmra.mxu3 %v4749_v31  ;;  %1968 = vmatmul.bf16.gmra.mxu0 %v4971_v22  ;;  %v5104_v44 = vpack.c.bf16 %v1755_v3, %v1753_v23  ;;  %v1484_v27 = vpop.f32.mrf.mxu1  ;;  %v3825_v22 = vld [vmem:[%s5696_s5 + $0x18] sm:$0xff] }
 0x2a8   : > { %v5111_v15 = vadd.f32 %v1484_v27, %v1396_v56  ;;  %2223 = vmatpush.bf16.msra.mxu2 %v3825_v22 }
 0x2aa   : > { %v1336_v18 = vpop.f32.mrf.mxu3 }
 0x2ab   : > { %v1337_v41 = vadd.f32 %v1336_v18, %v4760_v53  ;;  %v5123_v59 = vpop.f32.mrf.mxu0 }
 0x2ad   : > { %v1757_v13 = vmax.f32 %v1337_v41, 0.0 }
 0x2af   : > { %v5117_v35 = vpop.f32.mrf.mxu1 }
 0x2b2   : > { %v1338_v12 = vpop.f32.mrf.mxu3 }
 0x2b3   : > { %v1339_v48 = vadd.f32 %v1338_v12, %v4773_v43  ;;  %v1401_v43 = vadd.f32 %v5032_v50, %v4920_v8  ;;  %v5130_v27 = vpop.f32.mrf.mxu0 }
 0x2b5   : > { %v1759_v31 = vmax.f32 %v1339_v48, 0.0 }
 0x2b7   : > { %1656 = vmatmul.bf16.gmra.mxu3 %v4775_v60  ;;  %1973 = vmatmul.bf16.gmra.mxu0 %v4989_v63  ;;  %v5121_v53 = vpack.c.bf16 %v1759_v31, %v1757_v13  ;;  %v1489_v3 = vpop.f32.mrf.mxu1  ;;  %v5135_v13 = vpop.f32.mrf.mxu2 }
 0x2b8   : > { %v5127_v18 = vadd.f32 %v1489_v3, %v1401_v43 }
 0x2ba   : > { %v1617_v23 = vpop.f32.mrf.mxu3 }
 0x2bb   : > { %v1618_v56 = vadd.f32 %v1617_v23, %v4937_v5  ;;  %v1406_v5 = vadd.f32 %v5056_v55, %v4920_v8  ;;  %v5141_v22 = vpop.f32.mrf.mxu0 }
 0x2bd   : > { %v1698_v63 = vmax.f32 %v1618_v56, 0.0 }
 0x2bf   : > { %v5133_v48 = vpop.f32.mrf.mxu1  ;;  %v1550_v43 = vpop.f32.mrf.mxu2 }
 0x2c2   : > { %v1619_v41 = vpop.f32.mrf.mxu3 }
 0x2c3   : > { %v1620_v60 = vadd.f32 %v1619_v41, %v4950_v51  ;;  %v5152_v55 = vpop.f32.mrf.mxu0 }
 0x2c4   : > { %5810 = vst [vmem:[#allocation28_spill] sm:$0xff] %v5152_v55 }
 0x2c5   : > { %v1700_v12 = vmax.f32 %v1620_v60, 0.0 }
 0x2c7   : > { %v1762_v31 = vpack.c.bf16 %v1700_v12, %v1698_v63  ;;  %1661 = vmatmul.bf16.gmra.mxu3 %v4797_v52  ;;  %1978 = vmatmul.bf16.gmra.mxu0 %v5012_v1  ;;  %v1494_v23 = vpop.f32.mrf.mxu1  ;;  %v3824_v1 = vld [vmem:[%s5696_s5 + $0x10] sm:$0xff] }
 0x2c8   : > { %v5143_v51 = vadd.f32 %v1494_v23, %v1406_v5  ;;  %2224 = vmatpush.bf16.msra.mxu2 %v3824_v1 }
 0x2c9   : > { %2022 = vmatmul.bf16.vlgmr.msra.gmra.mxu1 %v1762_v31  ;;  %v1553_v31 = vpop.f32.mrf.mxu2 }
 0x2ca   : > { %v1622_v50 = vpop.f32.mrf.mxu3 }
 0x2cb   : > { %v1623_v3 = vadd.f32 %v1622_v50, %v4959_v17  ;;  %v5160_v23 = vpop.f32.mrf.mxu0 }
 0x2cd   : > { %v1702_v60 = vmax.f32 %v1623_v3, 0.0 }
 0x2cf   : > { %v5150_v63 = vpop.f32.mrf.mxu1 }
 0x2d2   : > { %v1624_v56 = vpop.f32.mrf.mxu3 }
 0x2d3   : > { %v1625_v41 = vadd.f32 %v1624_v56, %v4973_v9  ;;  %v1411_v9 = vadd.f32 %v5077_v24, %v4920_v8 }
 0x2d5   : > { %v1704_v52 = vmax.f32 %v1625_v41, 0.0  ;;  %v1555_v41 = vpop.f32.mrf.mxu2 }
 0x2d7   : > { %1666 = vmatmul.bf16.gmra.mxu3 %v4821_v58  ;;  %1983 = vmatmul.bf16.gmra.mxu0 %v5030_v16  ;;  %v1764_v12 = vpack.c.bf16 %v1704_v52, %v1702_v60  ;;  %v1499_v50 = vpop.f32.mrf.mxu1 }
 0x2d8   : > { %v5158_v5 = vadd.f32 %v1499_v50, %v1411_v9  ;;  %v5170_v9 = vpop.f32.mrf.mxu0 }
 0x2d9   : > { %2027 = vmatmul.bf16.gmra.mxu1 %v1764_v12  ;;  %v1416_v12 = vadd.f32 %v5098_v38, %v4920_v8 }
 0x2da   : > { %v1627_v17 = vpop.f32.mrf.mxu3 }
 0x2db   : > { %v1628_v3 = vadd.f32 %v1627_v17, %v4982_v61 }
 0x2dd   : > { %v1706_v16 = vmax.f32 %v1628_v3, 0.0  ;;  %v5172_v17 = vpop.f32.mrf.mxu2 }
 0x2df   : > { %v5164_v52 = vpop.f32.mrf.mxu1 }
 0x2e2   : > { %v1629_v56 = vpop.f32.mrf.mxu3 }
 0x2e3   : > { %v1630_v58 = vadd.f32 %v1629_v56, %v4991_v26  ;;  %v5178_v56 = vpop.f32.mrf.mxu0 }
 0x2e5   : > { %v1708_v60 = vmax.f32 %v1630_v58, 0.0 }
 0x2e7   : > { %1671 = vmatmul.bf16.gmra.mxu3 %v4845_v29  ;;  %1988 = vmatmul.bf16.gmra.mxu0 %v5051_v0  ;;  %v1766_v24 = vpack.c.bf16 %v1708_v60, %v1706_v16  ;;  %v1504_v61 = vpop.f32.mrf.mxu1  ;;  %v3823_v60 = vld [vmem:[%s5696_s5 + $0x8] sm:$0xff] }
 0x2e8   : > { %v5174_v26 = vadd.f32 %v1504_v61, %v1416_v12  ;;  %2225 = vmatpush.bf16.msra.mxu2 %v3823_v60 }
 0x2e9   : > { %2032 = vmatmul.bf16.gmra.mxu1 %v1766_v24  ;;  %v1560_v24 = vpop.f32.mrf.mxu2 }
 0x2ea   : > { %v1632_v1 = vpop.f32.mrf.mxu3 }
 0x2eb   : > { %v1633_v50 = vadd.f32 %v1632_v1, %v5000_v34  ;;  %v1373_v34 = vadd.f32 %v4882_v11, %v4920_v8  ;;  %v1421_v1 = vadd.f32 %v5123_v59, %v4920_v8  ;;  %v5194_v61 = vpop.f32.mrf.mxu0 }
 0x2ed   : > { %v1710_v0 = vmax.f32 %v1633_v50, 0.0  ;;  %v1462_v12 = vadd.f32 %v5026_v21, %v1373_v34 }
 0x2ef   : > { %v5180_v16 = vpop.f32.mrf.mxu1 }
 0x2f2   : > { %v1634_v3 = vpop.f32.mrf.mxu3 }
 0x2f3   : > { %v1635_v29 = vadd.f32 %v1634_v3, %v5014_v14  ;;  %v1551_v3 = vadd.f32 %v1550_v43, %v1462_v12  ;;  %v5204_v21 = vpop.f32.mrf.mxu0  ;;  %v1426_v43 = vadd.f32 %v5141_v22, %v4920_v8  ;;  %v1554_v12 = vadd.f32 %v1553_v31, %v5038_v36  ;;  %v3822_v36 = vld [vmem:[%s5696_s5] sm:$0xff] }
 0x2f4   : > { %2226 = vmatpush.bf16.msra.mxu2 %v3822_v36 }
 0x2f5   : > { %v1712_v58 = vmax.f32 %v1635_v29, 0.0 }
 0x2f7   : > { %1676 = vmatmul.bf16.gmra.mxu3 %v4869_v10  ;;  %1993 = vmatmul.bf16.gmra.mxu0 %v5069_v46  ;;  %v1768_v38 = vpack.c.bf16 %v1712_v58, %v1710_v0  ;;  %v1509_v10 = vpop.f32.mrf.mxu1  ;;  %v1549_v46 = vadd.f32 %v5135_v13, %v5022_v33  ;;  %v1563_v0 = vpop.f32.mrf.mxu2  ;;  %v1378_v33 = vadd.f32 %v4907_v49, %v4920_v8 }
 0x2f8   : > { %v5196_v50 = vadd.f32 %v1509_v10, %v1421_v1 }
 0x2f9   : > { %2037 = vmatmul.bf16.gmra.mxu1 %v1768_v38  ;;  %v1467_v34 = vadd.f32 %v5047_v40, %v1378_v33  ;;  %v1383_v40 = vadd.f32 %v4941_v25, %v4920_v8 }
 0x2fa   : > { %v1637_v14 = vpop.f32.mrf.mxu3 }
 0x2fb   : > { %v1638_v29 = vadd.f32 %v1637_v14, %v1549_v46  ;;  %v1472_v31 = vadd.f32 %v5063_v19, %v1383_v40  ;;  %v1388_v19 = vadd.f32 %v4967_v6, %v4920_v8 }
 0x2fd   : > { %v1714_v38 = vmax.f32 %v1638_v29, 0.0 }
 0x2ff   : > { %v5198_v55 = vpop.f32.mrf.mxu1  ;;  %v1565_v14 = vpop.f32.mrf.mxu2 }
 0x302   : > { %v1639_v11 = vpop.f32.mrf.mxu3 }
 0x303   : > { %v1640_v58 = vadd.f32 %v1639_v11, %v1551_v3  ;;  %v5212_v3 = vpop.f32.mrf.mxu0 }
 0x305   : > { %v1716_v60 = vmax.f32 %v1640_v58, 0.0 }
 0x307   : > { %v1770_v59 = vpack.c.bf16 %v1716_v60, %v1714_v38  ;;  %1681 = vmatmul.bf16.gmra.mxu3 %v4893_v7  ;;  %1998 = vmatmul.bf16.gmra.mxu0 %v5088_v37  ;;  %v1514_v1 = vpop.f32.mrf.mxu1  ;;  %v1556_v7 = vadd.f32 %v1555_v41, %v1467_v34  ;;  %v1568_v58 = vpop.f32.mrf.mxu2  ;;  %v1559_v60 = vadd.f32 %v5172_v17, %v5059_v20 }
 0x308   : > { %v5210_v10 = vadd.f32 %v1514_v1, %v1426_v43  ;;  %v1477_v17 = vadd.f32 %v5084_v45, %v1388_v19  ;;  %v1569_v45 = vadd.f32 %v1568_v58, %v5095_v30 }
 0x309   : > { %2042 = vmatmul.bf16.gmra.mxu1 %v1770_v59 }
 0x30a   : > { %v1642_v13 = vpop.f32.mrf.mxu3 }
 0x30b   : > { %v1643_v37 = vadd.f32 %v1642_v13, %v1554_v12  ;;  %v5222_v41 = vpop.f32.mrf.mxu0 }
 0x30d   : > { %v1718_v29 = vmax.f32 %v1643_v37, 0.0 }
 0x30f   : > { %v1570_v59 = vpop.f32.mrf.mxu2  ;;  %v5237_v40 = vpop.f32.mrf.mxu1 }
 0x312   : > { %v1644_v46 = vpop.f32.mrf.mxu3 }
 0x313   : > { %v1645_v49 = vadd.f32 %v1644_v46, %v1556_v7  ;;  %v5226_v1 = vpop.f32.mrf.mxu0  ;;  %v1566_v7 = vadd.f32 %v1565_v14, %v1477_v17 }
 0x315   : > { %v1720_v11 = vmax.f32 %v1645_v49, 0.0 }
 0x317   : > { %v1772_v38 = vpack.c.bf16 %v1720_v11, %v1718_v29  ;;  %1686 = vmatmul.bf16.gmra.mxu3 %v4917_v42  ;;  %2003 = vmatmul.bf16.gmra.mxu0 %v5104_v44  ;;  %v1561_v42 = vadd.f32 %v1560_v24, %v1472_v31  ;;  %v1573_v20 = vpop.f32.mrf.mxu2  ;;  %v1564_v24 = vadd.f32 %v1563_v0, %v5075_v4 }
 0x318   : > { %v1574_v19 = vadd.f32 %v1573_v20, %v5111_v15 }
 0x319   : > { %2047 = vmatmul.bf16.gmra.mxu1 %v1772_v38 }
 0x31a   : > { %v1647_v22 = vpop.f32.mrf.mxu3 }
 0x31b   : > { %v1648_v44 = vadd.f32 %v1647_v22, %v1559_v60 }
 0x31d   : > { %v1722_v43 = vmax.f32 %v1648_v44, 0.0 }
 0x31f   : > { %v1575_v29 = vpop.f32.mrf.mxu2 }
 0x322   : > { %v1649_v33 = vpop.f32.mrf.mxu3 }
 0x323   : > { %v1650_v13 = vadd.f32 %v1649_v33, %v1561_v42 }
 0x325   : > { %v1724_v34 = vmax.f32 %v1650_v13, 0.0 }
 0x327   : > { %v1774_v25 = vpack.c.bf16 %v1724_v34, %v1722_v43  ;;  %1691 = vmatmul.bf16.gmra.mxu3 %v4944_v47  ;;  %2008 = vmatmul.bf16.gmra.mxu0 %v5121_v53  ;;  %v1393_v53 = vadd.f32 %v4995_v28, %v4920_v8  ;;  %v1578_v4 = vpop.f32.mrf.mxu2  ;;  %v5243_v28 = vld [vmem:[%s5695_s4] ss:$0 sm:$0xff] }
 0x328   : > { %v1935_v58 = vadd.f32 %v5243_v28, %v5160_v23  ;;  %v1940_v20 = vadd.f32 %v5243_v28, %v5178_v56 }
 0x329   : > { %2052 = vmatmul.bf16.gmra.mxu1 %v1774_v25  ;;  %v1482_v36 = vadd.f32 %v5100_v54, %v1393_v53  ;;  %v1398_v54 = vadd.f32 %v5020_v39, %v4920_v8  ;;  %v1403_v53 = vadd.f32 %v5041_v57, %v4920_v8 }
 0x32a   : > { %v1652_v12 = vpop.f32.mrf.mxu3 }
 0x32b   : > { %v1653_v37 = vadd.f32 %v1652_v12, %v1564_v24  ;;  %v1571_v0 = vadd.f32 %v1570_v59, %v1482_v36  ;;  %v1937_v59 = vadd.f32 %v5243_v28, %v5170_v9  ;;  %v1487_v43 = vadd.f32 %v5117_v35, %v1398_v54 }
 0x32d   : > { %v1726_v11 = vmax.f32 %v1653_v37, 0.0  ;;  %v1576_v17 = vadd.f32 %v1575_v29, %v1487_v43  ;;  %v1942_v29 = vadd.f32 %v5243_v28, %v5194_v61 }
 0x32f   : > { %v1580_v13 = vpop.f32.mrf.mxu2 }
 0x332   : > { %v1654_v46 = vpop.f32.mrf.mxu3 }
 0x333   : > { %v1655_v49 = vadd.f32 %v1654_v46, %v1566_v7 }
 0x335   : > { %v1728_v38 = vmax.f32 %v1655_v49, 0.0 }
 0x337   : > { %v1776_v47 = vpack.c.bf16 %v1728_v38, %v1726_v11  ;;  %v1583_v46 = vpop.f32.mrf.mxu2  ;;  %v5253_v38 = vpop.f32.mrf.mxu0 }
 0x339   : > { %2057 = vmatmul.bf16.gmra.mxu1 %v1776_v47 }
 0x33a   : > { %v1657_v6 = vpop.f32.mrf.mxu3 }
 0x33b   : > { %v1658_v14 = vadd.f32 %v1657_v6, %v1569_v45  ;;  %v1492_v6 = vadd.f32 %v5133_v48, %v1403_v53  ;;  %v1413_v53 = vadd.f32 %v5092_v2, %v4920_v8 }
 0x33d   : > { %v1730_v60 = vmax.f32 %v1658_v14, 0.0 }
 0x33f   : > { %v1585_v36 = vpop.f32.mrf.mxu2 }
 0x342   : > { %v1659_v22 = vpop.f32.mrf.mxu3 }
 0x343   : > { %v1660_v31 = vadd.f32 %v1659_v22, %v1571_v0  ;;  %v5262_v0 = vpop.f32.mrf.mxu0  ;;  %v1579_v22 = vadd.f32 %v1578_v4, %v5127_v18  ;;  %v1945_v4 = vadd.f32 %v5243_v28, %v5204_v21 }
 0x345   : > { %v1732_v42 = vmax.f32 %v1660_v31, 0.0 }
 0x346   : > { %v2023_v44 = vpop.f32.mrf.mxu1 }
 0x347   : > { %v1778_v33 = vpack.c.bf16 %v1732_v42, %v1730_v60  ;;  %v2024_v34 = vadd.f32 %v2023_v44, %v1935_v58  ;;  %v1581_v60 = vadd.f32 %v1580_v13, %v1492_v6  ;;  %v1588_v48 = vpop.f32.mrf.mxu2  ;;  %v1947_v13 = vadd.f32 %v5243_v28, %v5212_v3 }
 0x348   : > { %v1502_v6 = vadd.f32 %v5164_v52, %v1413_v53  ;;  %v1418_v52 = vadd.f32 %v5109_v32, %v4920_v8 }
 0x349   : > { %2062 = vmatmul.bf16.gmra.mxu1 %v1778_v33  ;;  %v2103_v24 = vmax.f32 %v2024_v34, 0.0  ;;  %v1408_v34 = vadd.f32 %v5065_v62, %v4920_v8 }
 0x34a   : > { %v1662_v30 = vpop.f32.mrf.mxu3 }
 0x34b   : > { %v1663_v7 = vadd.f32 %v1662_v30, %v1574_v19  ;;  %v5265_v43 = vpop.f32.mrf.mxu0 }
 0x34d   : > { %v1734_v23 = vmax.f32 %v1663_v7, 0.0 }
 0x34e   : > { %v2025_v25 = vpop.f32.mrf.mxu1 }
 0x34f   : > { %v2026_v12 = vadd.f32 %v2025_v25, %v1937_v59  ;;  %v1497_v25 = vadd.f32 %v5150_v63, %v1408_v34 }
 0x351   : > { %v2104_v39 = vmax.f32 %v2026_v12, 0.0  ;;  %v1586_v7 = vadd.f32 %v1585_v36, %v1497_v25 }
 0x352   : > { %v1664_v37 = vpop.f32.mrf.mxu3 }
 0x353   : > { %v2135_v49 = vpack.c.bf16 %v2104_v39, %v2103_v24  ;;  %v1665_v11 = vadd.f32 %v1664_v37, %v1576_v17  ;;  %v1584_v17 = vadd.f32 %v1583_v46, %v5143_v51  ;;  %v1590_v39 = vpop.f32.mrf.mxu2  ;;  %v1950_v46 = vadd.f32 %v5243_v28, %v5222_v41 }
 0x355   : > { %v1736_v47 = vmax.f32 %v1665_v11, 0.0  ;;  %2227 = vmatmul.bf16.vlgmr.msra.gmra.mxu2 %v2135_v49  ;;  %v5275_v11 = vpop.f32.mrf.mxu0 }
 0x356   : > { %v2028_v9 = vpop.f32.mrf.mxu1 }
 0x357   : > { %v1780_v35 = vpack.c.bf16 %v1736_v47, %v1734_v23  ;;  %v2029_v45 = vadd.f32 %v2028_v9, %v1940_v20 }
 0x359   : > { %2067 = vmatmul.bf16.gmra.mxu1 %v1780_v35  ;;  %v2105_v57 = vmax.f32 %v2029_v45, 0.0 }
 0x35a   : > { %v1667_v15 = vpop.f32.mrf.mxu3 }
 0x35b   : > { %v1668_v42 = vadd.f32 %v1667_v15, %v1579_v22  ;;  %v1593_v15 = vpop.f32.mrf.mxu2 }
 0x35d   : > { %v1738_v30 = vmax.f32 %v1668_v42, 0.0  ;;  %v5281_v20 = vpop.f32.mrf.mxu0 }
 0x35e   : > { %v2030_v14 = vpop.f32.mrf.mxu1 }
 0x35f   : > { %v2031_v31 = vadd.f32 %v2030_v14, %v1942_v29  ;;  %v1952_v29 = vadd.f32 %v5243_v28, %v5226_v1  ;;  %v1589_v14 = vadd.f32 %v1588_v48, %v5158_v5  ;;  %v1957_v48 = vadd.f32 %v5243_v28, %v5262_v0 }
 0x361   : > { %v2106_v44 = vmax.f32 %v2031_v31, 0.0  ;;  %v1591_v31 = vadd.f32 %v1590_v39, %v1502_v6 }
 0x362   : > { %v1669_v33 = vpop.f32.mrf.mxu3 }
 0x363   : > { %v1670_v54 = vadd.f32 %v1669_v33, %v1581_v60  ;;  %v2136_v56 = vpack.c.bf16 %v2106_v44, %v2105_v57  ;;  %v1595_v33 = vpop.f32.mrf.mxu2 }
 0x365   : > { %v1740_v58 = vmax.f32 %v1670_v54, 0.0  ;;  %2232 = vmatmul.bf16.gmra.mxu2 %v2136_v56 }
 0x366   : > { %v2033_v61 = vpop.f32.mrf.mxu1 }
 0x367   : > { %v1782_v59 = vpack.c.bf16 %v1740_v58, %v1738_v30  ;;  %v2034_v19 = vadd.f32 %v2033_v61, %v1945_v4  ;;  %v1966_v30 = vpop.f32.mrf.mxu0  ;;  %v1955_v61 = vadd.f32 %v5243_v28, %v5253_v38  ;;  %v1594_v4 = vadd.f32 %v1593_v15, %v5174_v26 }
 0x369   : > { %2072 = vmatmul.bf16.gmra.mxu1 %v1782_v59  ;;  %v2107_v37 = vmax.f32 %v2034_v19, 0.0  ;;  %v1507_v59 = vadd.f32 %v5180_v16, %v1418_v52 }
 0x36a   : > { %v1672_v18 = vpop.f32.mrf.mxu3 }
 0x36b   : > { %v1673_v49 = vadd.f32 %v1672_v18, %v1584_v17 }
 0x36d   : > { %v1742_v9 = vmax.f32 %v1673_v49, 0.0 }
 0x36e   : > { %v2035_v12 = vpop.f32.mrf.mxu1 }
 0x36f   : > { %v2036_v24 = vadd.f32 %v2035_v12, %v1947_v13  ;;  %v1598_v13 = vpop.f32.mrf.mxu2  ;;  %v5295_v19 = vpop.f32.mrf.mxu0  ;;  %v1596_v12 = vadd.f32 %v1595_v33, %v1507_v59 }
 0x370   : > { %v1599_v53 = vadd.f32 %v1598_v13, %v5196_v50  ;;  %v1970_v13 = vadd.f32 %v5243_v28, %v5295_v19 }
 0x371   : > { %v2108_v62 = vmax.f32 %v2036_v24, 0.0 }
 0x372   : > { %v1674_v23 = vpop.f32.mrf.mxu3 }
 0x373   : > { %v1675_v47 = vadd.f32 %v1674_v23, %v1586_v7  ;;  %v2137_v21 = vpack.c.bf16 %v2108_v62, %v2107_v37  ;;  %v1423_v62 = vadd.f32 %v5130_v27, %v4920_v8 }
 0x375   : > { %v1744_v35 = vmax.f32 %v1675_v47, 0.0  ;;  %2237 = vmatmul.bf16.gmra.mxu2 %v2137_v21  ;;  %v1960_v21 = vadd.f32 %v5243_v28, %v5265_v43 }
 0x376   : > { %v2038_v3 = vpop.f32.mrf.mxu1 }
 0x377   : > { %v1784_v63 = vpack.c.bf16 %v1744_v35, %v1742_v9  ;;  %v2039_v36 = vadd.f32 %v2038_v3, %v1950_v46  ;;  %v1600_v26 = vpop.f32.mrf.mxu2  ;;  %v1971_v23 = vpop.f32.mrf.mxu0  ;;  %v1962_v9 = vadd.f32 %v5243_v28, %v5275_v11  ;;  %v1512_v35 = vadd.f32 %v5198_v55, %v1423_v62  ;;  %v5811_v55 = vld [vmem:[#allocation28_spill] sm:$0xff] }
 0x379   : > { %2077 = vmatmul.bf16.gmra.mxu1 %v1784_v63  ;;  %v2109_v2 = vmax.f32 %v2039_v36, 0.0  ;;  %v1601_v46 = vadd.f32 %v1600_v26, %v1512_v35 }
 0x37a   : > { %v1677_v51 = vpop.f32.mrf.mxu3 }
 0x37b   : > { %v1678_v60 = vadd.f32 %v1677_v51, %v1589_v14 }
 0x37d   : > { %v1746_v54 = vmax.f32 %v1678_v60, 0.0  ;;  %v1428_v60 = vadd.f32 %v5811_v55, %v4920_v8 }
 0x37e   : > { %v2040_v45 = vpop.f32.mrf.mxu1 }
 0x37f   : > { %v2041_v22 = vadd.f32 %v2040_v45, %v1952_v29  ;;  %v1603_v36 = vpop.f32.mrf.mxu2 }
 0x381   : > { %v2110_v57 = vmax.f32 %v2041_v22, 0.0  ;;  %v1974_v22 = vpop.f32.mrf.mxu0 }
 0x382   : > { %v1679_v42 = vpop.f32.mrf.mxu3 }
 0x383   : > { %v1680_v44 = vadd.f32 %v1679_v42, %v1591_v31  ;;  %v2138_v41 = vpack.c.bf16 %v2110_v57, %v2109_v2  ;;  %v1965_v57 = vadd.f32 %v5243_v28, %v5281_v20  ;;  %v1967_v42 = vadd.f32 %v5243_v28, %v1966_v30 }
 0x385   : > { %v1748_v56 = vmax.f32 %v1680_v44, 0.0  ;;  %2242 = vmatmul.bf16.gmra.mxu2 %v2138_v41  ;;  %v1517_v44 = vadd.f32 %v5237_v40, %v1428_v60 }
 0x386   : > { %v2043_v1 = vpop.f32.mrf.mxu1 }
 0x387   : > { %v1786_v58 = vpack.c.bf16 %v1748_v56, %v1746_v54  ;;  %v2044_v34 = vadd.f32 %v2043_v1, %v1955_v61  ;;  %v1605_v41 = vpop.f32.mrf.mxu2  ;;  %v1604_v1 = vadd.f32 %v1603_v36, %v5210_v10  ;;  %v1972_v10 = vadd.f32 %v5243_v28, %v1971_v23 }
 0x388   : > { %v1606_v52 = vadd.f32 %v1605_v41, %v1517_v44 }
 0x389   : > { %2082 = vmatmul.bf16.gmra.mxu1 %v1786_v58  ;;  %v2111_v32 = vmax.f32 %v2044_v34, 0.0  ;;  %v1976_v54 = vpop.f32.mrf.mxu0 }
 0x38a   : > { %v1682_v5 = vpop.f32.mrf.mxu3 }
 0x38b   : > { %v1683_v17 = vadd.f32 %v1682_v5, %v1594_v4 }
 0x38d   : > { %v1750_v37 = vmax.f32 %v1683_v17, 0.0 }
 0x38e   : > { %v2045_v18 = vpop.f32.mrf.mxu1 }
 0x38f   : > { %v2046_v25 = vadd.f32 %v2045_v18, %v1957_v48 }
 0x391   : > { %v2112_v24 = vmax.f32 %v2046_v25, 0.0  ;;  %v1979_v40 = vpop.f32.mrf.mxu0 }
 0x392   : > { %v1684_v7 = vpop.f32.mrf.mxu3 }
 0x393   : > { %v2139_v39 = vpack.c.bf16 %v2112_v24, %v2111_v32  ;;  %v1685_v38 = vadd.f32 %v1684_v7, %v1596_v12 }
 0x395   : > { %v1752_v49 = vmax.f32 %v1685_v38, 0.0  ;;  %2247 = vmatmul.bf16.gmra.mxu2 %v2139_v39 }
 0x396   : > { %v2048_v0 = vpop.f32.mrf.mxu1 }
 0x397   : > { %v1788_v16 = vpack.c.bf16 %v1752_v49, %v1750_v37  ;;  %v2049_v3 = vadd.f32 %v2048_v0, %v1960_v21  ;;  %v1975_v37 = vadd.f32 %v5243_v28, %v1974_v22  ;;  %v1977_v0 = vadd.f32 %v5243_v28, %v1976_v54  ;;  %v5320_v21 = vld [vmem:[%s5697_s6] ss:$0 sm:$0xff] }
 0x399   : > { %2087 = vmatmul.bf16.gmra.mxu1 %v1788_v16  ;;  %v2113_v15 = vmax.f32 %v2049_v3, 0.0  ;;  %v1981_v7 = vpop.f32.mrf.mxu0 }
 0x39a   : > { %v1687_v47 = vpop.f32.mrf.mxu3 }
 0x39b   : > { %v1688_v27 = vadd.f32 %v1687_v47, %v1599_v53  ;;  %v5326_v53 = vld [vmem:[%s5698_s7] ss:$0 sm:$0xff] }
 0x39d   : > { %v1754_v43 = vmax.f32 %v1688_v27, 0.0 }
 0x39e   : > { %v2050_v63 = vpop.f32.mrf.mxu1 }
 0x39f   : > { %v2051_v51 = vadd.f32 %v2050_v63, %v1962_v9 }
 0x3a1   : > { %v2114_v29 = vmax.f32 %v2051_v51, 0.0  ;;  %v1984_v49 = vpop.f32.mrf.mxu0  ;;  %v1980_v51 = vadd.f32 %v5243_v28, %v1979_v40 }
 0x3a2   : > { %v1689_v6 = vpop.f32.mrf.mxu3 }
 0x3a3   : > { %v2140_v45 = vpack.c.bf16 %v2114_v29, %v2113_v15  ;;  %v1690_v14 = vadd.f32 %v1689_v6, %v1601_v46  ;;  %v1982_v15 = vadd.f32 %v5243_v28, %v1981_v7 }
 0x3a5   : > { %v1756_v31 = vmax.f32 %v1690_v14, 0.0  ;;  %2252 = vmatmul.bf16.gmra.mxu2 %v2140_v45 }
 0x3a6   : > { %v2053_v11 = vpop.f32.mrf.mxu1 }
 0x3a7   : > { %v1790_v2 = vpack.c.bf16 %v1756_v31, %v1754_v43  ;;  %v2054_v33 = vadd.f32 %v2053_v11, %v1965_v57 }
 0x3a9   : > { %2092 = vmatmul.bf16.gmra.mxu1 %v1790_v2  ;;  %v2115_v5 = vmax.f32 %v2054_v33, 0.0  ;;  %v1986_v9 = vpop.f32.mrf.mxu0  ;;  %v1985_v33 = vadd.f32 %v5243_v28, %v1984_v49 }
 0x3aa   : > { %v1692_v50 = vpop.f32.mrf.mxu3 }
 0x3ab   : > { %v1693_v61 = vadd.f32 %v1692_v50, %v1604_v1 }
 0x3ad   : > { %v1758_v18 = vmax.f32 %v1693_v61, 0.0 }
 0x3ae   : > { %v2055_v56 = vpop.f32.mrf.mxu1 }
 0x3af   : > { %v2056_v58 = vadd.f32 %v2055_v56, %v1967_v42  ;;  %v1987_v56 = vadd.f32 %v5243_v28, %v1986_v9 }
 0x3b1   : > { %v2116_v8 = vmax.f32 %v2056_v58, 0.0  ;;  %v1989_v14 = vpop.f32.mrf.mxu0 }
 0x3b2   : > { %v1694_v48 = vpop.f32.mrf.mxu3 }
 0x3b3   : > { %v2141_v59 = vpack.c.bf16 %v2116_v8, %v2115_v5  ;;  %v1695_v34 = vadd.f32 %v1694_v48, %v1606_v52 }
 0x3b5   : > { %v1760_v20 = vmax.f32 %v1695_v34, 0.0  ;;  %2257 = vmatmul.bf16.gmra.mxu2 %v2141_v59 }
 0x3b6   : > { %v2058_v30 = vpop.f32.mrf.mxu1 }
 0x3b7   : > { %v1792_v4 = vpack.c.bf16 %v1760_v20, %v1758_v18  ;;  %v2059_v25 = vadd.f32 %v2058_v30, %v1970_v13 }
 0x3b9   : > { %2097 = vmatmul.bf16.gmra.mxu1 %v1792_v4  ;;  %v2117_v17 = vmax.f32 %v2059_v25, 0.0  ;;  %v1991_v41 = vpop.f32.mrf.mxu0 }
 0x3be   : > { %v2060_v12 = vpop.f32.mrf.mxu1 }
 0x3bf   : > { %v2061_v32 = vadd.f32 %v2060_v12, %v1972_v10  ;;  %v1990_v12 = vadd.f32 %v5243_v28, %v1989_v14 }
 0x3c1   : > { %v2118_v24 = vmax.f32 %v2061_v32, 0.0  ;;  %v1994_v30 = vpop.f32.mrf.mxu0 }
 0x3c3   : > { %v2142_v39 = vpack.c.bf16 %v2118_v24, %v2117_v17  ;;  %v1992_v17 = vadd.f32 %v5243_v28, %v1991_v41 }
 0x3c5   : > { %2262 = vmatmul.bf16.gmra.mxu2 %v2142_v39 }
 0x3c6   : > { %v2063_v38 = vpop.f32.mrf.mxu1 }
 0x3c7   : > { %v2064_v16 = vadd.f32 %v2063_v38, %v1975_v37 }
 0x3c9   : > { %v2119_v19 = vmax.f32 %v2064_v16, 0.0  ;;  %v1996_v39 = vpop.f32.mrf.mxu0 }
 0x3ce   : > { %v2065_v62 = vpop.f32.mrf.mxu1 }
 0x3cf   : > { %v2066_v26 = vadd.f32 %v2065_v62, %v1977_v0 }
 0x3d1   : > { %v2120_v47 = vmax.f32 %v2066_v26, 0.0 }
 0x3d3   : > { %v2143_v23 = vpack.c.bf16 %v2120_v47, %v2119_v19 }
 0x3d5   : > { %2267 = vmatmul.bf16.gmra.mxu2 %v2143_v23 }
 0x3d6   : > { %v2068_v35 = vpop.f32.mrf.mxu1 }
 0x3d7   : > { %v2069_v27 = vadd.f32 %v2068_v35, %v1980_v51 }
 0x3d8   : > { %v2228_v3 = vpop.f32.mrf.mxu2 }
 0x3d9   : > { %v2229_v63 = vadd.f32 %v5320_v21, %v2228_v3  ;;  %v2121_v43 = vmax.f32 %v2069_v27, 0.0  ;;  %v1999_v3 = vpop.f32.mrf.mxu0  ;;  %v1997_v27 = vadd.f32 %v5243_v28, %v1996_v39 }
 0x3db   : > { %v2308_v46 = vmax.f32 %v2229_v63, 0.0 }
 0x3dd   : > { %v2344_v29 = vmul.f32 %v5326_v53, %v2308_v46  ;;  %v1995_v46 = vadd.f32 %v5243_v28, %v1994_v30 }
 0x3de   : > { %v2070_v6 = vpop.f32.mrf.mxu1 }
 0x3df   : > { %v2071_v36 = vadd.f32 %v2070_v6, %v1982_v15  ;;  %v2377_v45 = vsel %vm2376_vm0, %v2344_v29, 0.0 }
 0x3e0   : > { %v2230_v22 = vpop.f32.mrf.mxu2  ;;  %2378 = vadd.xlane.f32.xlu0 %v2377_v45 }
 0x3e1   : > { %v2122_v31 = vmax.f32 %v2071_v36, 0.0  ;;  %v2231_v11 = vadd.f32 %v5320_v21, %v2230_v22 }
 0x3e3   : > { %v2144_v2 = vpack.c.bf16 %v2122_v31, %v2121_v43  ;;  %v2309_v55 = vmax.f32 %v2231_v11, 0.0 }
 0x3e5   : > { %2272 = vmatmul.bf16.gmra.mxu2 %v2144_v2  ;;  %v2345_v60 = vmul.f32 %v5326_v53, %v2309_v55  ;;  %v2001_v2 = vpop.f32.mrf.mxu0 }
 0x3e6   : > { %v2073_v50 = vpop.f32.mrf.mxu1 }
 0x3e7   : > { %v2380_v57 = vsel %vm2376_vm0, %v2345_v60, 0.0  ;;  %v2074_v1 = vadd.f32 %v2073_v50, %v1985_v33  ;;  %v2000_v33 = vadd.f32 %v5243_v28, %v1999_v3 }
 0x3e8   : > { %v2233_v42 = vpop.f32.mrf.mxu2  ;;  %2381 = vadd.xlane.f32.xlu0 %v2380_v57 }
 0x3e9   : > { %v2234_v44 = vadd.f32 %v5320_v21, %v2233_v42  ;;  %v2123_v48 = vmax.f32 %v2074_v1, 0.0  ;;  %v2002_v1 = vadd.f32 %v5243_v28, %v2001_v2 }
 0x3eb   : > { %v2310_v54 = vmax.f32 %v2234_v44, 0.0 }
 0x3ed   : > { %v2346_v58 = vmul.f32 %v5326_v53, %v2310_v54 }
 0x3ee   : > { %v2075_v52 = vpop.f32.mrf.mxu1 }
 0x3ef   : > { %v2076_v5 = vadd.f32 %v2075_v52, %v1987_v56  ;;  %v2383_v61 = vsel %vm2376_vm0, %v2346_v58, 0.0  ;;  %v2004_v56 = vpop.f32.mrf.mxu0 }
 0x3f0   : > { %v2235_v8 = vpop.f32.mrf.mxu2  ;;  %2384 = vadd.xlane.f32.xlu1 %v2383_v61 }
 0x3f1   : > { %v2124_v59 = vmax.f32 %v2076_v5, 0.0  ;;  %v2236_v34 = vadd.f32 %v5320_v21, %v2235_v8 }
 0x3f3   : > { %v2145_v18 = vpack.c.bf16 %v2124_v59, %v2123_v48  ;;  %v2311_v20 = vmax.f32 %v2236_v34, 0.0 }
 0x3f5   : > { %2277 = vmatmul.bf16.gmra.mxu2 %v2145_v18  ;;  %v2347_v4 = vmul.f32 %v5326_v53, %v2311_v20 }
 0x3f6   : > { %v2078_v40 = vpop.f32.mrf.mxu1 }
 0x3f7   : > { %v2386_v13 = vsel %vm2376_vm0, %v2347_v4, 0.0  ;;  %v2079_v24 = vadd.f32 %v2078_v40, %v1990_v12  ;;  %v2006_v40 = vpop.f32.mrf.mxu0 }
 0x3f8   : > { %v2238_v10 = vpop.f32.mrf.mxu2  ;;  %2387 = vadd.xlane.f32.xlu1 %v2386_v13 }
 0x3f9   : > { %v2239_v25 = vadd.f32 %v5320_v21, %v2238_v10  ;;  %v2125_v16 = vmax.f32 %v2079_v24, 0.0  ;;  %v2007_v24 = vadd.f32 %v5243_v28, %v2006_v40 }
 0x3fb   : > { %v2312_v32 = vmax.f32 %v2239_v25, 0.0 }
 0x3fd   : > { %v2348_v7 = vmul.f32 %v5326_v53, %v2312_v32  ;;  %v2005_v32 = vadd.f32 %v5243_v28, %v2004_v56  ;;  %v5386_v56 = vld [vmem:[#allocation2] ss:$0 sm:$0xff] }
 0x3fe   : > { %v2080_v38 = vpop.f32.mrf.mxu1 }
 0x3ff   : > { %v2081_v37 = vadd.f32 %v2080_v38, %v1992_v17  ;;  %v2389_v49 = vsel %vm2376_vm0, %v2348_v7, 0.0 }
 0x400   : > { %v2240_v0 = vpop.f32.mrf.mxu2  ;;  %2390 = vadd.xlane.f32.xlu2 %v2389_v49 }
 0x401   : > { %v2126_v62 = vmax.f32 %v2081_v37, 0.0  ;;  %v2241_v26 = vadd.f32 %v5320_v21, %v2240_v0  ;;  %v2009_v0 = vpop.f32.mrf.mxu0 }
 0x403   : > { %v2146_v19 = vpack.c.bf16 %v2126_v62, %v2125_v16  ;;  %v2313_v47 = vmax.f32 %v2241_v26, 0.0 }
 0x405   : > { %2282 = vmatmul.bf16.gmra.mxu2 %v2146_v19  ;;  %v2349_v23 = vmul.f32 %v5326_v53, %v2313_v47 }
 0x406   : > { %v2083_v9 = vpop.f32.mrf.mxu1 }
 0x407   : > { %v2392_v35 = vsel %vm2376_vm0, %v2349_v23, 0.0  ;;  %v2084_v29 = vadd.f32 %v2083_v9, %v1995_v46 }
 0x408   : > { %v2243_v63 = vpop.f32.mrf.mxu2  ;;  %2393 = vadd.xlane.f32.xlu2 %v2392_v35 }
 0x409   : > { %v2244_v51 = vadd.f32 %v5320_v21, %v2243_v63  ;;  %v2127_v43 = vmax.f32 %v2084_v29, 0.0  ;;  %v2011_v46 = vpop.f32.mrf.mxu0 }
 0x40a   : > { %v2012_v29 = vadd.f32 %v5243_v28, %v2011_v46 }
 0x40b   : > { %v2314_v15 = vmax.f32 %v2244_v51, 0.0 }
 0x40d   : > { %v2350_v6 = vmul.f32 %v5326_v53, %v2314_v15  ;;  %v2010_v15 = vadd.f32 %v5243_v28, %v2009_v0 }
 0x40e   : > { %v2085_v36 = vpop.f32.mrf.mxu1 }
 0x40f   : > { %v2086_v45 = vadd.f32 %v2085_v36, %v1997_v27  ;;  %v2395_v14 = vsel %vm2376_vm0, %v2350_v6, 0.0 }
 0x410   : > { %v2245_v22 = vpop.f32.mrf.mxu2  ;;  %2396 = vadd.xlane.f32.xlu0 %v2395_v14 }
 0x411   : > { %v2128_v31 = vmax.f32 %v2086_v45, 0.0  ;;  %v2246_v11 = vadd.f32 %v5320_v21, %v2245_v22 }
 0x413   : > { %v2147_v55 = vpack.c.bf16 %v2128_v31, %v2127_v43  ;;  %v2315_v60 = vmax.f32 %v2246_v11, 0.0 }
 0x415   : > { %2287 = vmatmul.bf16.gmra.mxu2 %v2147_v55  ;;  %v2351_v50 = vmul.f32 %v5326_v53, %v2315_v60 }
 0x416   : > { %v2088_v57 = vpop.f32.mrf.mxu1 }
 0x417   : > { %v2398_v42 = vsel %vm2376_vm0, %v2351_v50, 0.0  ;;  %v2089_v58 = vadd.f32 %v2088_v57, %v2000_v33 }
 0x418   : > { %v2248_v44 = vpop.f32.mrf.mxu2  ;;  %2399 = vadd.xlane.f32.xlu1 %v2398_v42 }
 0x419   : > { %v2249_v41 = vadd.f32 %v5320_v21, %v2248_v44  ;;  %v2129_v59 = vmax.f32 %v2089_v58, 0.0 }
 0x41b   : > { %v2316_v54 = vmax.f32 %v2249_v41, 0.0 }
 0x41d   : > { %v2352_v52 = vmul.f32 %v5326_v53, %v2316_v54 }
 0x41e   : > { %v2090_v5 = vpop.f32.mrf.mxu1 }
 0x41f   : > { %v2091_v61 = vadd.f32 %v2090_v5, %v2002_v1  ;;  %v2401_v8 = vsel %vm2376_vm0, %v2352_v52, 0.0 }
 0x420   : > { %v2250_v48 = vpop.f32.mrf.mxu2  ;;  %2402 = vadd.xlane.f32.xlu2 %v2401_v8 }
 0x421   : > { %v2130_v34 = vmax.f32 %v2091_v61, 0.0  ;;  %v2251_v18 = vadd.f32 %v5320_v21, %v2250_v48 }
 0x423   : > { %v2148_v20 = vpack.c.bf16 %v2130_v34, %v2129_v59  ;;  %v2317_v30 = vmax.f32 %v2251_v18, 0.0 }
 0x425   : > { %2292 = vmatmul.bf16.gmra.mxu2 %v2148_v20  ;;  %v2353_v4 = vmul.f32 %v5326_v53, %v2317_v30 }
 0x426   : > { %v2093_v13 = vpop.f32.mrf.mxu1 }
 0x427   : > { %v2404_v10 = vsel %vm2376_vm0, %v2353_v4, 0.0  ;;  %v2094_v7 = vadd.f32 %v2093_v13, %v2005_v32 }
 0x428   : > { %v2253_v25 = vpop.f32.mrf.mxu2  ;;  %2405 = vadd.xlane.f32.xlu0 %v2404_v10 }
 0x429   : > { %v2254_v12 = vadd.f32 %v5320_v21, %v2253_v25  ;;  %v2131_v62 = vmax.f32 %v2094_v7, 0.0  ;;  %v4112_v25 = vmov 0  }
 0x42a   : > { %3922 = vset.pattern.permute.xlu2 %v4112_v25  ;;  %3923 = vset.pattern.permute.xlu0 %v4112_v25 }
 0x42b   : > { %v2318_v17 = vmax.f32 %v2254_v12, 0.0  ;;  %3924 = vset.pattern.permute.xlu1 %v4112_v25 }
 0x42d   : > { %v2354_v39 = vmul.f32 %v5326_v53, %v2318_v17 }
 0x42e   : > { %v2095_v38 = vpop.f32.mrf.mxu1 }
 0x42f   : > { %v2096_v37 = vadd.f32 %v2095_v38, %v2007_v24  ;;  %v2407_v49 = vsel %vm2376_vm0, %v2354_v39, 0.0 }
 0x430   : > { %v2255_v16 = vpop.f32.mrf.mxu2  ;;  %2408 = vadd.xlane.f32.xlu1 %v2407_v49 }
 0x431   : > { %v2132_v26 = vmax.f32 %v2096_v37, 0.0  ;;  %v2256_v19 = vadd.f32 %v5320_v21, %v2255_v16 }
 0x433   : > { %v2149_v47 = vpack.c.bf16 %v2132_v26, %v2131_v62  ;;  %v2319_v23 = vmax.f32 %v2256_v19, 0.0 }
 0x435   : > { %2297 = vmatmul.bf16.gmra.mxu2 %v2149_v47  ;;  %v2355_v9 = vmul.f32 %v5326_v53, %v2319_v23 }
 0x436   : > { %v2098_v35 = vpop.f32.mrf.mxu1 }
 0x437   : > { %v2410_v3 = vsel %vm2376_vm0, %v2355_v9, 0.0  ;;  %v2099_v6 = vadd.f32 %v2098_v35, %v2010_v15 }
 0x438   : > { %v2258_v63 = vpop.f32.mrf.mxu2  ;;  %2411 = vadd.xlane.f32.xlu2 %v2410_v3 }
 0x439   : > { %v2259_v51 = vadd.f32 %v5320_v21, %v2258_v63  ;;  %v2133_v31 = vmax.f32 %v2099_v6, 0.0 }
 0x43b   : > { %v2320_v27 = vmax.f32 %v2259_v51, 0.0 }
 0x43d   : > { %v2356_v36 = vmul.f32 %v5326_v53, %v2320_v27 }
 0x43e   : > { %v2100_v45 = vpop.f32.mrf.mxu1 }
 0x43f   : > { %v2101_v14 = vadd.f32 %v2100_v45, %v2012_v29  ;;  %v2413_v22 = vsel %vm2376_vm0, %v2356_v36, 0.0 }
 0x440   : > { %v2260_v43 = vpop.f32.mrf.mxu2  ;;  %2414 = vadd.xlane.f32.xlu0 %v2413_v22 }
 0x441   : > { %v2134_v11 = vmax.f32 %v2101_v14, 0.0  ;;  %v2261_v2 = vadd.f32 %v5320_v21, %v2260_v43 }
 0x443   : > { %v2150_v55 = vpack.c.bf16 %v2134_v11, %v2133_v31  ;;  %v2321_v60 = vmax.f32 %v2261_v2, 0.0 }
 0x445   : > { %2302 = vmatmul.bf16.gmra.mxu2 %v2150_v55  ;;  %v2357_v50 = vmul.f32 %v5326_v53, %v2321_v60 }
 0x447   : > { %v2416_v28 = vsel %vm2376_vm0, %v2357_v50, 0.0 }
 0x448   : > { %v2263_v57 = vpop.f32.mrf.mxu2  ;;  %2417 = vadd.xlane.f32.xlu1 %v2416_v28 }
 0x449   : > { %v2264_v42 = vadd.f32 %v5320_v21, %v2263_v57 }
 0x44b   : > { %v2322_v44 = vmax.f32 %v2264_v42, 0.0 }
 0x44d   : > { %v2358_v41 = vmul.f32 %v5326_v53, %v2322_v44 }
 0x44f   : > { %v2419_v33 = vsel %vm2376_vm0, %v2358_v41, 0.0 }
 0x450   : > { %v2265_v54 = vpop.f32.mrf.mxu2  ;;  %2420 = vadd.xlane.f32.xlu2 %v2419_v33 }
 0x451   : > { %v2266_v1 = vadd.f32 %v5320_v21, %v2265_v54 }
 0x453   : > { %v2323_v58 = vmax.f32 %v2266_v1, 0.0  ;;  %v2379_v52 = vpop.xlane.xlu0 %2378 }
 0x454   : > { %v2477_v5 = vadd.f32 %v5386_v56, %v2379_v52 }
 0x455   : > { %v2359_v61 = vmul.f32 %v5326_v53, %v2323_v58 }
 0x456   : > { %v2541_v8 = vrot.slane %v2477_v5, 1  ;;  %v2542_v48 = vrot.slane %v2477_v5, 2  ;;  %v2543_v59 = vrot.slane %v2477_v5, 3  ;;  %2765 = vst [vmem:[#allocation1] ss:$9 sm:$0xff] %v2477_v5  ;;  %v2544_v34 = vrot.slane %v2477_v5, 4 }
 0x457   : > { %v2422_v18 = vsel %vm2376_vm0, %v2359_v61, 0.0  ;;  %v2545_v20 = vrot.slane %v2477_v5, 5  ;;  %v2546_v4 = vrot.slane %v2477_v5, 6  ;;  %v2547_v13 = vrot.slane %v2477_v5, 7 }
 0x458   : > { %2767 = vst [vmem:[#allocation1 + $0x1] ss:$9 sm:$0xff] %v2541_v8  ;;  %v2268_v30 = vpop.f32.mrf.mxu2  ;;  %2423 = vadd.xlane.f32.xlu0 %v2422_v18 }
 0x459   : > { %2769 = vst [vmem:[#allocation1 + $0x2] ss:$9 sm:$0xff] %v2542_v48  ;;  %v2269_v40 = vadd.f32 %v5320_v21, %v2268_v30 }
 0x45a   : > { %2771 = vst [vmem:[#allocation1 + $0x3] ss:$9 sm:$0xff] %v2543_v59 }
 0x45b   : > { %2773 = vst [vmem:[#allocation1 + $0x4] ss:$9 sm:$0xff] %v2544_v34  ;;  %v2324_v10 = vmax.f32 %v2269_v40, 0.0  ;;  %v2382_v12 = vpop.xlane.xlu0 %2381 }
 0x45c   : > { %2775 = vst [vmem:[#allocation1 + $0x5] ss:$9 sm:$0xff] %v2545_v20  ;;  %v2478_v17 = vadd.f32 %v5386_v56, %v2382_v12 }
 0x45d   : > { %2777 = vst [vmem:[#allocation1 + $0x6] ss:$9 sm:$0xff] %v2546_v4  ;;  %v2360_v32 = vmul.f32 %v5326_v53, %v2324_v10 }
 0x45e   : > { %2779 = vst [vmem:[#allocation1 + $0x7] ss:$9 sm:$0xff] %v2547_v13  ;;  %v2548_v7 = vrot.slane %v2478_v17, 1  ;;  %v2549_v39 = vrot.slane %v2478_v17, 2  ;;  %v2550_v37 = vrot.slane %v2478_v17, 3  ;;  %v2551_v49 = vrot.slane %v2478_v17, 4 }
 0x45f   : > { %v2425_v24 = vsel %vm2376_vm0, %v2360_v32, 0.0  ;;  %v2552_v0 = vrot.slane %v2478_v17, 5  ;;  %v2553_v16 = vrot.slane %v2478_v17, 6  ;;  %v2554_v62 = vrot.slane %v2478_v17, 7 }
 0x460   : > { %2426 = vadd.xlane.f32.xlu1 %v2425_v24  ;;  %v2270_v51 = vpop.f32.mrf.mxu2 }
 0x461   : > { %v2271_v43 = vadd.f32 %v5320_v21, %v2270_v51 }
 0x463   : > { %v2385_v26 = vpop.xlane.xlu1 %2384  ;;  %v2325_v60 = vmax.f32 %v2271_v43, 0.0 }
 0x464   : > { %v2479_v19 = vadd.f32 %v5386_v56, %v2385_v26 }
 0x465   : > { %v2780_v38 = vld [vmem:[#allocation1] sm:$0xff]  ;;  %v2361_v42 = vmul.f32 %v5326_v53, %v2325_v60 }
 0x466   : > { %2781 = vst [vmem:[#allocation1] ss:$9 sm:$0xff] %v2478_v17  ;;  %v2555_v47 = vrot.slane %v2479_v19, 1  ;;  %v2556_v23 = vrot.slane %v2479_v19, 2  ;;  %v2557_v35 = vrot.slane %v2479_v19, 3  ;;  %v2558_v3 = vrot.slane %v2479_v19, 4 }
 0x467   : > { %2782 = vst [vmem:[#allocation1 + $0x1] ss:$9 sm:$0xff] %v2548_v7  ;;  %v2559_v63 = vrot.slane %v2479_v19, 5  ;;  %v2560_v46 = vrot.slane %v2479_v19, 6  ;;  %v2561_v15 = vrot.slane %v2479_v19, 7  ;;  %v2428_v41 = vsel %vm2376_vm0, %v2361_v42, 0.0 }
 0x468   : > { %2783 = vst [vmem:[#allocation1 + $0x2] ss:$9 sm:$0xff] %v2549_v39  ;;  %3061 = vperm.xlu2 %3922, %v2780_v38   ;;  %v2273_v6 = vpop.f32.mrf.mxu2 }
 0x469   : > { %2784 = vst [vmem:[#allocation1 + $0x3] ss:$9 sm:$0xff] %v2550_v37  ;;  %v2274_v54 = vadd.f32 %v5320_v21, %v2273_v6 }
 0x46a   : > { %2785 = vst [vmem:[#allocation1 + $0x4] ss:$9 sm:$0xff] %v2551_v49 }
 0x46b   : > { %2786 = vst [vmem:[#allocation1 + $0x5] ss:$9 sm:$0xff] %v2552_v0  ;;  %v2388_v27 = vpop.xlane.xlu1 %2387  ;;  %v2326_v48 = vmax.f32 %v2274_v54, 0.0 }
 0x46c   : > { %2787 = vst [vmem:[#allocation1 + $0x6] ss:$9 sm:$0xff] %v2553_v16  ;;  %v2480_v29 = vadd.f32 %v5386_v56, %v2388_v27 }
 0x46d   : > { %2788 = vst [vmem:[#allocation1 + $0x7] ss:$9 sm:$0xff] %v2554_v62  ;;  %v2362_v18 = vmul.f32 %v5326_v53, %v2326_v48 }
 0x46e   : > { %v2562_v36 = vrot.slane %v2480_v29, 1  ;;  %v2563_v45 = vrot.slane %v2480_v29, 2  ;;  %v2564_v22 = vrot.slane %v2480_v29, 3  ;;  %v2565_v31 = vrot.slane %v2480_v29, 4 }
 0x46f   : > { %v2566_v11 = vrot.slane %v2480_v29, 5  ;;  %v2567_v2 = vrot.slane %v2480_v29, 6  ;;  %v2568_v55 = vrot.slane %v2480_v29, 7  ;;  %v2431_v30 = vsel %vm2376_vm0, %v2362_v18, 0.0 }
 0x470   : > { %v2275_v28 = vpop.f32.mrf.mxu2 }
 0x471   : > { %v2276_v10 = vadd.f32 %v5320_v21, %v2275_v28 }
 0x473   : > { %v2391_v50 = vpop.xlane.xlu2 %2390  ;;  %v2327_v39 = vmax.f32 %v2276_v10, 0.0 }
 0x474   : > { %v2789_v9 = vld [vmem:[#allocation1] sm:$0xff]  ;;  %v2481_v57 = vadd.f32 %v5386_v56, %v2391_v50 }
 0x475   : > { %2790 = vst [vmem:[#allocation1] ss:$9 sm:$0xff] %v2479_v19  ;;  %3064 = vperm.xlu0 %3923, %v2789_v9   ;;  %v2363_v0 = vmul.f32 %v5326_v53, %v2327_v39 }
 0x476   : > { %2791 = vst [vmem:[#allocation1 + $0x1] ss:$9 sm:$0xff] %v2555_v47  ;;  %v2569_v44 = vrot.slane %v2481_v57, 1  ;;  %v2570_v33 = vrot.slane %v2481_v57, 2  ;;  %v2571_v58 = vrot.slane %v2481_v57, 3  ;;  %v2572_v52 = vrot.slane %v2481_v57, 4 }
 0x477   : > { %2792 = vst [vmem:[#allocation1 + $0x2] ss:$9 sm:$0xff] %v2556_v23  ;;  %v2573_v5 = vrot.slane %v2481_v57, 5  ;;  %v2574_v61 = vrot.slane %v2481_v57, 6  ;;  %v2575_v59 = vrot.slane %v2481_v57, 7  ;;  %v2434_v47 = vsel %vm2376_vm0, %v2363_v0, 0.0 }
 0x478   : > { %2793 = vst [vmem:[#allocation1 + $0x3] ss:$9 sm:$0xff] %v2557_v35  ;;  %v5403_v8 = vpop.f32.mrf.mxu2 }
 0x479   : > { %2794 = vst [vmem:[#allocation1 + $0x4] ss:$9 sm:$0xff] %v2558_v3  ;;  %v2279_v50 = vadd.f32 %v5320_v21, %v5403_v8 }
 0x47a   : > { %2795 = vst [vmem:[#allocation1 + $0x5] ss:$9 sm:$0xff] %v2559_v63 }
 0x47b   : > { %2796 = vst [vmem:[#allocation1 + $0x6] ss:$9 sm:$0xff] %v2560_v46  ;;  %v2394_v34 = vpop.xlane.xlu2 %2393 }
 0x47c   : > { %2797 = vst [vmem:[#allocation1 + $0x7] ss:$9 sm:$0xff] %v2561_v15  ;;  %v2482_v20 = vadd.f32 %v5386_v56, %v2394_v34 }
 0x47e   : > { %v2576_v4 = vrot.slane %v2482_v20, 1  ;;  %v2577_v13 = vrot.slane %v2482_v20, 2  ;;  %v2578_v12 = vrot.slane %v2482_v20, 3  ;;  %v2579_v32 = vrot.slane %v2482_v20, 4 }
 0x47f   : > { %v2580_v24 = vrot.slane %v2482_v20, 5  ;;  %v2581_v7 = vrot.slane %v2482_v20, 6  ;;  %v2582_v38 = vrot.slane %v2482_v20, 7 }
 0x480   : > { %v2280_v40 = vpop.f32.mrf.mxu2 }
 0x481   : > { %v2281_v17 = vadd.f32 %v5320_v21, %v2280_v40 }
 0x483   : > { %v2798_v14 = vld [vmem:[#allocation1] sm:$0xff]  ;;  %v2329_v37 = vmax.f32 %v2281_v17, 0.0  ;;  %v2397_v49 = vpop.xlane.xlu0 %2396 }
 0x484   : > { %2799 = vst [vmem:[#allocation1] ss:$9 sm:$0xff] %v2480_v29  ;;  %3067 = vperm.xlu1 %3924, %v2798_v14   ;;  %v2483_v16 = vadd.f32 %v5386_v56, %v2397_v49 }
 0x485   : > { %2800 = vst [vmem:[#allocation1 + $0x1] ss:$9 sm:$0xff] %v2562_v36  ;;  %v2365_v26 = vmul.f32 %v5326_v53, %v2329_v37 }
 0x486   : > { %2801 = vst [vmem:[#allocation1 + $0x2] ss:$9 sm:$0xff] %v2563_v45  ;;  %v2583_v23 = vrot.slane %v2483_v16, 1  ;;  %v2584_v9 = vrot.slane %v2483_v16, 2  ;;  %v2585_v3 = vrot.slane %v2483_v16, 3  ;;  %v2586_v63 = vrot.slane %v2483_v16, 4 }
 0x487   : > { %2802 = vst [vmem:[#allocation1 + $0x3] ss:$9 sm:$0xff] %v2564_v22  ;;  %v2440_v19 = vsel %vm2376_vm0, %v2365_v26, 0.0  ;;  %v2587_v51 = vrot.slane %v2483_v16, 5  ;;  %v2588_v46 = vrot.slane %v2483_v16, 6  ;;  %v2589_v15 = vrot.slane %v2483_v16, 7 }
 0x488   : > { %2803 = vst [vmem:[#allocation1 + $0x4] ss:$9 sm:$0xff] %v2565_v31  ;;  %v5414_v62 = vpop.f32.mrf.mxu2 }
 0x489   : > { %2804 = vst [vmem:[#allocation1 + $0x5] ss:$9 sm:$0xff] %v2566_v11 }
 0x48a   : > { %2805 = vst [vmem:[#allocation1 + $0x6] ss:$9 sm:$0xff] %v2567_v2 }
 0x48b   : > { %2806 = vst [vmem:[#allocation1 + $0x7] ss:$9 sm:$0xff] %v2568_v55  ;;  %v2400_v29 = vpop.xlane.xlu1 %2399 }
 0x48c   : > { %v2484_v6 = vadd.f32 %v5386_v56, %v2400_v29 }
 0x48e   : > { %v2590_v36 = vrot.slane %v2484_v6, 1  ;;  %v2591_v45 = vrot.slane %v2484_v6, 2  ;;  %v2592_v43 = vrot.slane %v2484_v6, 3  ;;  %v2593_v31 = vrot.slane %v2484_v6, 4 }
 0x48f   : > { %v2594_v11 = vrot.slane %v2484_v6, 5  ;;  %v2595_v55 = vrot.slane %v2484_v6, 6  ;;  %v2596_v60 = vrot.slane %v2484_v6, 7 }
 0x490   : > { %v5419_v27 = vpop.f32.mrf.mxu2 }
 0x491   : > { %2429 = vadd.xlane.f32.xlu2 %v2428_v41 }
 0x492   : > { %v2807_v1 = vld [vmem:[#allocation1] sm:$0xff] }
 0x493   : > { %2808 = vst [vmem:[#allocation1] ss:$9 sm:$0xff] %v2481_v57  ;;  %v2403_v28 = vpop.xlane.xlu2 %2402 }
 0x494   : > { %2809 = vst [vmem:[#allocation1 + $0x1] ss:$9 sm:$0xff] %v2569_v44  ;;  %v2485_v42 = vadd.f32 %v5386_v56, %v2403_v28  ;;  %v2328_v44 = vmax.f32 %v2279_v50, 0.0 }
 0x495   : > { %2810 = vst [vmem:[#allocation1 + $0x2] ss:$9 sm:$0xff] %v2570_v33 }
 0x496   : > { %2811 = vst [vmem:[#allocation1 + $0x3] ss:$9 sm:$0xff] %v2571_v58  ;;  %v2597_v33 = vrot.slane %v2485_v42, 1  ;;  %v2364_v58 = vmul.f32 %v5326_v53, %v2328_v44  ;;  %v2601_v8 = vrot.slane %v2485_v42, 5  ;;  %v2602_v48 = vrot.slane %v2485_v42, 6 }
 0x497   : > { %2812 = vst [vmem:[#allocation1 + $0x4] ss:$9 sm:$0xff] %v2572_v52  ;;  %v2603_v34 = vrot.slane %v2485_v42, 7 }
 0x498   : > { %2813 = vst [vmem:[#allocation1 + $0x5] ss:$9 sm:$0xff] %v2573_v5  ;;  %v2288_v14 = vpop.f32.mrf.mxu2  ;;  %v2599_v5 = vrot.slane %v2485_v42, 3 }
 0x499   : > { %2814 = vst [vmem:[#allocation1 + $0x6] ss:$9 sm:$0xff] %v2574_v61  ;;  %v2289_v2 = vadd.f32 %v5320_v21, %v2288_v14  ;;  %v2600_v61 = vrot.slane %v2485_v42, 4 }
 0x49a   : > { %2815 = vst [vmem:[#allocation1 + $0x7] ss:$9 sm:$0xff] %v2575_v59  ;;  %v2437_v59 = vsel %vm2376_vm0, %v2364_v58, 0.0 }
 0x49b   : > { %v2332_v57 = vmax.f32 %v2289_v2, 0.0  ;;  %v2406_v18 = vpop.xlane.xlu0 %2405 }
 0x49d   : > { %v2368_v41 = vmul.f32 %v5326_v53, %v2332_v57 }
 0x49f   : > { %2432 = vadd.xlane.f32.xlu0 %v2431_v30  ;;  %v2449_v54 = vsel %vm2376_vm0, %v2368_v41, 0.0 }
 0x4a1   : > { %v5409_v25 = vld [vmem:[#allocation1] sm:$0xff] }
 0x4a2   : > { %2817 = vst [vmem:[#allocation1] ss:$9 sm:$0xff] %v2482_v20  ;;  %v2486_v20 = vadd.f32 %v5386_v56, %v2406_v18 }
 0x4a3   : > { %2818 = vst [vmem:[#allocation1 + $0x1] ss:$9 sm:$0xff] %v2576_v4 }
 0x4a4   : > { %2819 = vst [vmem:[#allocation1 + $0x2] ss:$9 sm:$0xff] %v2577_v13  ;;  %v2604_v30 = vrot.slane %v2486_v20, 1  ;;  %v2605_v4 = vrot.slane %v2486_v20, 2  ;;  %v2606_v13 = vrot.slane %v2486_v20, 3  ;;  %v2607_v10 = vrot.slane %v2486_v20, 4 }
 0x4a5   : > { %2820 = vst [vmem:[#allocation1 + $0x3] ss:$9 sm:$0xff] %v2578_v12  ;;  %v2608_v12 = vrot.slane %v2486_v20, 5  ;;  %v2610_v17 = vrot.slane %v2486_v20, 7 }
 0x4a6   : > { %2821 = vst [vmem:[#allocation1 + $0x4] ss:$9 sm:$0xff] %v2579_v32  ;;  %v2609_v32 = vrot.slane %v2486_v20, 6 }
 0x4a7   : > { %2822 = vst [vmem:[#allocation1 + $0x5] ss:$9 sm:$0xff] %v2580_v24  ;;  %2441 = vadd.xlane.f32.xlu0 %v2440_v19  ;;  %v2409_v24 = vpop.xlane.xlu1 %2408 }
 0x4a8   : > { %2823 = vst [vmem:[#allocation1 + $0x6] ss:$9 sm:$0xff] %v2581_v7  ;;  %v2284_v7 = vadd.f32 %v5320_v21, %v5414_v62  ;;  %v2487_v39 = vadd.f32 %v5386_v56, %v2409_v24 }
 0x4a9   : > { %2824 = vst [vmem:[#allocation1 + $0x7] ss:$9 sm:$0xff] %v2582_v38  ;;  %3070 = vperm.xlu2 %3922, %v2807_v1   ;;  %v2598_v1 = vrot.slane %v2485_v42, 2 }
 0x4aa   : > { %v2330_v38 = vmax.f32 %v2284_v7, 0.0  ;;  %v2611_v37 = vrot.slane %v2487_v39, 1  ;;  %v2612_v49 = vrot.slane %v2487_v39, 2  ;;  %v2613_v26 = vrot.slane %v2487_v39, 3 }
 0x4ab   : > { %v2616_v62 = vrot.slane %v2487_v39, 6 }
 0x4ac   : > { %v2366_v19 = vmul.f32 %v5326_v53, %v2330_v38 }
 0x4ae   : > { %2435 = vadd.xlane.f32.xlu1 %v2434_v47  ;;  %v2614_v47 = vrot.slane %v2487_v39, 4 }
 0x4af   : > { %2450 = vadd.xlane.f32.xlu0 %v2449_v54  ;;  %v2286_v54 = vadd.f32 %v5320_v21, %v5419_v27 }
 0x4b0   : > { %v2825_v35 = vld [vmem:[#allocation1] sm:$0xff] }
 0x4b1   : > { %2826 = vst [vmem:[#allocation1] ss:$9 sm:$0xff] %v2483_v16  ;;  %v5441_v16 = vpop.f32.mrf.mxu2 }
 0x4b2   : > { %2827 = vst [vmem:[#allocation1 + $0x1] ss:$9 sm:$0xff] %v2583_v23  ;;  %v2615_v23 = vrot.slane %v2487_v39, 5 }
 0x4b3   : > { %2828 = vst [vmem:[#allocation1 + $0x2] ss:$9 sm:$0xff] %v2584_v9  ;;  %v2617_v9 = vrot.slane %v2487_v39, 7 }
 0x4b4   : > { %2829 = vst [vmem:[#allocation1 + $0x3] ss:$9 sm:$0xff] %v2585_v3 }
 0x4b5   : > { %2830 = vst [vmem:[#allocation1 + $0x4] ss:$9 sm:$0xff] %v2586_v63 }
 0x4b6   : > { %2831 = vst [vmem:[#allocation1 + $0x5] ss:$9 sm:$0xff] %v2587_v51 }
 0x4b7   : > { %2832 = vst [vmem:[#allocation1 + $0x6] ss:$9 sm:$0xff] %v2588_v46 }
 0x4b8   : > { %2833 = vst [vmem:[#allocation1 + $0x7] ss:$9 sm:$0xff] %v2589_v15 }
 0x4b9   : > { %v5447_v63 = vpop.f32.mrf.mxu2 }
 0x4bb   : > { %v2418_v58 = vpop.xlane.xlu1 %2417 }
 0x4bf   : > { %v5422_v22 = vld [vmem:[#allocation1] sm:$0xff] }
 0x4c0   : > { %2835 = vst [vmem:[#allocation1] ss:$9 sm:$0xff] %v2484_v6 }
 0x4c1   : > { %2836 = vst [vmem:[#allocation1 + $0x1] ss:$9 sm:$0xff] %v2590_v36 }
 0x4c2   : > { %2837 = vst [vmem:[#allocation1 + $0x2] ss:$9 sm:$0xff] %v2591_v45 }
 0x4c3   : > { %2838 = vst [vmem:[#allocation1 + $0x3] ss:$9 sm:$0xff] %v2592_v43  ;;  %v2415_v43 = vpop.xlane.xlu0 %2414 }
 0x4c4   : > { %2839 = vst [vmem:[#allocation1 + $0x4] ss:$9 sm:$0xff] %v2593_v31 }
 0x4c5   : > { %2840 = vst [vmem:[#allocation1 + $0x5] ss:$9 sm:$0xff] %v2594_v11  ;;  %v2489_v11 = vadd.f32 %v5386_v56, %v2415_v43 }
 0x4c6   : > { %2841 = vst [vmem:[#allocation1 + $0x6] ss:$9 sm:$0xff] %v2595_v55 }
 0x4c7   : > { %2842 = vst [vmem:[#allocation1 + $0x7] ss:$9 sm:$0xff] %v2596_v60  ;;  %3076 = vperm.xlu1 %3924, %v2825_v35   ;;  %v2443_v35 = vsel %vm2376_vm0, %v2366_v19, 0.0  ;;  %v2625_v55 = vrot.slane %v2489_v11, 1  ;;  %v2626_v60 = vrot.slane %v2489_v11, 2  ;;  %v2627_v28 = vrot.slane %v2489_v11, 3 }
 0x4c8   : > { %v2628_v57 = vrot.slane %v2489_v11, 4  ;;  %v2629_v44 = vrot.slane %v2489_v11, 5  ;;  %v2630_v41 = vrot.slane %v2489_v11, 6 }
 0x4cb   : > { %v2424_v19 = vpop.xlane.xlu0 %2423 }
 0x4ce   : > { %v5431_v52 = vld [vmem:[#allocation1] sm:$0xff] }
 0x4cf   : > { %2844 = vst [vmem:[#allocation1] ss:$9 sm:$0xff] %v2485_v42 }
 0x4d0   : > { %2845 = vst [vmem:[#allocation1 + $0x1] ss:$9 sm:$0xff] %v2597_v33 }
 0x4d1   : > { %2846 = vst [vmem:[#allocation1 + $0x2] ss:$9 sm:$0xff] %v2598_v1  ;;  %v2631_v1 = vrot.slane %v2489_v11, 7 }
 0x4d2   : > { %2847 = vst [vmem:[#allocation1 + $0x3] ss:$9 sm:$0xff] %v2599_v5  ;;  %2438 = vadd.xlane.f32.xlu2 %v2437_v59  ;;  %v2490_v5 = vadd.f32 %v5386_v56, %v2418_v58 }
 0x4d3   : > { %2848 = vst [vmem:[#allocation1 + $0x4] ss:$9 sm:$0xff] %v2600_v61 }
 0x4d4   : > { %2849 = vst [vmem:[#allocation1 + $0x5] ss:$9 sm:$0xff] %v2601_v8  ;;  %v2632_v8 = vrot.slane %v2490_v5, 1  ;;  %v2635_v18 = vrot.slane %v2490_v5, 4 }
 0x4d5   : > { %2850 = vst [vmem:[#allocation1 + $0x6] ss:$9 sm:$0xff] %v2602_v48  ;;  %v2633_v48 = vrot.slane %v2490_v5, 2 }
 0x4d6   : > { %2851 = vst [vmem:[#allocation1 + $0x7] ss:$9 sm:$0xff] %v2603_v34  ;;  %v2634_v34 = vrot.slane %v2490_v5, 3 }
 0x4dd   : > { %v2852_v40 = vld [vmem:[#allocation1] sm:$0xff] }
 0x4de   : > { %2853 = vst [vmem:[#allocation1] ss:$9 sm:$0xff] %v2486_v20  ;;  %3085 = vperm.xlu0 %3923, %v2852_v40   ;;  %v2636_v20 = vrot.slane %v2490_v5, 5 }
 0x4df   : > { %2854 = vst [vmem:[#allocation1 + $0x1] ss:$9 sm:$0xff] %v2604_v30  ;;  %v2637_v30 = vrot.slane %v2490_v5, 6 }
 0x4e0   : > { %2855 = vst [vmem:[#allocation1 + $0x2] ss:$9 sm:$0xff] %v2605_v4  ;;  %v2638_v4 = vrot.slane %v2490_v5, 7 }
 0x4e1   : > { %2856 = vst [vmem:[#allocation1 + $0x3] ss:$9 sm:$0xff] %v2606_v13 }
 0x4e2   : > { %2857 = vst [vmem:[#allocation1 + $0x4] ss:$9 sm:$0xff] %v2607_v10  ;;  %v2291_v10 = vadd.f32 %v5320_v21, %v5441_v16 }
 0x4e3   : > { %2858 = vst [vmem:[#allocation1 + $0x5] ss:$9 sm:$0xff] %v2608_v12 }
 0x4e4   : > { %2859 = vst [vmem:[#allocation1 + $0x6] ss:$9 sm:$0xff] %v2609_v32  ;;  %v2333_v38 = vmax.f32 %v2291_v10, 0.0 }
 0x4e5   : > { %2860 = vst [vmem:[#allocation1 + $0x7] ss:$9 sm:$0xff] %v2610_v17 }
 0x4ea   : > { %3073 = vperm.xlu2 %3922, %v5409_v25   ;;  %v2412_v25 = vpop.xlane.xlu2 %2411 }
 0x4eb   : > { %v2488_v3 = vadd.f32 %v5386_v56, %v2412_v25 }
 0x4ec   : > { %v5439_v0 = vld [vmem:[#allocation1] sm:$0xff] }
 0x4ed   : > { %2862 = vst [vmem:[#allocation1] ss:$9 sm:$0xff] %v2487_v39  ;;  %v2618_v51 = vrot.slane %v2488_v3, 1  ;;  %v2619_v46 = vrot.slane %v2488_v3, 2  ;;  %v2620_v29 = vrot.slane %v2488_v3, 3  ;;  %v2621_v6 = vrot.slane %v2488_v3, 4 }
 0x4ee   : > { %2863 = vst [vmem:[#allocation1 + $0x1] ss:$9 sm:$0xff] %v2611_v37  ;;  %v2622_v36 = vrot.slane %v2488_v3, 5  ;;  %v2623_v45 = vrot.slane %v2488_v3, 6  ;;  %v2624_v14 = vrot.slane %v2488_v3, 7 }
 0x4ef   : > { %2864 = vst [vmem:[#allocation1 + $0x2] ss:$9 sm:$0xff] %v2612_v49 }
 0x4f0   : > { %2865 = vst [vmem:[#allocation1 + $0x3] ss:$9 sm:$0xff] %v2613_v26  ;;  %v3156_v26 = vlaneseq }
 0x4f1   : > { %2866 = vst [vmem:[#allocation1 + $0x4] ss:$9 sm:$0xff] %v2614_v47  ;;  %2444 = vadd.xlane.f32.xlu1 %v2443_v35  ;;  %v2427_v47 = vpop.xlane.xlu1 %2426 }
 0x4f2   : > { %2867 = vst [vmem:[#allocation1 + $0x5] ss:$9 sm:$0xff] %v2615_v23  ;;  %3079 = vperm.xlu2 %3922, %v5422_v22   ;;  %v2295_v22 = vpop.f32.mrf.mxu2  ;;  %v2421_v40 = vpop.xlane.xlu2 %2420  ;;  %v5477_v23 = vand.u32 127, %v3156_v26 }
 0x4f3   : > { %2868 = vst [vmem:[#allocation1 + $0x6] ss:$9 sm:$0xff] %v2616_v62  ;;  %v2296_v31 = vadd.f32 %v5320_v21, %v2295_v22  ;;  %v5473_v21 = vld [vmem:[%s5698_s7] ss:$0 sm:$0xff] }
 0x4f4   : > { %2869 = vst [vmem:[#allocation1 + $0x7] ss:$9 sm:$0xff] %v2617_v9  ;;  %v2369_v16 = vmul.f32 %v5473_v21, %v2333_v38  ;;  %v2492_v9 = vadd.f32 %v5386_v56, %v2424_v19  ;;  %v5483_v25 = vadd.s32 4294967288, %v5477_v23 }
 0x4f5   : > { %v2335_v2 = vmax.f32 %v2296_v31, 0.0 }
 0x4f6   : > { %v2648_v43 = vrot.slane %v2492_v9, 3 }
 0x4f7   : > { %v2371_v42 = vmul.f32 %v5326_v53, %v2335_v2  ;;  %v2650_v2 = vrot.slane %v2492_v9, 5 }
 0x4f9   : > { %v2458_v33 = vsel %vm2376_vm0, %v2371_v42, 0.0 }
 0x4fa   : > { %v5466_v32 = vpop.f32.mrf.mxu2  ;;  %v3062_v62 = vpop.permute.xlu2 %3061 }
 0x4fb   : > { %v5449_v15 = vld [vmem:[#allocation1] sm:$0xff] }
 0x4fc   : > { %2871 = vst [vmem:[#allocation1] ss:$9 sm:$0xff] %v2488_v3  ;;  %v2452_v3 = vsel %vm2376_vm0, %v2369_v16, 0.0 }
 0x4fd   : > { %2872 = vst [vmem:[#allocation1 + $0x1] ss:$9 sm:$0xff] %v2618_v51  ;;  %v3158_v51 = vperm.slane %v3062_v62, %v5477_v23 }
 0x4fe   : > { %2873 = vst [vmem:[#allocation1 + $0x2] ss:$9 sm:$0xff] %v2619_v46  ;;  %v3065_v46 = vpop.permute.xlu0 %3064 }
 0x4ff   : > { %2874 = vst [vmem:[#allocation1 + $0x3] ss:$9 sm:$0xff] %v2620_v29  ;;  %v2646_v29 = vrot.slane %v2492_v9, 1 }
 0x500   : > { %2875 = vst [vmem:[#allocation1 + $0x4] ss:$9 sm:$0xff] %v2621_v6  ;;  %v3160_v6 = vperm.slane %v3065_v46, %v5483_v25 }
 0x501   : > { %2876 = vst [vmem:[#allocation1 + $0x5] ss:$9 sm:$0xff] %v2622_v36  ;;  %v5490_v36 = vadd.s32 4294967280, %v5477_v23 }
 0x502   : > { %2877 = vst [vmem:[#allocation1 + $0x6] ss:$9 sm:$0xff] %v2623_v45  ;;  %v5480_v35 = vpop.f32.mrf.mxu2  ;;  %v3068_v45 = vpop.permute.xlu1 %3067  ;;  %v3162_v31 = vsel %vm3161_vm1, %v3160_v6, %v3158_v51 }
 0x503   : > { %2878 = vst [vmem:[#allocation1 + $0x7] ss:$9 sm:$0xff] %v2624_v14  ;;  %v2647_v14 = vrot.slane %v2492_v9, 2 }
 0x508   : > { %2459 = vadd.xlane.f32.xlu0 %v2458_v33 }
 0x50a   : > { %v2879_v50 = vld [vmem:[#allocation1] sm:$0xff]  ;;  %3082 = vperm.xlu1 %3924, %v5431_v52   ;;  %v2331_v52 = vmax.f32 %v2286_v54, 0.0 }
 0x50b   : > { %2880 = vst [vmem:[#allocation1] ss:$9 sm:$0xff] %v2489_v11  ;;  %v2649_v11 = vrot.slane %v2492_v9, 4 }
 0x50c   : > { %2881 = vst [vmem:[#allocation1 + $0x1] ss:$9 sm:$0xff] %v2625_v55  ;;  %v2367_v61 = vmul.f32 %v5326_v53, %v2331_v52  ;;  %v2491_v53 = vadd.f32 %v5386_v56, %v2421_v40  ;;  %v5513_v40 = vadd.s32 4294967272, %v5477_v23 }
 0x50d   : > { %2882 = vst [vmem:[#allocation1 + $0x2] ss:$9 sm:$0xff] %v2626_v60  ;;  %v2651_v60 = vrot.slane %v2492_v9, 6 }
 0x50e   : > { %2883 = vst [vmem:[#allocation1 + $0x3] ss:$9 sm:$0xff] %v2627_v28  ;;  %v2446_v27 = vsel %vm2376_vm0, %v2367_v61, 0.0  ;;  %v2639_v13 = vrot.slane %v2491_v53, 1  ;;  %v2640_v12 = vrot.slane %v2491_v53, 2  ;;  %v2641_v24 = vrot.slane %v2491_v53, 3  ;;  %v2303_v28 = vpop.f32.mrf.mxu2 }
 0x50f   : > { %2884 = vst [vmem:[#allocation1 + $0x4] ss:$9 sm:$0xff] %v2628_v57  ;;  %v2642_v7 = vrot.slane %v2491_v53, 4  ;;  %v2643_v39 = vrot.slane %v2491_v53, 5  ;;  %v2644_v37 = vrot.slane %v2491_v53, 6  ;;  %v2645_v49 = vrot.slane %v2491_v53, 7 }
 0x510   : > { %2885 = vst [vmem:[#allocation1 + $0x5] ss:$9 sm:$0xff] %v2629_v44  ;;  %v5500_v57 = vld [vmem:[%s5697_s6] ss:$0 sm:$0xff]  ;;  %v2493_v44 = vadd.f32 %v5386_v56, %v2427_v47 }
 0x511   : > { %2886 = vst [vmem:[#allocation1 + $0x6] ss:$9 sm:$0xff] %v2630_v41  ;;  %v2304_v42 = vadd.f32 %v5500_v57, %v2303_v28  ;;  %v2299_v6 = vadd.f32 %v5500_v57, %v5466_v32 }
 0x512   : > { %2887 = vst [vmem:[#allocation1 + $0x7] ss:$9 sm:$0xff] %v2631_v1  ;;  %v2653_v33 = vrot.slane %v2493_v44, 1  ;;  %v2654_v54 = vrot.slane %v2493_v44, 2  ;;  %v2655_v58 = vrot.slane %v2493_v44, 3  ;;  %v2656_v52 = vrot.slane %v2493_v44, 4  ;;  %v2433_v19 = vpop.xlane.xlu0 %2432 }
 0x513   : > { %v2338_v41 = vmax.f32 %v2304_v42, 0.0  ;;  %v2657_v61 = vrot.slane %v2493_v44, 5  ;;  %v2495_v47 = vadd.f32 %v5386_v56, %v2433_v19 }
 0x515   : > { %v2667_v62 = vrot.slane %v2495_v47, 1  ;;  %v2670_v51 = vrot.slane %v2495_v47, 4  ;;  %v2671_v46 = vrot.slane %v2495_v47, 5 }
 0x519   : > { %v5460_v59 = vld [vmem:[#allocation1] sm:$0xff] }
 0x51a   : > { %2889 = vst [vmem:[#allocation1] ss:$9 sm:$0xff] %v2490_v5  ;;  %v2374_v5 = vmul.f32 %v5473_v21, %v2338_v41 }
 0x51b   : > { %2890 = vst [vmem:[#allocation1 + $0x1] ss:$9 sm:$0xff] %v2632_v8  ;;  %2447 = vadd.xlane.f32.xlu2 %v2446_v27  ;;  %v2658_v8 = vrot.slane %v2493_v44, 6  ;;  %v2294_v27 = vadd.f32 %v5500_v57, %v5447_v63 }
 0x51c   : > { %2891 = vst [vmem:[#allocation1 + $0x2] ss:$9 sm:$0xff] %v2633_v48  ;;  %3094 = vperm.xlu0 %3923, %v2879_v50   ;;  %v2652_v50 = vrot.slane %v2492_v9, 7  ;;  %v2430_v48 = vpop.xlane.xlu2 %2429 }
 0x51d   : > { %2892 = vst [vmem:[#allocation1 + $0x3] ss:$9 sm:$0xff] %v2634_v34  ;;  %v2659_v34 = vrot.slane %v2493_v44, 7 }
 0x51e   : > { %2893 = vst [vmem:[#allocation1 + $0x4] ss:$9 sm:$0xff] %v2635_v18  ;;  %v2467_v18 = vsel %vm2376_vm0, %v2374_v5, 0.0 }
 0x51f   : > { %2894 = vst [vmem:[#allocation1 + $0x5] ss:$9 sm:$0xff] %v2636_v20  ;;  %v2494_v20 = vadd.f32 %v5386_v56, %v2430_v48 }
 0x520   : > { %2895 = vst [vmem:[#allocation1 + $0x6] ss:$9 sm:$0xff] %v2637_v30  ;;  %v2334_v30 = vmax.f32 %v2294_v27, 0.0 }
 0x521   : > { %2896 = vst [vmem:[#allocation1 + $0x7] ss:$9 sm:$0xff] %v2638_v4  ;;  %v2660_v4 = vrot.slane %v2494_v20, 1  ;;  %v2665_v38 = vrot.slane %v2494_v20, 6 }
 0x528   : > { %v5468_v17 = vld [vmem:[#allocation1] sm:$0xff] }
 0x529   : > { %2898 = vst [vmem:[#allocation1] ss:$9 sm:$0xff] %v2491_v53  ;;  %v3071_v53 = vpop.permute.xlu2 %3070 }
 0x52a   : > { %2899 = vst [vmem:[#allocation1 + $0x1] ss:$9 sm:$0xff] %v2639_v13  ;;  %v2661_v13 = vrot.slane %v2494_v20, 2 }
 0x52b   : > { %2900 = vst [vmem:[#allocation1 + $0x2] ss:$9 sm:$0xff] %v2640_v12  ;;  %v2662_v12 = vrot.slane %v2494_v20, 3 }
 0x52c   : > { %2901 = vst [vmem:[#allocation1 + $0x3] ss:$9 sm:$0xff] %v2641_v24  ;;  %v3168_v24 = vperm.slane %v3071_v53, %v5513_v40 }
 0x52d   : > { %2902 = vst [vmem:[#allocation1 + $0x4] ss:$9 sm:$0xff] %v2642_v7  ;;  %v2664_v7 = vrot.slane %v2494_v20, 5 }
 0x52e   : > { %2903 = vst [vmem:[#allocation1 + $0x5] ss:$9 sm:$0xff] %v2643_v39  ;;  %v2370_v39 = vmul.f32 %v5473_v21, %v2334_v30  ;;  %v5547_v30 = vadd.s32 4294967248, %v5477_v23 }
 0x52f   : > { %2904 = vst [vmem:[#allocation1 + $0x6] ss:$9 sm:$0xff] %v2644_v37  ;;  %v2666_v37 = vrot.slane %v2494_v20, 7 }
 0x530   : > { %2905 = vst [vmem:[#allocation1 + $0x7] ss:$9 sm:$0xff] %v2645_v49  ;;  %v2455_v49 = vsel %vm2376_vm0, %v2370_v39, 0.0 }
 0x533   : > { %3088 = vperm.xlu2 %3922, %v5439_v0   ;;  %v3164_v0 = vperm.slane %v3068_v45, %v5490_v36  ;;  %v2673_v45 = vrot.slane %v2495_v47, 7 }
 0x534   : > { %2453 = vadd.xlane.f32.xlu1 %v2452_v3  ;;  %v2669_v3 = vrot.slane %v2495_v47, 3 }
 0x535   : > { %v3166_v55 = vsel %vm3165_vm2, %v3164_v0, %v3162_v31 }
 0x536   : > { %v5519_v63 = vsel %vm3169_vm3, %v3168_v24, %v3166_v55 }
 0x537   : > { %v5492_v22 = vld [vmem:[#allocation1] sm:$0xff] }
 0x538   : > { %2907 = vst [vmem:[#allocation1] ss:$9 sm:$0xff] %v2492_v9  ;;  %v2668_v9 = vrot.slane %v2495_v47, 2 }
 0x539   : > { %2908 = vst [vmem:[#allocation1 + $0x1] ss:$9 sm:$0xff] %v2646_v29  ;;  %v2672_v29 = vrot.slane %v2495_v47, 6 }
 0x53a   : > { %2909 = vst [vmem:[#allocation1 + $0x2] ss:$9 sm:$0xff] %v2647_v14  ;;  %v2436_v14 = vpop.xlane.xlu1 %2435 }
 0x53b   : > { %2910 = vst [vmem:[#allocation1 + $0x3] ss:$9 sm:$0xff] %v2648_v43  ;;  %v2336_v43 = vmax.f32 %v2299_v6, 0.0 }
 0x53c   : > { %2911 = vst [vmem:[#allocation1 + $0x4] ss:$9 sm:$0xff] %v2649_v11 }
 0x53d   : > { %2912 = vst [vmem:[#allocation1 + $0x5] ss:$9 sm:$0xff] %v2650_v2  ;;  %v2372_v11 = vmul.f32 %v5473_v21, %v2336_v43 }
 0x53e   : > { %2913 = vst [vmem:[#allocation1 + $0x6] ss:$9 sm:$0xff] %v2651_v60 }
 0x53f   : > { %2914 = vst [vmem:[#allocation1 + $0x7] ss:$9 sm:$0xff] %v2652_v50  ;;  %v2461_v42 = vsel %vm2376_vm0, %v2372_v11, 0.0 }
 0x545   : > { %v2439_v28 = vpop.xlane.xlu2 %2438 }
 0x546   : > { %v5504_v1 = vld [vmem:[#allocation1] sm:$0xff]  ;;  %2468 = vadd.xlane.f32.xlu0 %v2467_v18  ;;  %v2497_v41 = vadd.f32 %v5386_v56, %v2439_v28 }
 0x547   : > { %2916 = vst [vmem:[#allocation1] ss:$9 sm:$0xff] %v2493_v44 }
 0x548   : > { %2917 = vst [vmem:[#allocation1 + $0x1] ss:$9 sm:$0xff] %v2653_v33  ;;  %v5535_v33 = vadd.s32 4294967256, %v5477_v23  ;;  %v2682_v5 = vrot.slane %v2497_v41, 2  ;;  %v2685_v18 = vrot.slane %v2497_v41, 5  ;;  %v2687_v53 = vrot.slane %v2497_v41, 7 }
 0x549   : > { %2918 = vst [vmem:[#allocation1 + $0x2] ss:$9 sm:$0xff] %v2654_v54  ;;  %v2681_v54 = vrot.slane %v2497_v41, 1 }
 0x54a   : > { %2919 = vst [vmem:[#allocation1 + $0x3] ss:$9 sm:$0xff] %v2655_v58  ;;  %v5538_v58 = vadd.s32 4294967264, %v5477_v23 }
 0x54b   : > { %2920 = vst [vmem:[#allocation1 + $0x4] ss:$9 sm:$0xff] %v2656_v52 }
 0x54c   : > { %2921 = vst [vmem:[#allocation1 + $0x5] ss:$9 sm:$0xff] %v2657_v61 }
 0x54d   : > { %2922 = vst [vmem:[#allocation1 + $0x6] ss:$9 sm:$0xff] %v2658_v8  ;;  %3091 = vperm.xlu1 %3924, %v5449_v15   ;;  %v2663_v15 = vrot.slane %v2494_v20, 4  ;;  %v3074_v52 = vpop.permute.xlu2 %3073  ;;  %v2683_v8 = vrot.slane %v2497_v41, 3 }
 0x54e   : > { %2923 = vst [vmem:[#allocation1 + $0x7] ss:$9 sm:$0xff] %v2659_v34  ;;  %v3172_v48 = vperm.slane %v3074_v52, %v5538_v58 }
 0x550   : > { %v3174_v27 = vsel %vm3173_vm4, %v3172_v48, %v5519_v63  ;;  %v5552_v63 = vld [vmem:[#allocation2] ss:$0 sm:$0xff] }
 0x555   : > { %v5515_v10 = vld [vmem:[#allocation1] sm:$0xff] }
 0x556   : > { %2925 = vst [vmem:[#allocation1] ss:$9 sm:$0xff] %v2494_v20  ;;  %v2686_v20 = vrot.slane %v2497_v41, 6 }
 0x557   : > { %2926 = vst [vmem:[#allocation1 + $0x1] ss:$9 sm:$0xff] %v2660_v4 }
 0x558   : > { %2927 = vst [vmem:[#allocation1 + $0x2] ss:$9 sm:$0xff] %v2661_v13 }
 0x559   : > { %2928 = vst [vmem:[#allocation1 + $0x3] ss:$9 sm:$0xff] %v2662_v12  ;;  %v3080_v12 = vpop.permute.xlu2 %3079 }
 0x55a   : > { %2929 = vst [vmem:[#allocation1 + $0x4] ss:$9 sm:$0xff] %v2663_v15  ;;  %3103 = vperm.xlu0 %3923, %v5492_v22   ;;  %v2496_v22 = vadd.f32 %v5386_v56, %v2436_v14  ;;  %v2684_v56 = vrot.slane %v2497_v41, 4  ;;  %v3180_v24 = vperm.slane %v3080_v12, %v5547_v30  ;;  %v2442_v15 = vpop.xlane.xlu0 %2441 }
 0x55b   : > { %2930 = vst [vmem:[#allocation1 + $0x5] ss:$9 sm:$0xff] %v2664_v7  ;;  %v2498_v39 = vadd.f32 %v5552_v63, %v2442_v15 }
 0x55c   : > { %2931 = vst [vmem:[#allocation1 + $0x6] ss:$9 sm:$0xff] %v2665_v38  ;;  %2456 = vadd.xlane.f32.xlu2 %v2455_v49  ;;  %v2674_v31 = vrot.slane %v2496_v22, 1  ;;  %v2675_v0 = vrot.slane %v2496_v22, 2  ;;  %v2676_v55 = vrot.slane %v2496_v22, 3  ;;  %v2677_v60 = vrot.slane %v2496_v22, 4 }
 0x55d   : > { %2932 = vst [vmem:[#allocation1 + $0x7] ss:$9 sm:$0xff] %v2666_v37  ;;  %v2678_v32 = vrot.slane %v2496_v22, 5  ;;  %v2679_v50 = vrot.slane %v2496_v22, 6  ;;  %v2680_v44 = vrot.slane %v2496_v22, 7  ;;  %v5556_v38 = vadd.s32 4294967240, %v5477_v23 }
 0x55e   : > { %v2301_v49 = vadd.f32 %v5500_v57, %v5480_v35  ;;  %v2688_v19 = vrot.slane %v2498_v39, 1  ;;  %v2693_v35 = vrot.slane %v2498_v39, 6  ;;  %v2694_v6 = vrot.slane %v2498_v39, 7 }
 0x562   : > { %v2451_v11 = vpop.xlane.xlu0 %2450 }
 0x564   : > { %v2933_v16 = vld [vmem:[#allocation1] sm:$0xff] }
 0x565   : > { %2934 = vst [vmem:[#allocation1] ss:$9 sm:$0xff] %v2495_v47  ;;  %3112 = vperm.xlu0 %3923, %v2933_v16  }
 0x566   : > { %2935 = vst [vmem:[#allocation1 + $0x1] ss:$9 sm:$0xff] %v2667_v62  ;;  %v2689_v62 = vrot.slane %v2498_v39, 2 }
 0x567   : > { %2936 = vst [vmem:[#allocation1 + $0x2] ss:$9 sm:$0xff] %v2668_v9  ;;  %v2690_v9 = vrot.slane %v2498_v39, 3 }
 0x568   : > { %2937 = vst [vmem:[#allocation1 + $0x3] ss:$9 sm:$0xff] %v2669_v3 }
 0x569   : > { %2938 = vst [vmem:[#allocation1 + $0x4] ss:$9 sm:$0xff] %v2670_v51  ;;  %v2337_v51 = vmax.f32 %v2301_v49, 0.0  ;;  %v5587_v49 = vadd.s32 4294967216, %v5477_v23 }
 0x56a   : > { %2939 = vst [vmem:[#allocation1 + $0x5] ss:$9 sm:$0xff] %v2671_v46  ;;  %v2691_v46 = vrot.slane %v2498_v39, 4 }
 0x56b   : > { %2940 = vst [vmem:[#allocation1 + $0x6] ss:$9 sm:$0xff] %v2672_v29  ;;  %v2692_v29 = vrot.slane %v2498_v39, 5 }
 0x56c   : > { %2941 = vst [vmem:[#allocation1 + $0x7] ss:$9 sm:$0xff] %v2673_v45 }
 0x573   : > { %v5529_v2 = vld [vmem:[#allocation1] sm:$0xff] }
 0x574   : > { %2943 = vst [vmem:[#allocation1] ss:$9 sm:$0xff] %v2496_v22  ;;  %3097 = vperm.xlu2 %3922, %v5460_v59   ;;  %v3077_v59 = vpop.permute.xlu1 %3076 }
 0x575   : > { %2944 = vst [vmem:[#allocation1 + $0x1] ss:$9 sm:$0xff] %v2674_v31  ;;  %v3176_v34 = vperm.slane %v3077_v59, %v5535_v33  ;;  %v2305_v59 = vpop.f32.mrf.mxu2 }
 0x576   : > { %2945 = vst [vmem:[#allocation1 + $0x2] ss:$9 sm:$0xff] %v2675_v0  ;;  %v2306_v52 = vadd.f32 %v5500_v57, %v2305_v59 }
 0x577   : > { %2946 = vst [vmem:[#allocation1 + $0x3] ss:$9 sm:$0xff] %v2676_v55  ;;  %2462 = vadd.xlane.f32.xlu1 %v2461_v42  ;;  %v3178_v4 = vsel %vm3177_vm5, %v3176_v34, %v3174_v27  ;;  %v5569_v42 = vadd.s32 4294967232, %v5477_v23 }
 0x578   : > { %2947 = vst [vmem:[#allocation1 + $0x4] ss:$9 sm:$0xff] %v2677_v60  ;;  %v3182_v7 = vsel %vm3181_vm6, %v3180_v24, %v3178_v4 }
 0x579   : > { %2948 = vst [vmem:[#allocation1 + $0x5] ss:$9 sm:$0xff] %v2678_v32 }
 0x57a   : > { %2949 = vst [vmem:[#allocation1 + $0x6] ss:$9 sm:$0xff] %v2679_v50 }
 0x57b   : > { %2950 = vst [vmem:[#allocation1 + $0x7] ss:$9 sm:$0xff] %v2680_v44  ;;  %v3086_v44 = vpop.permute.xlu0 %3085 }
 0x57c   : > { %v2445_v13 = vpop.xlane.xlu1 %2444 }
 0x57d   : > { %v2499_v45 = vadd.f32 %v5552_v63, %v2445_v13 }
 0x57f   : > { %v2695_v22 = vrot.slane %v2499_v45, 1  ;;  %v2696_v43 = vrot.slane %v2499_v45, 2  ;;  %v2697_v0 = vrot.slane %v2499_v45, 3  ;;  %v2698_v55 = vrot.slane %v2499_v45, 4 }
 0x580   : > { %v2699_v60 = vrot.slane %v2499_v45, 5  ;;  %v2700_v32 = vrot.slane %v2499_v45, 6  ;;  %v2701_v28 = vrot.slane %v2499_v45, 7 }
 0x582   : > { %v5540_v61 = vld [vmem:[#allocation1] sm:$0xff] }
 0x583   : > { %2952 = vst [vmem:[#allocation1] ss:$9 sm:$0xff] %v2497_v41 }
 0x584   : > { %2953 = vst [vmem:[#allocation1 + $0x1] ss:$9 sm:$0xff] %v2681_v54  ;;  %v3083_v37 = vpop.permute.xlu1 %3082  ;;  %v3188_v54 = vperm.slane %v3086_v44, %v5569_v42 }
 0x585   : > { %2954 = vst [vmem:[#allocation1 + $0x2] ss:$9 sm:$0xff] %v2682_v5  ;;  %v3184_v16 = vperm.slane %v3083_v37, %v5556_v38  ;;  %v2501_v37 = vadd.f32 %v5552_v63, %v2451_v11  ;;  %v5597_v11 = vadd.s32 4294967208, %v5477_v23 }
 0x586   : > { %2955 = vst [vmem:[#allocation1 + $0x3] ss:$9 sm:$0xff] %v2683_v8  ;;  %v5575_v8 = vadd.s32 4294967224, %v5477_v23 }
 0x587   : > { %2956 = vst [vmem:[#allocation1 + $0x4] ss:$9 sm:$0xff] %v2684_v56  ;;  %v3186_v3 = vsel %vm3185_vm7, %v3184_v16, %v3182_v7  ;;  %v2710_v16 = vrot.slane %v2501_v37, 2 }
 0x588   : > { %2957 = vst [vmem:[#allocation1 + $0x5] ss:$9 sm:$0xff] %v2685_v18  ;;  %v3190_v56 = vsel %vm3189_vm8, %v3188_v54, %v3186_v3  ;;  %v2713_v3 = vrot.slane %v2501_v37, 5 }
 0x589   : > { %2958 = vst [vmem:[#allocation1 + $0x6] ss:$9 sm:$0xff] %v2686_v20 }
 0x58a   : > { %2959 = vst [vmem:[#allocation1 + $0x7] ss:$9 sm:$0xff] %v2687_v53  ;;  %v2339_v53 = vmax.f32 %v2306_v52, 0.0  ;;  %v5604_v52 = vadd.s32 4294967200, %v5477_v23 }
 0x58c   : > { %v2375_v15 = vmul.f32 %v5473_v21, %v2339_v53 }
 0x58e   : > { %v2448_v50 = vpop.xlane.xlu2 %2447 }
 0x58f   : > { %v2500_v41 = vadd.f32 %v5552_v63, %v2448_v50 }
 0x590   : > { %3100 = vperm.xlu1 %3924, %v5468_v17   ;;  %v2373_v17 = vmul.f32 %v5473_v21, %v2337_v51  ;;  %v2714_v51 = vrot.slane %v2501_v37, 6 }
 0x591   : > { %v2960_v47 = vld [vmem:[#allocation1] sm:$0xff]  ;;  %v2702_v5 = vrot.slane %v2500_v41, 1  ;;  %v2703_v34 = vrot.slane %v2500_v41, 2  ;;  %v2704_v27 = vrot.slane %v2500_v41, 3  ;;  %v2705_v4 = vrot.slane %v2500_v41, 4 }
 0x592   : > { %2961 = vst [vmem:[#allocation1] ss:$9 sm:$0xff] %v2498_v39  ;;  %3121 = vperm.xlu0 %3923, %v2960_v47   ;;  %v2464_v14 = vsel %vm2376_vm0, %v2373_v17, 0.0  ;;  %v2706_v13 = vrot.slane %v2500_v41, 5  ;;  %v2707_v12 = vrot.slane %v2500_v41, 6  ;;  %v2708_v24 = vrot.slane %v2500_v41, 7 }
 0x593   : > { %2962 = vst [vmem:[#allocation1 + $0x1] ss:$9 sm:$0xff] %v2688_v19  ;;  %v2470_v39 = vsel %vm2376_vm0, %v2375_v15, 0.0  ;;  %v2709_v19 = vrot.slane %v2501_v37, 1  ;;  %vm3251_vm0 = vcmask 1040384  }
 0x594   : > { %2963 = vst [vmem:[#allocation1 + $0x2] ss:$9 sm:$0xff] %v2689_v62 }
 0x595   : > { %2964 = vst [vmem:[#allocation1 + $0x3] ss:$9 sm:$0xff] %v2690_v9  ;;  %v2712_v9 = vrot.slane %v2501_v37, 4 }
 0x596   : > { %2965 = vst [vmem:[#allocation1 + $0x4] ss:$9 sm:$0xff] %v2691_v46  ;;  %v3089_v48 = vpop.permute.xlu2 %3088 }
 0x597   : > { %2966 = vst [vmem:[#allocation1 + $0x5] ss:$9 sm:$0xff] %v2692_v29  ;;  %v3192_v20 = vperm.slane %v3089_v48, %v5575_v8 }
 0x598   : > { %2967 = vst [vmem:[#allocation1 + $0x6] ss:$9 sm:$0xff] %v2693_v35 }
 0x599   : > { %2968 = vst [vmem:[#allocation1 + $0x7] ss:$9 sm:$0xff] %v2694_v6  ;;  %v3194_v57 = vsel %vm3193_vm9, %v3192_v20, %v3190_v56 }
 0x59d   : > { %2465 = vadd.xlane.f32.xlu2 %v2464_v14 }
 0x5a0   : > { %v5566_v31 = vld [vmem:[#allocation1] sm:$0xff] }
 0x5a1   : > { %2970 = vst [vmem:[#allocation1] ss:$9 sm:$0xff] %v2499_v45 }
 0x5a2   : > { %2971 = vst [vmem:[#allocation1 + $0x1] ss:$9 sm:$0xff] %v2695_v22 }
 0x5a3   : > { %2972 = vst [vmem:[#allocation1 + $0x2] ss:$9 sm:$0xff] %v2696_v43 }
 0x5a4   : > { %2973 = vst [vmem:[#allocation1 + $0x3] ss:$9 sm:$0xff] %v2697_v0 }
 0x5a5   : > { %2974 = vst [vmem:[#allocation1 + $0x4] ss:$9 sm:$0xff] %v2698_v55 }
 0x5a6   : > { %2975 = vst [vmem:[#allocation1 + $0x5] ss:$9 sm:$0xff] %v2699_v60 }
 0x5a7   : > { %2976 = vst [vmem:[#allocation1 + $0x6] ss:$9 sm:$0xff] %v2700_v32  ;;  %v2454_v7 = vpop.xlane.xlu1 %2453 }
 0x5a8   : > { %2977 = vst [vmem:[#allocation1 + $0x7] ss:$9 sm:$0xff] %v2701_v28  ;;  %v2502_v29 = vadd.f32 %v5552_v63, %v2454_v7 }
 0x5aa   : > { %v2716_v6 = vrot.slane %v2502_v29, 1  ;;  %v2717_v17 = vrot.slane %v2502_v29, 2  ;;  %v2718_v45 = vrot.slane %v2502_v29, 3  ;;  %v2719_v14 = vrot.slane %v2502_v29, 4 }
 0x5ab   : > { %v2720_v22 = vrot.slane %v2502_v29, 5  ;;  %v2721_v43 = vrot.slane %v2502_v29, 6  ;;  %v2722_v0 = vrot.slane %v2502_v29, 7 }
 0x5af   : > { %v5578_v18 = vld [vmem:[#allocation1] sm:$0xff] }
 0x5b0   : > { %2979 = vst [vmem:[#allocation1] ss:$9 sm:$0xff] %v2500_v41 }
 0x5b1   : > { %2980 = vst [vmem:[#allocation1 + $0x1] ss:$9 sm:$0xff] %v2702_v5 }
 0x5b2   : > { %2981 = vst [vmem:[#allocation1 + $0x2] ss:$9 sm:$0xff] %v2703_v34 }
 0x5b3   : > { %2982 = vst [vmem:[#allocation1 + $0x3] ss:$9 sm:$0xff] %v2704_v27 }
 0x5b4   : > { %2983 = vst [vmem:[#allocation1 + $0x4] ss:$9 sm:$0xff] %v2705_v4 }
 0x5b5   : > { %2984 = vst [vmem:[#allocation1 + $0x5] ss:$9 sm:$0xff] %v2706_v13  ;;  %3106 = vperm.xlu2 %3922, %v5504_v1   ;;  %v2711_v1 = vrot.slane %v2501_v37, 3 }
 0x5b6   : > { %2985 = vst [vmem:[#allocation1 + $0x6] ss:$9 sm:$0xff] %v2707_v12 }
 0x5b7   : > { %2986 = vst [vmem:[#allocation1 + $0x7] ss:$9 sm:$0xff] %v2708_v24 }
 0x5ba   : > { %2471 = vadd.xlane.f32.xlu1 %v2470_v39  ;;  %v5610_v39 = vadd.s32 4294967192, %v5477_v23 }
 0x5bd   : > { %3115 = vperm.xlu2 %3922, %v5529_v2   ;;  %v2715_v2 = vrot.slane %v2501_v37, 7 }
 0x5be   : > { %v2987_v47 = vld [vmem:[#allocation1] sm:$0xff] }
 0x5bf   : > { %2988 = vst [vmem:[#allocation1] ss:$9 sm:$0xff] %v2501_v37  ;;  %3130 = vperm.xlu0 %3923, %v2987_v47   ;;  %v3092_v21 = vpop.permute.xlu1 %3091 }
 0x5c0   : > { %2989 = vst [vmem:[#allocation1 + $0x1] ss:$9 sm:$0xff] %v2709_v19  ;;  %v3196_v62 = vperm.slane %v3092_v21, %v5587_v49 }
 0x5c1   : > { %2990 = vst [vmem:[#allocation1 + $0x2] ss:$9 sm:$0xff] %v2710_v16 }
 0x5c2   : > { %2991 = vst [vmem:[#allocation1 + $0x3] ss:$9 sm:$0xff] %v2711_v1  ;;  %v3198_v46 = vsel %vm3197_vm10, %v3196_v62, %v3194_v57 }
 0x5c3   : > { %2992 = vst [vmem:[#allocation1 + $0x4] ss:$9 sm:$0xff] %v2712_v9 }
 0x5c4   : > { %2993 = vst [vmem:[#allocation1 + $0x5] ss:$9 sm:$0xff] %v2713_v3 }
 0x5c5   : > { %2994 = vst [vmem:[#allocation1 + $0x6] ss:$9 sm:$0xff] %v2714_v51  ;;  %3124 = vperm.xlu2 %3922, %v5566_v31   ;;  %v2460_v31 = vpop.xlane.xlu0 %2459 }
 0x5c6   : > { %2995 = vst [vmem:[#allocation1 + $0x7] ss:$9 sm:$0xff] %v2715_v2  ;;  %v2504_v27 = vadd.f32 %v5552_v63, %v2460_v31 }
 0x5c8   : > { %v2730_v20 = vrot.slane %v2504_v27, 1  ;;  %v2731_v53 = vrot.slane %v2504_v27, 2  ;;  %v2732_v13 = vrot.slane %v2504_v27, 3  ;;  %v2733_v57 = vrot.slane %v2504_v27, 4 }
 0x5c9   : > { %v2734_v24 = vrot.slane %v2504_v27, 5  ;;  %v2735_v15 = vrot.slane %v2504_v27, 6  ;;  %v2736_v7 = vrot.slane %v2504_v27, 7 }
 0x5cd   : > { %v2996_v35 = vld [vmem:[#allocation1] sm:$0xff]  ;;  %v3095_v55 = vpop.permute.xlu0 %3094 }
 0x5ce   : > { %2997 = vst [vmem:[#allocation1] ss:$9 sm:$0xff] %v2502_v29  ;;  %3133 = vperm.xlu2 %3922, %v2996_v35   ;;  %v3200_v60 = vperm.slane %v3095_v55, %v5597_v11 }
 0x5cf   : > { %2998 = vst [vmem:[#allocation1 + $0x1] ss:$9 sm:$0xff] %v2716_v6  ;;  %v2457_v32 = vpop.xlane.xlu2 %2456 }
 0x5d0   : > { %2999 = vst [vmem:[#allocation1 + $0x2] ss:$9 sm:$0xff] %v2717_v17  ;;  %v2503_v50 = vadd.f32 %v5552_v63, %v2457_v32  ;;  %v3202_v28 = vsel %vm3201_vm11, %v3200_v60, %v3198_v46 }
 0x5d1   : > { %3000 = vst [vmem:[#allocation1 + $0x3] ss:$9 sm:$0xff] %v2718_v45 }
 0x5d2   : > { %3001 = vst [vmem:[#allocation1 + $0x4] ss:$9 sm:$0xff] %v2719_v14  ;;  %v2723_v44 = vrot.slane %v2503_v50, 1  ;;  %v2724_v41 = vrot.slane %v2503_v50, 2  ;;  %v2725_v59 = vrot.slane %v2503_v50, 3  ;;  %v2727_v54 = vrot.slane %v2503_v50, 5 }
 0x5d3   : > { %3002 = vst [vmem:[#allocation1 + $0x5] ss:$9 sm:$0xff] %v2720_v22  ;;  %3109 = vperm.xlu1 %3924, %v5515_v10   ;;  %v2728_v5 = vrot.slane %v2503_v50, 6  ;;  %v2729_v48 = vrot.slane %v2503_v50, 7 }
 0x5d4   : > { %3003 = vst [vmem:[#allocation1 + $0x6] ss:$9 sm:$0xff] %v2721_v43 }
 0x5d5   : > { %3004 = vst [vmem:[#allocation1 + $0x7] ss:$9 sm:$0xff] %v2722_v0  ;;  %v2469_v55 = vpop.xlane.xlu0 %2468 }
 0x5d6   : > { %v2507_v60 = vadd.f32 %v5552_v63, %v2469_v55 }
 0x5d7   : > { %v3098_v34 = vpop.permute.xlu2 %3097 }
 0x5d8   : > { %v3204_v56 = vperm.slane %v3098_v34, %v5604_v52  ;;  %v2751_v32 = vrot.slane %v2507_v60, 1 }
 0x5db   : > { %3118 = vperm.xlu1 %3924, %v5540_v61   ;;  %v2726_v61 = vrot.slane %v2503_v50, 4 }
 0x5dc   : > { %v3005_v10 = vld [vmem:[#allocation1] sm:$0xff] }
 0x5dd   : > { %3006 = vst [vmem:[#allocation1] ss:$9 sm:$0xff] %v2503_v50 }
 0x5de   : > { %3007 = vst [vmem:[#allocation1 + $0x1] ss:$9 sm:$0xff] %v2723_v44  ;;  %v2754_v44 = vrot.slane %v2507_v60, 4 }
 0x5df   : > { %3008 = vst [vmem:[#allocation1 + $0x2] ss:$9 sm:$0xff] %v2724_v41  ;;  %v2755_v41 = vrot.slane %v2507_v60, 5 }
 0x5e0   : > { %3009 = vst [vmem:[#allocation1 + $0x3] ss:$9 sm:$0xff] %v2725_v59  ;;  %v2756_v59 = vrot.slane %v2507_v60, 6 }
 0x5e1   : > { %3010 = vst [vmem:[#allocation1 + $0x4] ss:$9 sm:$0xff] %v2726_v61  ;;  %v2757_v61 = vrot.slane %v2507_v60, 7 }
 0x5e2   : > { %3011 = vst [vmem:[#allocation1 + $0x5] ss:$9 sm:$0xff] %v2727_v54 }
 0x5e3   : > { %3127 = vperm.xlu1 %3924, %v5578_v18   ;;  %3012 = vst [vmem:[#allocation1 + $0x6] ss:$9 sm:$0xff] %v2728_v5  ;;  %v3206_v18 = vsel %vm3205_vm12, %v3204_v56, %v3202_v28  ;;  %v2752_v28 = vrot.slane %v2507_v60, 2 }
 0x5e4   : > { %3013 = vst [vmem:[#allocation1 + $0x7] ss:$9 sm:$0xff] %v2729_v48 }
 0x5ea   : > { %v2463_v12 = vpop.xlane.xlu1 %2462 }
 0x5eb   : > { %3136 = vperm.xlu1 %3924, %v3005_v10   ;;  %v3014_v4 = vld [vmem:[#allocation1] sm:$0xff]  ;;  %v2505_v37 = vadd.f32 %v5552_v63, %v2463_v12  ;;  %v2753_v10 = vrot.slane %v2507_v60, 3 }
 0x5ec   : > { %3139 = vperm.xlu0 %3923, %v3014_v4   ;;  %3015 = vst [vmem:[#allocation1] ss:$9 sm:$0xff] %v2504_v27 }
 0x5ed   : > { %3016 = vst [vmem:[#allocation1 + $0x1] ss:$9 sm:$0xff] %v2730_v20  ;;  %v2737_v16 = vrot.slane %v2505_v37, 1  ;;  %v2738_v21 = vrot.slane %v2505_v37, 2  ;;  %v2739_v62 = vrot.slane %v2505_v37, 3  ;;  %v2740_v3 = vrot.slane %v2505_v37, 4 }
 0x5ee   : > { %3017 = vst [vmem:[#allocation1 + $0x2] ss:$9 sm:$0xff] %v2731_v53  ;;  %v2741_v51 = vrot.slane %v2505_v37, 5  ;;  %v2742_v46 = vrot.slane %v2505_v37, 6  ;;  %v2743_v2 = vrot.slane %v2505_v37, 7 }
 0x5ef   : > { %3018 = vst [vmem:[#allocation1 + $0x3] ss:$9 sm:$0xff] %v2732_v13 }
 0x5f0   : > { %3019 = vst [vmem:[#allocation1 + $0x4] ss:$9 sm:$0xff] %v2733_v57 }
 0x5f1   : > { %3020 = vst [vmem:[#allocation1 + $0x5] ss:$9 sm:$0xff] %v2734_v24 }
 0x5f2   : > { %3021 = vst [vmem:[#allocation1 + $0x6] ss:$9 sm:$0xff] %v2735_v15 }
 0x5f3   : > { %3022 = vst [vmem:[#allocation1 + $0x7] ss:$9 sm:$0xff] %v2736_v7 }
 0x5fa   : > { %v3023_v9 = vld [vmem:[#allocation1] sm:$0xff] }
 0x5fb   : > { %3142 = vperm.xlu2 %3922, %v3023_v9   ;;  %3024 = vst [vmem:[#allocation1] ss:$9 sm:$0xff] %v2505_v37 }
 0x5fc   : > { %3025 = vst [vmem:[#allocation1 + $0x1] ss:$9 sm:$0xff] %v2737_v16 }
 0x5fd   : > { %3026 = vst [vmem:[#allocation1 + $0x2] ss:$9 sm:$0xff] %v2738_v21 }
 0x5fe   : > { %3027 = vst [vmem:[#allocation1 + $0x3] ss:$9 sm:$0xff] %v2739_v62 }
 0x5ff   : > { %3028 = vst [vmem:[#allocation1 + $0x4] ss:$9 sm:$0xff] %v2740_v3 }
 0x600   : > { %3029 = vst [vmem:[#allocation1 + $0x5] ss:$9 sm:$0xff] %v2741_v51 }
 0x601   : > { %3030 = vst [vmem:[#allocation1 + $0x6] ss:$9 sm:$0xff] %v2742_v46 }
 0x602   : > { %v3101_v19 = vpop.permute.xlu1 %3100  ;;  %3031 = vst [vmem:[#allocation1 + $0x7] ss:$9 sm:$0xff] %v2743_v2 }
 0x603   : > { %v3208_v47 = vperm.slane %v3101_v19, %v5610_v39 }
 0x605   : > { %v5615_v1 = vsel %vm3209_vm13, %v3208_v47, %v3206_v18 }
 0x609   : > { %v3032_v6 = vld [vmem:[#allocation1] sm:$0xff] }
 0x60a   : > { %3145 = vperm.xlu1 %3924, %v3032_v6  }
 0x610   : > { %v2466_v29 = vpop.xlane.xlu2 %2465 }
 0x611   : > { %v2506_v35 = vadd.f32 %v5552_v63, %v2466_v29 }
 0x613   : > { %v2744_v17 = vrot.slane %v2506_v35, 1  ;;  %v2745_v45 = vrot.slane %v2506_v35, 2  ;;  %v2746_v14 = vrot.slane %v2506_v35, 3  ;;  %v2747_v22 = vrot.slane %v2506_v35, 4  ;;  %3033 = vst [vmem:[#allocation1] ss:$9 sm:$0xff] %v2506_v35 }
 0x614   : > { %v2748_v43 = vrot.slane %v2506_v35, 5  ;;  %v2749_v0 = vrot.slane %v2506_v35, 6  ;;  %v2750_v31 = vrot.slane %v2506_v35, 7 }
 0x615   : > { %3034 = vst [vmem:[#allocation1 + $0x1] ss:$9 sm:$0xff] %v2744_v17 }
 0x616   : > { %3035 = vst [vmem:[#allocation1 + $0x2] ss:$9 sm:$0xff] %v2745_v45 }
 0x617   : > { %3036 = vst [vmem:[#allocation1 + $0x3] ss:$9 sm:$0xff] %v2746_v14 }
 0x618   : > { %3037 = vst [vmem:[#allocation1 + $0x4] ss:$9 sm:$0xff] %v2747_v22  ;;  %v5622_v57 = vpop.permute.xlu2 %3106 }
 0x619   : > { %3038 = vst [vmem:[#allocation1 + $0x5] ss:$9 sm:$0xff] %v2748_v43 }
 0x61a   : > { %3039 = vst [vmem:[#allocation1 + $0x6] ss:$9 sm:$0xff] %v2749_v0 }
 0x61b   : > { %3040 = vst [vmem:[#allocation1 + $0x7] ss:$9 sm:$0xff] %v2750_v31 }
 0x620   : > { %v3116_v15 = vpop.permute.xlu2 %3115 }
 0x621   : > { %v3222_v3 = vperm.slane %v3116_v15, %v5490_v36 }
 0x622   : > { %v3041_v50 = vld [vmem:[#allocation1] sm:$0xff] }
 0x623   : > { %3148 = vperm.xlu0 %3923, %v3041_v50   ;;  %3042 = vst [vmem:[#allocation1] ss:$9 sm:$0xff] %v2507_v60 }
 0x624   : > { %3043 = vst [vmem:[#allocation1 + $0x1] ss:$9 sm:$0xff] %v2751_v32 }
 0x625   : > { %3044 = vst [vmem:[#allocation1 + $0x2] ss:$9 sm:$0xff] %v2752_v28 }
 0x626   : > { %3045 = vst [vmem:[#allocation1 + $0x3] ss:$9 sm:$0xff] %v2753_v10 }
 0x627   : > { %3046 = vst [vmem:[#allocation1 + $0x4] ss:$9 sm:$0xff] %v2754_v44 }
 0x628   : > { %3047 = vst [vmem:[#allocation1 + $0x5] ss:$9 sm:$0xff] %v2755_v41  ;;  %v3125_v16 = vpop.permute.xlu2 %3124  ;;  %v3211_v41 = vadd.s32 4294967184, %v5477_v23 }
 0x629   : > { %3048 = vst [vmem:[#allocation1 + $0x6] ss:$9 sm:$0xff] %v2756_v59 }
 0x62a   : > { %3049 = vst [vmem:[#allocation1 + $0x7] ss:$9 sm:$0xff] %v2757_v61 }
 0x62d   : > { %v2472_v54 = vpop.xlane.xlu1 %2471 }
 0x62e   : > { %v2508_v5 = vadd.f32 %v5552_v63, %v2472_v54  ;;  %v5620_v63 = vpop.permute.xlu0 %3103 }
 0x62f   : > { %v3212_v54 = vperm.slane %v5620_v63, %v3211_v41 }
 0x630   : > { %v2758_v48 = vrot.slane %v2508_v5, 1  ;;  %v2759_v34 = vrot.slane %v2508_v5, 2  ;;  %v2760_v56 = vrot.slane %v2508_v5, 3  ;;  %v2761_v27 = vrot.slane %v2508_v5, 4  ;;  %v3134_v17 = vpop.permute.xlu2 %3133 }
 0x631   : > { %v3050_v18 = vld [vmem:[#allocation1] sm:$0xff]  ;;  %v2762_v20 = vrot.slane %v2508_v5, 5  ;;  %v2763_v4 = vrot.slane %v2508_v5, 6  ;;  %v2764_v53 = vrot.slane %v2508_v5, 7  ;;  %v3234_v0 = vperm.slane %v3134_v17, %v5569_v42 }
 0x632   : > { %3151 = vperm.xlu2 %3922, %v3050_v18   ;;  %3051 = vst [vmem:[#allocation1] ss:$9 sm:$0xff] %v2508_v5  ;;  %v3215_v42 = vadd.s32 4294967176, %v5477_v23 }
 0x633   : > { %3052 = vst [vmem:[#allocation1 + $0x1] ss:$9 sm:$0xff] %v2758_v48  ;;  %v3214_v48 = vsel %vm3213_vm14, %v3212_v54, %v5615_v1 }
 0x634   : > { %3053 = vst [vmem:[#allocation1 + $0x2] ss:$9 sm:$0xff] %v2759_v34 }
 0x635   : > { %3054 = vst [vmem:[#allocation1 + $0x3] ss:$9 sm:$0xff] %v2760_v56 }
 0x636   : > { %3055 = vst [vmem:[#allocation1 + $0x4] ss:$9 sm:$0xff] %v2761_v27  ;;  %v3113_v24 = vpop.permute.xlu0 %3112 }
 0x637   : > { %3056 = vst [vmem:[#allocation1 + $0x5] ss:$9 sm:$0xff] %v2762_v20  ;;  %v3220_v47 = vperm.slane %v3113_v24, %v5483_v25  ;;  %v3228_v25 = vperm.slane %v3125_v16, %v5535_v33 }
 0x638   : > { %3057 = vst [vmem:[#allocation1 + $0x6] ss:$9 sm:$0xff] %v2763_v4 }
 0x639   : > { %3058 = vst [vmem:[#allocation1 + $0x7] ss:$9 sm:$0xff] %v2764_v53 }
 0x63e   : > { %v3122_v37 = vpop.permute.xlu0 %3121 }
 0x63f   : > { %v3226_v29 = vperm.slane %v3122_v37, %v5538_v58 }
 0x640   : > { %v3059_v13 = vld [vmem:[#allocation1] sm:$0xff] }
 0x641   : > { %3154 = vperm.xlu1 %3924, %v3059_v13  }
 0x645   : > { %v3110_v12 = vpop.permute.xlu1 %3109 }
 0x646   : > { %v3219_v19 = vperm.slane %v3110_v12, %v5477_v23  ;;  %v3131_v51 = vpop.permute.xlu0 %3130 }
 0x647   : > { %v3232_v22 = vperm.slane %v3131_v51, %v5556_v38 }
 0x648   : > { %v3221_v21 = vsel %vm3161_vm1, %v3220_v47, %v3219_v19  ;;  %vm3256_vm1 = vcmp.lt.s32.totalorder %v3156_v26, 256 }
 0x649   : > { %v3223_v46 = vsel %vm3165_vm2, %v3222_v3, %v3221_v21 }
 0x64d   : > { %v3119_v7 = vpop.permute.xlu1 %3118 }
 0x64e   : > { %v3224_v62 = vperm.slane %v3119_v7, %v5513_v40 }
 0x650   : > { %v3225_v2 = vsel %vm3169_vm3, %v3224_v62, %v3223_v46 }
 0x651   : > { %v3227_v35 = vsel %vm3173_vm4, %v3226_v29, %v3225_v2 }
 0x652   : > { %v3229_v45 = vsel %vm3177_vm5, %v3228_v25, %v3227_v35 }
 0x655   : > { %v3128_v9 = vpop.permute.xlu1 %3127 }
 0x656   : > { %v3230_v6 = vperm.slane %v3128_v9, %v5547_v30  ;;  %v3143_v30 = vpop.permute.xlu2 %3142 }
 0x657   : > { %v3240_v38 = vperm.slane %v3143_v30, %v5597_v11 }
 0x658   : > { %v3231_v14 = vsel %vm3181_vm6, %v3230_v6, %v3229_v45 }
 0x659   : > { %v3233_v43 = vsel %vm3185_vm7, %v3232_v22, %v3231_v14 }
 0x65a   : > { %v3235_v33 = vsel %vm3189_vm8, %v3234_v0, %v3233_v43 }
 0x65d   : > { %v3137_v40 = vpop.permute.xlu1 %3136 }
 0x65e   : > { %v3140_v36 = vpop.permute.xlu0 %3139  ;;  %v3236_v58 = vperm.slane %v3137_v40, %v5575_v8 }
 0x65f   : > { %v3238_v60 = vperm.slane %v3140_v36, %v5587_v49 }
 0x660   : > { %v3237_v31 = vsel %vm3193_vm9, %v3236_v58, %v3235_v33 }
 0x661   : > { %v3239_v50 = vsel %vm3197_vm10, %v3238_v60, %v3237_v31 }
 0x662   : > { %v3241_v8 = vsel %vm3201_vm11, %v3240_v38, %v3239_v50 }
 0x67c   : > { %v3146_v55 = vpop.permute.xlu1 %3145 }
 0x67d   : > { %v3242_v28 = vperm.slane %v3146_v55, %v5604_v52 }
 0x67f   : > { %v3243_v49 = vsel %vm3205_vm12, %v3242_v28, %v3241_v8 }
 0x68c   : > { %v3152_v44 = vpop.permute.xlu2 %3151 }
 0x68d   : > { %v3246_v11 = vperm.slane %v3152_v44, %v3211_v41 }
 0x695   : > { %v3149_v32 = vpop.permute.xlu0 %3148 }
 0x696   : > { %v3244_v10 = vperm.slane %v3149_v32, %v5610_v39  ;;  %v3216_v39 = vperm.slane %v5622_v57, %v3215_v42 }
 0x698   : > { %v3245_v59 = vsel %vm3209_vm13, %v3244_v10, %v3243_v49  ;;  %v3218_v56 = vsel %vm3217_vm15, %v3216_v39, %v3214_v48 }
 0x699   : > { %v3247_v5 = vsel %vm3213_vm14, %v3246_v11, %v3245_v59 }
 0x6b3   : > { %v3155_v52 = vpop.permute.xlu1 %3154 }
 0x6b4   : > { %v3248_v61 = vperm.slane %v3155_v52, %v3215_v42 }
 0x6b6   : > { %v3249_v23 = vsel %vm3217_vm15, %v3248_v61, %v3247_v5 }
 0x6b7   : > { %v3250_v34 = vrot.slane %v3249_v23, 7 }
 0x6b9   : > { %v3252_v18 = vsel %vm3251_vm0, %v3218_v56, %v3250_v34 }
 0x6ba   : > { %3258 = vst.msk [vmem:[%s396_s8] sm:$0x3] %vm3256_vm1, %v3252_v18 }
 0x6bb   : > { %4058 = shalt.err (!%p4055_p1)
}
 0x6bc   : > { %3863 = dma.vmem_to_hbm [thread:$0]  (%p4218_p11), %s3273_s21, 32, %s3275_s24, %s3260_s27  }
 0x6bd PF: > { %s3286_s13 = sand.u32 1, %s4089_s11   ;;  %p5812_p0 = scmp.ne.s32.totalorder %s5740_s23, 0 }
 0x6be   : > { %p5813_p3 = scmp.ge.s32.totalorder %s4101_s14, 2  ;;  %s3287_s29 = scalar_lea.sflag [#allocation5], %s3286_s13 }
 0x6c0   : > { %p3873_p7 = pnand %p5813_p3, %p5812_p0 }
 0x6c2   : > { %p3874_p8 = pneg %p3873_p7 }
 0x6c4   : > { %4084 = dma.done.wait (%p3874_p8), %s3287_s29, 32  }
 0x6c5   : > { %4086 = vsyncadd (%p3874_p8), %s3287_s29, 4294967264  ;;  %s5814_s17 = sld [smem:[#allocation13_spill]]  ;;  %p25_p4 = scmp.ge.s32.totalorder %s4191_s16, 4  }
 0x6c6   : > { %s5815_s13 = sld [smem:[#allocation14_spill]]  ;;  %s5816_s11 = smov %s4093_s12 }
 0x6c7   : > { %s5818_s14 = smov %s4191_s16  ;;  %27 = sbr.rel (!%p25_p4) target bundleno = 9 (0x9), region = 116 }
 0x6cb   : > { %s5817_s12 = smov %s5814_s17 }
 0x6cc   :  { %3293 = vsyncpa [#allocation4], 1 }
 0x6cd   :  { %3295 = vsyncpa [#allocation4 + $0x1], 1 }
 0x6ce   :  { %3296 = vsyncpa [#allocation7], 1 }
 0x6cf   :  { %3297 = vsyncpa [#allocation5], 1 }
 0x6d0   :  { %3299 = vsyncpa [#allocation5 + $0x1], 1 }

</bundles_post_ra>
